<compile_context>
chip_gen: v5e
topology: v5e:2x2
jax: 0.10.0
libtpu: 0.0.40
codegen_flags: <defaults>
</compile_context>

<pallas_src>
import functools

import jax
import jax.numpy as jnp
from jax import lax
from jax.experimental import pallas as pl
from jax.experimental.pallas import tpu as pltpu

EXPANSION = 4


# ------------------------------ Pallas kernel ---------------------------------
def _bottleneck_kernel(*refs, Bt, H, W, Ho, Wo, P, Cin, Cout, stride, has_down):
    it = iter(refs)
    x_ref = next(it)
    w1_ref, s1_ref, b1_ref = next(it), next(it), next(it)
    w2_ref, s2_ref, b2_ref = next(it), next(it), next(it)
    w3_ref, s3_ref, b3_ref = next(it), next(it), next(it)
    if has_down:
        wd_ref, sd_ref, bd_ref = next(it), next(it), next(it)
    o_ref = next(it)
    pad_ref = next(it)   # VMEM scratch: (Bt, H+2, W+2, P) f32, zero-padded conv1 act
    col_ref = next(it)   # VMEM scratch: (Bt*Ho*Wo, 9*P) bf16, im2col buffer

    M = Bt * H * W        # rows at conv1 resolution
    Mo = Bt * Ho * Wo     # rows at output resolution

    # --- keep the pad borders zero (only the 4 strips; interior is overwritten) ---
    zr = jnp.zeros((Bt, 1, W + 2, P), jnp.float32)
    pad_ref[:, 0:1, :, :] = zr
    pad_ref[:, H + 1:H + 2, :, :] = zr
    zc = jnp.zeros((Bt, H + 2, 1, P), jnp.float32)
    pad_ref[:, :, 0:1, :] = zc
    pad_ref[:, :, W + 1:W + 2, :] = zc

    # --- conv1 (1x1) + BN1 + ReLU: one (M, Cin) x (Cin, P) matmul ---
    x_bf = x_ref[...].reshape(M, Cin)                                # bf16
    h1 = jnp.dot(x_bf, w1_ref[...], preferred_element_type=jnp.float32)
    h1 = jnp.maximum(h1 * s1_ref[...] + b1_ref[...], 0.0)            # (M, P) f32
    pad_ref[:, 1:H + 1, 1:W + 1, :] = h1.reshape(Bt, H, W, P)

    # --- conv2 (3x3, pad=1, stride s): im2col in VMEM, single K=9P matmul ---
    for t in range(9):
        di, dj = t // 3, t % 3
        if stride == 1:
            win = pad_ref[:, di:di + Ho, dj:dj + Wo, :]
        else:
            # strided sub-sampling directly at the window read (no sel matmul)
            win = pad_ref[:, pl.ds(di, Ho, stride=stride),
                          pl.ds(dj, Wo, stride=stride), :]
        col_ref[:, t * P:(t + 1) * P] = win.reshape(Mo, P).astype(jnp.bfloat16)
    h2 = jnp.dot(col_ref[...], w2_ref[...], preferred_element_type=jnp.float32)
    h2 = jnp.maximum(h2 * s2_ref[...] + b2_ref[...], 0.0).astype(jnp.bfloat16)

    # --- conv3 (1x1) + BN3 ---
    out = jnp.dot(h2, w3_ref[...], preferred_element_type=jnp.float32)
    out = out * s3_ref[...] + b3_ref[...]                            # (Mo, Cout) f32

    # --- residual path (x_ref re-read from VMEM here; not held live above) ---
    if has_down:
        if stride == 1:
            xr = x_ref[...]
        else:
            xr = x_ref[:, pl.ds(0, Ho, stride=stride),
                       pl.ds(0, Wo, stride=stride), :]
        xr = xr.reshape(Mo, Cin)                                     # bf16
        res = jnp.dot(xr, wd_ref[...], preferred_element_type=jnp.float32)
        res = res * sd_ref[...] + bd_ref[...]
    else:
        res = x_ref[...].reshape(Mo, Cout).astype(jnp.float32)       # identity

    out = jnp.maximum(out + res, 0.0)
    o_ref[...] = out.reshape(Bt, Ho, Wo, Cout).astype(o_ref.dtype)


# --------------------------- tile-size heuristic -------------------------------
def _pick_btile(B, H, W, Cin, Cout, P, vmem_budget=24 << 20):
    """Smallest divisor of B giving M >= 256 while keeping >=2 grid steps and VMEM bounded."""
    per_img = ((H * W * Cin * 2) * 2          # bf16 input block, double-buffered
               + (H * W * Cout * 4) * 2       # f32 output block, double-buffered
               + (H + 2) * (W + 2) * P * 4    # pad scratch
               + H * W * 9 * P * 2)           # im2col scratch
    best = 1
    for bt in range(1, B + 1):
        if B % bt:
            continue
        if bt * per_img > vmem_budget:
            break
        best = bt
        if bt * H * W >= 256 and (B // bt) >= 2:
            break
    return best


# ------------------------------ host wrappers ----------------------------------
def bottleneck_forward_nhwc(x_nhwc, params, *, stride=1, eps=1e-5, btile=None):
    """Fused Bottleneck forward. x: (B, H, W, Cin) -> (B, Ho, Wo, Cout), NHWC."""
    B, H, W, Cin = x_nhwc.shape
    P = params["conv1"].shape[0]            # planes
    Cout = params["conv3"].shape[0]         # planes * expansion
    has_down = "down_conv" in params
    if not has_down:
        assert stride == 1 and Cin == Cout, "identity shortcut requires matching shapes"
    Ho = (H + 2 - 3) // stride + 1
    Wo = (W + 2 - 3) // stride + 1

    def fold_bn(bn):
        s = bn["gamma"] / jnp.sqrt(bn["var"] + eps)
        b = bn["beta"] - bn["mean"] * s
        return s.reshape(1, -1).astype(jnp.float32), b.reshape(1, -1).astype(jnp.float32)

    s1, b1 = fold_bn(params["bn1"])
    s2, b2 = fold_bn(params["bn2"])
    s3, b3 = fold_bn(params["bn3"])

    # PyTorch conv weight layout (Cout, Cin, KH, KW) -> matmul-friendly matrices.
    w1 = params["conv1"][:, :, 0, 0].T.astype(jnp.bfloat16)                  # (Cin, P)
    w2 = params["conv2"].transpose(2, 3, 1, 0).reshape(9 * P, P).astype(jnp.bfloat16)
    w3 = params["conv3"][:, :, 0, 0].T.astype(jnp.bfloat16)                  # (P, Cout)

    if btile is None:
        btile = _pick_btile(B, H, W, Cin, Cout, P)
    assert B % btile == 0

    x_bf = x_nhwc.astype(jnp.bfloat16)      # bf16 activation I/O: half the HBM<->VMEM bytes

    args = [x_bf, w1, s1, b1, w2, s2, b2, w3, s3, b3]
    if has_down:
        wd = params["down_conv"][:, :, 0, 0].T.astype(jnp.bfloat16)          # (Cin, Cout)
        sd, bd = fold_bn(params["down_bn"])
        args += [wd, sd, bd]

    in_specs = [pl.BlockSpec((btile, H, W, Cin), lambda g: (g, 0, 0, 0))]
    in_specs += [pl.BlockSpec(a.shape, lambda g, _nd=a.ndim: (0,) * _nd) for a in args[1:]]

    kernel = functools.partial(
        _bottleneck_kernel, Bt=btile, H=H, W=W, Ho=Ho, Wo=Wo, P=P, Cin=Cin,
        Cout=Cout, stride=stride, has_down=has_down)

    return pl.pallas_call(
        kernel,
        out_shape=jax.ShapeDtypeStruct((B, Ho, Wo, Cout), jnp.float32),
        grid=(B // btile,),
        in_specs=in_specs,
        out_specs=pl.BlockSpec((btile, Ho, Wo, Cout), lambda g: (g, 0, 0, 0)),
        scratch_shapes=[
            pltpu.VMEM((btile, H + 2, W + 2, P), jnp.float32),
            pltpu.VMEM((btile * Ho * Wo, 9 * P), jnp.bfloat16),
        ],
        compiler_params=pltpu.CompilerParams(
            dimension_semantics=("parallel",),
            vmem_limit_bytes=32 * 1024 * 1024),
    )(*args)


def bottleneck_forward(x_nchw, params, *, stride=1, eps=1e-5, btile=None):
    """NCHW adapter around the NHWC-native fused kernel (PyTorch interface)."""
    x = jnp.transpose(x_nchw, (0, 2, 3, 1))
    y = bottleneck_forward_nhwc(x, params, stride=stride, eps=eps, btile=btile)
    return jnp.transpose(y, (0, 3, 1, 2))


# --------------------------- pure-JAX reference --------------------------------
def bottleneck_ref(x_nchw, params, *, stride=1, eps=1e-5):
    def conv(x, w, s=1, pad=0):
        return lax.conv_general_dilated(
            x, w.transpose(2, 3, 1, 0), (s, s), [(pad, pad), (pad, pad)],
            dimension_numbers=("NHWC", "HWIO", "NHWC"))

    def bn(x, p):
        s = p["gamma"] / jnp.sqrt(p["var"] + eps)
        return x * s + (p["beta"] - p["mean"] * s)

    x = jnp.transpose(x_nchw, (0, 2, 3, 1))
    out = jax.nn.relu(bn(conv(x, params["conv1"]), params["bn1"]))
    out = jax.nn.relu(bn(conv(out, params["conv2"], stride, 1), params["bn2"]))
    out = bn(conv(out, params["conv3"]), params["bn3"])
    if "down_conv" in params:
        res = bn(conv(x, params["down_conv"], stride), params["down_bn"])
    else:
        res = x
    return jnp.transpose(jax.nn.relu(out + res), (0, 3, 1, 2))


# ------------------------------ parameter init ---------------------------------
def _bn_params(key, c):
    k1, k2, k3, k4 = jax.random.split(key, 4)
    return dict(gamma=1.0 + 0.1 * jax.random.normal(k1, (c,), jnp.float32),
                beta=0.1 * jax.random.normal(k2, (c,), jnp.float32),
                mean=0.1 * jax.random.normal(k3, (c,), jnp.float32),
                var=0.75 + 0.5 * jax.random.uniform(k4, (c,), jnp.float32))


def make_bottleneck_params(key, inplanes, planes, stride):
    ks = jax.random.split(key, 8)
    cout = planes * EXPANSION

    def w(k, co, ci, ksz):
        return jax.random.normal(k, (co, ci, ksz, ksz), jnp.float32) / jnp.sqrt(ci * ksz * ksz)

    p = dict(conv1=w(ks[0], planes, inplanes, 1), bn1=_bn_params(ks[1], planes),
             conv2=w(ks[2], planes, planes, 3), bn2=_bn_params(ks[3], planes),
             conv3=w(ks[4], cout, planes, 1), bn3=_bn_params(ks[5], cout))
    if stride != 1 or inplanes != cout:
        p["down_conv"] = w(ks[6], cout, inplanes, 1)
        p["down_bn"] = _bn_params(ks[7], cout)
    return p


# ----------------------------------- main ---------------------------------------
if __name__ == "__main__":
    root = jax.random.PRNGKey(0)
    k_a, k_b, k_xa, k_xb = jax.random.split(root, 4)

    B, planes, H, W = 16, 32, 8, 8   # btile=4 -> M=256 rows/step, grid of 4 steps

    # Case A: identity shortcut (stride=1, downsample=None), Cin = planes*4 = 128.
    inplanes_a = planes * EXPANSION
    params_a = make_bottleneck_params(k_a, inplanes_a, planes, stride=1)
    x_a = jax.random.normal(k_xa, (B, inplanes_a, H, W), jnp.float32)
    out_a = jax.block_until_ready(
        jax.jit(functools.partial(bottleneck_forward, stride=1))(x_a, params_a))
    ref_a = bottleneck_ref(x_a, params_a, stride=1)
    assert out_a.shape == (B, planes * EXPANSION, H, W), out_a.shape
    assert bool(jnp.allclose(out_a, ref_a, rtol=5e-2, atol=1e-1)), \
        float(jnp.max(jnp.abs(out_a - ref_a)))

    # Case B: projection shortcut (stride=2 + 1x1 downsample), Cin = 64.
    inplanes_b = 64
    params_b = make_bottleneck_params(k_b, inplanes_b, planes, stride=2)
    x_b = jax.random.normal(k_xb, (B, inplanes_b, H, W), jnp.float32)
    out_b = jax.block_until_ready(
        jax.jit(functools.partial(bottleneck_forward, stride=2))(x_b, params_b))
    ref_b = bottleneck_ref(x_b, params_b, stride=2)
    assert out_b.shape == (B, planes * EXPANSION, H // 2, W // 2), out_b.shape
    assert bool(jnp.allclose(out_b, ref_b, rtol=5e-2, atol=1e-1)), \
        float(jnp.max(jnp.abs(out_b - ref_b)))

    print("KERNEL_OK")
</pallas_src>

<mosaic_0001>
module attributes {stable_mosaic.version = 11 : i64} {
  func.func @_bottleneck_kernel(%arg0: i32, %arg1: memref<4x8x8x128xbf16, #tpu.memory_space<vmem>>, %arg2: memref<128x32xbf16, #tpu.memory_space<vmem>>, %arg3: memref<1x32xf32, #tpu.memory_space<vmem>>, %arg4: memref<1x32xf32, #tpu.memory_space<vmem>>, %arg5: memref<288x32xbf16, #tpu.memory_space<vmem>>, %arg6: memref<1x32xf32, #tpu.memory_space<vmem>>, %arg7: memref<1x32xf32, #tpu.memory_space<vmem>>, %arg8: memref<32x128xbf16, #tpu.memory_space<vmem>>, %arg9: memref<1x128xf32, #tpu.memory_space<vmem>>, %arg10: memref<1x128xf32, #tpu.memory_space<vmem>>, %arg11: memref<4x8x8x128xf32, #tpu.memory_space<vmem>>, %arg12: memref<4x10x10x32xf32, #tpu.memory_space<vmem>>, %arg13: memref<256x288xbf16, #tpu.memory_space<vmem>>) attributes {dimension_semantics = [#tpu.dimension_semantics<parallel>], iteration_bounds = array<i64: 4>, scalar_prefetch = 0 : i64, scratch_operands = 2 : i64, tpu.core_type = #tpu.core_type<tc>, window_params = [{transform_indices = @transform_0, window_bounds = array<i64: 4, 8, 8, 128>}, {pipeline_mode = #tpu.pipeline_mode<synchronous>, transform_indices = @transform_1, window_bounds = array<i64: 128, 32>}, {pipeline_mode = #tpu.pipeline_mode<synchronous>, transform_indices = @transform_2, window_bounds = array<i64: 1, 32>}, {pipeline_mode = #tpu.pipeline_mode<synchronous>, transform_indices = @transform_3, window_bounds = array<i64: 1, 32>}, {pipeline_mode = #tpu.pipeline_mode<synchronous>, transform_indices = @transform_4, window_bounds = array<i64: 288, 32>}, {pipeline_mode = #tpu.pipeline_mode<synchronous>, transform_indices = @transform_5, window_bounds = array<i64: 1, 32>}, {pipeline_mode = #tpu.pipeline_mode<synchronous>, transform_indices = @transform_6, window_bounds = array<i64: 1, 32>}, {pipeline_mode = #tpu.pipeline_mode<synchronous>, transform_indices = @transform_7, window_bounds = array<i64: 32, 128>}, {pipeline_mode = #tpu.pipeline_mode<synchronous>, transform_indices = @transform_8, window_bounds = array<i64: 1, 128>}, {pipeline_mode = #tpu.pipeline_mode<synchronous>, transform_indices = @transform_9, window_bounds = array<i64: 1, 128>}, {transform_indices = @transform_10, window_bounds = array<i64: 4, 8, 8, 128>}]} {
    %cst = arith.constant 0.000000e+00 : f32
    %0 = vector.broadcast %cst : f32 to vector<4x1x10x32xf32>
    %c0 = arith.constant 0 : index
    %c0_0 = arith.constant 0 : index
    %c0_1 = arith.constant 0 : index
    %c0_2 = arith.constant 0 : index
    %1 = vector.load %arg12[%c0, %c0_0, %c0_1, %c0_2] : memref<4x10x10x32xf32, #tpu.memory_space<vmem>>, vector<4x1x10x32xf32>
    tpu.vector_store %arg12[%c0, %c0_0, %c0_1, %c0_2], %0 {strides = array<i32>} : memref<4x10x10x32xf32, #tpu.memory_space<vmem>>, vector<4x1x10x32xf32>,
    %c0_3 = arith.constant 0 : index
    %c9 = arith.constant 9 : index
    %c0_4 = arith.constant 0 : index
    %c0_5 = arith.constant 0 : index
    %2 = vector.load %arg12[%c0_3, %c9, %c0_4, %c0_5] : memref<4x10x10x32xf32, #tpu.memory_space<vmem>>, vector<4x1x10x32xf32>
    tpu.vector_store %arg12[%c0_3, %c9, %c0_4, %c0_5], %0 {strides = array<i32>} : memref<4x10x10x32xf32, #tpu.memory_space<vmem>>, vector<4x1x10x32xf32>,
    %cst_6 = arith.constant 0.000000e+00 : f32
    %3 = vector.broadcast %cst_6 : f32 to vector<4x10x1x32xf32>
    %c0_7 = arith.constant 0 : index
    %c0_8 = arith.constant 0 : index
    %c0_9 = arith.constant 0 : index
    %c0_10 = arith.constant 0 : index
    %4 = vector.load %arg12[%c0_7, %c0_8, %c0_9, %c0_10] : memref<4x10x10x32xf32, #tpu.memory_space<vmem>>, vector<4x10x1x32xf32>
    tpu.vector_store %arg12[%c0_7, %c0_8, %c0_9, %c0_10], %3 {strides = array<i32>} : memref<4x10x10x32xf32, #tpu.memory_space<vmem>>, vector<4x10x1x32xf32>,
    %c0_11 = arith.constant 0 : index
    %c0_12 = arith.constant 0 : index
    %c9_13 = arith.constant 9 : index
    %c0_14 = arith.constant 0 : index
    %5 = vector.load %arg12[%c0_11, %c0_12, %c9_13, %c0_14] : memref<4x10x10x32xf32, #tpu.memory_space<vmem>>, vector<4x10x1x32xf32>
    tpu.vector_store %arg12[%c0_11, %c0_12, %c9_13, %c0_14], %3 {strides = array<i32>} : memref<4x10x10x32xf32, #tpu.memory_space<vmem>>, vector<4x10x1x32xf32>,
    %c0_15 = arith.constant 0 : index
    %c0_16 = arith.constant 0 : index
    %c0_17 = arith.constant 0 : index
    %c0_18 = arith.constant 0 : index
    %6 = vector.load %arg1[%c0_15, %c0_16, %c0_17, %c0_18] : memref<4x8x8x128xbf16, #tpu.memory_space<vmem>>, vector<4x8x8x128xbf16>
    %7 = vector.shape_cast %6 : vector<4x8x8x128xbf16> to vector<256x128xbf16>
    %c0_19 = arith.constant 0 : index
    %c0_20 = arith.constant 0 : index
    %8 = vector.load %arg2[%c0_19, %c0_20] : memref<128x32xbf16, #tpu.memory_space<vmem>>, vector<128x32xbf16>
    %cst_21 = arith.constant dense<0.000000e+00> : vector<256x32xf32>
    %9 = tpu.matmul %7, %8, %cst_21 {dimension_numbers = #tpu.dot_dimension_numbers<[1], [0], [0], [1], [0, 0, 1, 1], [], []>} : vector<256x128xbf16>, vector<128x32xbf16>, vector<256x32xf32> -> vector<256x32xf32>
    %c0_22 = arith.constant 0 : index
    %c0_23 = arith.constant 0 : index
    %10 = vector.load %arg3[%c0_22, %c0_23] : memref<1x32xf32, #tpu.memory_space<vmem>>, vector<1x32xf32>
    %11 = vector.broadcast %10 : vector<1x32xf32> to vector<256x32xf32>
    %12 = arith.mulf %9, %11 : vector<256x32xf32>
    %c0_24 = arith.constant 0 : index
    %c0_25 = arith.constant 0 : index
    %13 = vector.load %arg4[%c0_24, %c0_25] : memref<1x32xf32, #tpu.memory_space<vmem>>, vector<1x32xf32>
    %14 = vector.broadcast %13 : vector<1x32xf32> to vector<256x32xf32>
    %15 = arith.addf %12, %14 : vector<256x32xf32>
    %cst_26 = arith.constant 0.000000e+00 : f32
    %16 = vector.broadcast %cst_26 : f32 to vector<256x32xf32>
    %17 = arith.maximumf %15, %16 : vector<256x32xf32>
    %18 = vector.shape_cast %17 : vector<256x32xf32> to vector<4x8x8x32xf32>
    %c0_27 = arith.constant 0 : index
    %c1 = arith.constant 1 : index
    %c1_28 = arith.constant 1 : index
    %c0_29 = arith.constant 0 : index
    %19 = vector.load %arg12[%c0_27, %c1, %c1_28, %c0_29] : memref<4x10x10x32xf32, #tpu.memory_space<vmem>>, vector<4x8x8x32xf32>
    tpu.vector_store %arg12[%c0_27, %c1, %c1_28, %c0_29], %18 {strides = array<i32>} : memref<4x10x10x32xf32, #tpu.memory_space<vmem>>, vector<4x8x8x32xf32>,
    %c0_30 = arith.constant 0 : index
    %c0_31 = arith.constant 0 : index
    %c0_32 = arith.constant 0 : index
    %c0_33 = arith.constant 0 : index
    %20 = vector.load %arg12[%c0_30, %c0_31, %c0_32, %c0_33] : memref<4x10x10x32xf32, #tpu.memory_space<vmem>>, vector<4x8x8x32xf32>
    %21 = vector.shape_cast %20 : vector<4x8x8x32xf32> to vector<256x32xf32>
    %22 = arith.truncf %21 : vector<256x32xf32> to vector<256x32xbf16>
    %c0_34 = arith.constant 0 : index
    %c0_35 = arith.constant 0 : index
    %23 = vector.load %arg13[%c0_34, %c0_35] : memref<256x288xbf16, #tpu.memory_space<vmem>>, vector<256x32xbf16>
    tpu.vector_store %arg13[%c0_34, %c0_35], %22 {strides = array<i32>} : memref<256x288xbf16, #tpu.memory_space<vmem>>, vector<256x32xbf16>,
    %c0_36 = arith.constant 0 : index
    %c0_37 = arith.constant 0 : index
    %c1_38 = arith.constant 1 : index
    %c0_39 = arith.constant 0 : index
    %24 = vector.load %arg12[%c0_36, %c0_37, %c1_38, %c0_39] : memref<4x10x10x32xf32, #tpu.memory_space<vmem>>, vector<4x8x8x32xf32>
    %25 = vector.shape_cast %24 : vector<4x8x8x32xf32> to vector<256x32xf32>
    %26 = arith.truncf %25 : vector<256x32xf32> to vector<256x32xbf16>
    %c0_40 = arith.constant 0 : index
    %c32 = arith.constant 32 : index
    %27 = vector.load %arg13[%c0_40, %c32] : memref<256x288xbf16, #tpu.memory_space<vmem>>, vector<256x32xbf16>
    tpu.vector_store %arg13[%c0_40, %c32], %26 {strides = array<i32>} : memref<256x288xbf16, #tpu.memory_space<vmem>>, vector<256x32xbf16>,
    %c0_41 = arith.constant 0 : index
    %c0_42 = arith.constant 0 : index
    %c2 = arith.constant 2 : index
    %c0_43 = arith.constant 0 : index
    %28 = vector.load %arg12[%c0_41, %c0_42, %c2, %c0_43] : memref<4x10x10x32xf32, #tpu.memory_space<vmem>>, vector<4x8x8x32xf32>
    %29 = vector.shape_cast %28 : vector<4x8x8x32xf32> to vector<256x32xf32>
    %30 = arith.truncf %29 : vector<256x32xf32> to vector<256x32xbf16>
    %c0_44 = arith.constant 0 : index
    %c64 = arith.constant 64 : index
    %31 = vector.load %arg13[%c0_44, %c64] : memref<256x288xbf16, #tpu.memory_space<vmem>>, vector<256x32xbf16>
    tpu.vector_store %arg13[%c0_44, %c64], %30 {strides = array<i32>} : memref<256x288xbf16, #tpu.memory_space<vmem>>, vector<256x32xbf16>,
    %c0_45 = arith.constant 0 : index
    %c1_46 = arith.constant 1 : index
    %c0_47 = arith.constant 0 : index
    %c0_48 = arith.constant 0 : index
    %32 = vector.load %arg12[%c0_45, %c1_46, %c0_47, %c0_48] : memref<4x10x10x32xf32, #tpu.memory_space<vmem>>, vector<4x8x8x32xf32>
    %33 = vector.shape_cast %32 : vector<4x8x8x32xf32> to vector<256x32xf32>
    %34 = arith.truncf %33 : vector<256x32xf32> to vector<256x32xbf16>
    %c0_49 = arith.constant 0 : index
    %c96 = arith.constant 96 : index
    %35 = vector.load %arg13[%c0_49, %c96] : memref<256x288xbf16, #tpu.memory_space<vmem>>, vector<256x32xbf16>
    tpu.vector_store %arg13[%c0_49, %c96], %34 {strides = array<i32>} : memref<256x288xbf16, #tpu.memory_space<vmem>>, vector<256x32xbf16>,
    %c0_50 = arith.constant 0 : index
    %c1_51 = arith.constant 1 : index
    %c1_52 = arith.constant 1 : index
    %c0_53 = arith.constant 0 : index
    %36 = vector.load %arg12[%c0_50, %c1_51, %c1_52, %c0_53] : memref<4x10x10x32xf32, #tpu.memory_space<vmem>>, vector<4x8x8x32xf32>
    %37 = vector.shape_cast %36 : vector<4x8x8x32xf32> to vector<256x32xf32>
    %38 = arith.truncf %37 : vector<256x32xf32> to vector<256x32xbf16>
    %c0_54 = arith.constant 0 : index
    %c128 = arith.constant 128 : index
    %39 = vector.load %arg13[%c0_54, %c128] : memref<256x288xbf16, #tpu.memory_space<vmem>>, vector<256x32xbf16>
    tpu.vector_store %arg13[%c0_54, %c128], %38 {strides = array<i32>} : memref<256x288xbf16, #tpu.memory_space<vmem>>, vector<256x32xbf16>,
    %c0_55 = arith.constant 0 : index
    %c1_56 = arith.constant 1 : index
    %c2_57 = arith.constant 2 : index
    %c0_58 = arith.constant 0 : index
    %40 = vector.load %arg12[%c0_55, %c1_56, %c2_57, %c0_58] : memref<4x10x10x32xf32, #tpu.memory_space<vmem>>, vector<4x8x8x32xf32>
    %41 = vector.shape_cast %40 : vector<4x8x8x32xf32> to vector<256x32xf32>
    %42 = arith.truncf %41 : vector<256x32xf32> to vector<256x32xbf16>
    %c0_59 = arith.constant 0 : index
    %c160 = arith.constant 160 : index
    %43 = vector.load %arg13[%c0_59, %c160] : memref<256x288xbf16, #tpu.memory_space<vmem>>, vector<256x32xbf16>
    tpu.vector_store %arg13[%c0_59, %c160], %42 {strides = array<i32>} : memref<256x288xbf16, #tpu.memory_space<vmem>>, vector<256x32xbf16>,
    %c0_60 = arith.constant 0 : index
    %c2_61 = arith.constant 2 : index
    %c0_62 = arith.constant 0 : index
    %c0_63 = arith.constant 0 : index
    %44 = vector.load %arg12[%c0_60, %c2_61, %c0_62, %c0_63] : memref<4x10x10x32xf32, #tpu.memory_space<vmem>>, vector<4x8x8x32xf32>
    %45 = vector.shape_cast %44 : vector<4x8x8x32xf32> to vector<256x32xf32>
    %46 = arith.truncf %45 : vector<256x32xf32> to vector<256x32xbf16>
    %c0_64 = arith.constant 0 : index
    %c192 = arith.constant 192 : index
    %47 = vector.load %arg13[%c0_64, %c192] : memref<256x288xbf16, #tpu.memory_space<vmem>>, vector<256x32xbf16>
    tpu.vector_store %arg13[%c0_64, %c192], %46 {strides = array<i32>} : memref<256x288xbf16, #tpu.memory_space<vmem>>, vector<256x32xbf16>,
    %c0_65 = arith.constant 0 : index
    %c2_66 = arith.constant 2 : index
    %c1_67 = arith.constant 1 : index
    %c0_68 = arith.constant 0 : index
    %48 = vector.load %arg12[%c0_65, %c2_66, %c1_67, %c0_68] : memref<4x10x10x32xf32, #tpu.memory_space<vmem>>, vector<4x8x8x32xf32>
    %49 = vector.shape_cast %48 : vector<4x8x8x32xf32> to vector<256x32xf32>
    %50 = arith.truncf %49 : vector<256x32xf32> to vector<256x32xbf16>
    %c0_69 = arith.constant 0 : index
    %c224 = arith.constant 224 : index
    %51 = vector.load %arg13[%c0_69, %c224] : memref<256x288xbf16, #tpu.memory_space<vmem>>, vector<256x32xbf16>
    tpu.vector_store %arg13[%c0_69, %c224], %50 {strides = array<i32>} : memref<256x288xbf16, #tpu.memory_space<vmem>>, vector<256x32xbf16>,
    %c0_70 = arith.constant 0 : index
    %c2_71 = arith.constant 2 : index
    %c2_72 = arith.constant 2 : index
    %c0_73 = arith.constant 0 : index
    %52 = vector.load %arg12[%c0_70, %c2_71, %c2_72, %c0_73] : memref<4x10x10x32xf32, #tpu.memory_space<vmem>>, vector<4x8x8x32xf32>
    %53 = vector.shape_cast %52 : vector<4x8x8x32xf32> to vector<256x32xf32>
    %54 = arith.truncf %53 : vector<256x32xf32> to vector<256x32xbf16>
    %c0_74 = arith.constant 0 : index
    %c256 = arith.constant 256 : index
    %55 = vector.load %arg13[%c0_74, %c256] : memref<256x288xbf16, #tpu.memory_space<vmem>>, vector<256x32xbf16>
    tpu.vector_store %arg13[%c0_74, %c256], %54 {strides = array<i32>} : memref<256x288xbf16, #tpu.memory_space<vmem>>, vector<256x32xbf16>,
    %c0_75 = arith.constant 0 : index
    %c0_76 = arith.constant 0 : index
    %56 = vector.load %arg13[%c0_75, %c0_76] : memref<256x288xbf16, #tpu.memory_space<vmem>>, vector<256x288xbf16>
    %c0_77 = arith.constant 0 : index
    %c0_78 = arith.constant 0 : index
    %57 = vector.load %arg5[%c0_77, %c0_78] : memref<288x32xbf16, #tpu.memory_space<vmem>>, vector<288x32xbf16>
    %cst_79 = arith.constant dense<0.000000e+00> : vector<256x32xf32>
    %58 = tpu.matmul %56, %57, %cst_79 {dimension_numbers = #tpu.dot_dimension_numbers<[1], [0], [0], [1], [0, 0, 1, 1], [], []>} : vector<256x288xbf16>, vector<288x32xbf16>, vector<256x32xf32> -> vector<256x32xf32>
    %c0_80 = arith.constant 0 : index
    %c0_81 = arith.constant 0 : index
    %59 = vector.load %arg6[%c0_80, %c0_81] : memref<1x32xf32, #tpu.memory_space<vmem>>, vector<1x32xf32>
    %60 = vector.broadcast %59 : vector<1x32xf32> to vector<256x32xf32>
    %61 = arith.mulf %58, %60 : vector<256x32xf32>
    %c0_82 = arith.constant 0 : index
    %c0_83 = arith.constant 0 : index
    %62 = vector.load %arg7[%c0_82, %c0_83] : memref<1x32xf32, #tpu.memory_space<vmem>>, vector<1x32xf32>
    %63 = vector.broadcast %62 : vector<1x32xf32> to vector<256x32xf32>
    %64 = arith.addf %61, %63 : vector<256x32xf32>
    %cst_84 = arith.constant 0.000000e+00 : f32
    %65 = vector.broadcast %cst_84 : f32 to vector<256x32xf32>
    %66 = arith.maximumf %64, %65 : vector<256x32xf32>
    %67 = arith.truncf %66 : vector<256x32xf32> to vector<256x32xbf16>
    %c0_85 = arith.constant 0 : index
    %c0_86 = arith.constant 0 : index
    %68 = vector.load %arg8[%c0_85, %c0_86] : memref<32x128xbf16, #tpu.memory_space<vmem>>, vector<32x128xbf16>
    %cst_87 = arith.constant dense<0.000000e+00> : vector<256x128xf32>
    %69 = tpu.matmul %67, %68, %cst_87 {dimension_numbers = #tpu.dot_dimension_numbers<[1], [0], [0], [1], [0, 0, 1, 1], [], []>} : vector<256x32xbf16>, vector<32x128xbf16>, vector<256x128xf32> -> vector<256x128xf32>
    %c0_88 = arith.constant 0 : index
    %c0_89 = arith.constant 0 : index
    %70 = vector.load %arg9[%c0_88, %c0_89] : memref<1x128xf32, #tpu.memory_space<vmem>>, vector<1x128xf32>
    %71 = vector.broadcast %70 : vector<1x128xf32> to vector<256x128xf32>
    %72 = arith.mulf %69, %71 : vector<256x128xf32>
    %c0_90 = arith.constant 0 : index
    %c0_91 = arith.constant 0 : index
    %73 = vector.load %arg10[%c0_90, %c0_91] : memref<1x128xf32, #tpu.memory_space<vmem>>, vector<1x128xf32>
    %74 = vector.broadcast %73 : vector<1x128xf32> to vector<256x128xf32>
    %75 = arith.addf %72, %74 : vector<256x128xf32>
    %c0_92 = arith.constant 0 : index
    %c0_93 = arith.constant 0 : index
    %c0_94 = arith.constant 0 : index
    %c0_95 = arith.constant 0 : index
    %76 = vector.load %arg1[%c0_92, %c0_93, %c0_94, %c0_95] : memref<4x8x8x128xbf16, #tpu.memory_space<vmem>>, vector<4x8x8x128xbf16>
    %77 = vector.shape_cast %76 : vector<4x8x8x128xbf16> to vector<256x128xbf16>
    %78 = arith.extf %77 : vector<256x128xbf16> to vector<256x128xf32>
    %79 = arith.addf %75, %78 : vector<256x128xf32>
    %cst_96 = arith.constant 0.000000e+00 : f32
    %80 = vector.broadcast %cst_96 : f32 to vector<256x128xf32>
    %81 = arith.maximumf %79, %80 : vector<256x128xf32>
    %82 = vector.shape_cast %81 : vector<256x128xf32> to vector<4x8x8x128xf32>
    %c0_97 = arith.constant 0 : index
    %c0_98 = arith.constant 0 : index
    %c0_99 = arith.constant 0 : index
    %c0_100 = arith.constant 0 : index
    %83 = vector.load %arg11[%c0_97, %c0_98, %c0_99, %c0_100] : memref<4x8x8x128xf32, #tpu.memory_space<vmem>>, vector<4x8x8x128xf32>
    tpu.vector_store %arg11[%c0_97, %c0_98, %c0_99, %c0_100], %82 {strides = array<i32>} : memref<4x8x8x128xf32, #tpu.memory_space<vmem>>, vector<4x8x8x128xf32>,
    return
  }
  func.func @transform_0(%arg0: i32) -> (i32, i32, i32, i32) {
    %c0_i32 = arith.constant 0 : i32
    %c0_i32_0 = arith.constant 0 : i32
    %c0_i32_1 = arith.constant 0 : i32
    %c0_i32_2 = arith.constant 0 : i32
    return %arg0, %c0_i32, %c0_i32_0, %c0_i32_1 : i32, i32, i32, i32
  }
  func.func @transform_1(%arg0: i32) -> (i32, i32) {
    %c0_i32 = arith.constant 0 : i32
    %c0_i32_0 = arith.constant 0 : i32
    %c0_i32_1 = arith.constant 0 : i32
    return %c0_i32, %c0_i32_0 : i32, i32
  }
  func.func @transform_2(%arg0: i32) -> (i32, i32) {
    %c0_i32 = arith.constant 0 : i32
    %c0_i32_0 = arith.constant 0 : i32
    %c0_i32_1 = arith.constant 0 : i32
    return %c0_i32, %c0_i32_0 : i32, i32
  }
  func.func @transform_3(%arg0: i32) -> (i32, i32) {
    %c0_i32 = arith.constant 0 : i32
    %c0_i32_0 = arith.constant 0 : i32
    %c0_i32_1 = arith.constant 0 : i32
    return %c0_i32, %c0_i32_0 : i32, i32
  }
  func.func @transform_4(%arg0: i32) -> (i32, i32) {
    %c0_i32 = arith.constant 0 : i32
    %c0_i32_0 = arith.constant 0 : i32
    %c0_i32_1 = arith.constant 0 : i32
    return %c0_i32, %c0_i32_0 : i32, i32
  }
  func.func @transform_5(%arg0: i32) -> (i32, i32) {
    %c0_i32 = arith.constant 0 : i32
    %c0_i32_0 = arith.constant 0 : i32
    %c0_i32_1 = arith.constant 0 : i32
    return %c0_i32, %c0_i32_0 : i32, i32
  }
  func.func @transform_6(%arg0: i32) -> (i32, i32) {
    %c0_i32 = arith.constant 0 : i32
    %c0_i32_0 = arith.constant 0 : i32
    %c0_i32_1 = arith.constant 0 : i32
    return %c0_i32, %c0_i32_0 : i32, i32
  }
  func.func @transform_7(%arg0: i32) -> (i32, i32) {
    %c0_i32 = arith.constant 0 : i32
    %c0_i32_0 = arith.constant 0 : i32
    %c0_i32_1 = arith.constant 0 : i32
    return %c0_i32, %c0_i32_0 : i32, i32
  }
  func.func @transform_8(%arg0: i32) -> (i32, i32) {
    %c0_i32 = arith.constant 0 : i32
    %c0_i32_0 = arith.constant 0 : i32
    %c0_i32_1 = arith.constant 0 : i32
    return %c0_i32, %c0_i32_0 : i32, i32
  }
  func.func @transform_9(%arg0: i32) -> (i32, i32) {
    %c0_i32 = arith.constant 0 : i32
    %c0_i32_0 = arith.constant 0 : i32
    %c0_i32_1 = arith.constant 0 : i32
    return %c0_i32, %c0_i32_0 : i32, i32
  }
  func.func @transform_10(%arg0: i32) -> (i32, i32, i32, i32) {
    %c0_i32 = arith.constant 0 : i32
    %c0_i32_0 = arith.constant 0 : i32
    %c0_i32_1 = arith.constant 0 : i32
    %c0_i32_2 = arith.constant 0 : i32
    return %arg0, %c0_i32, %c0_i32_0, %c0_i32_1 : i32, i32, i32, i32
  }
}

</mosaic_0001>

<bundles_post_ra>
// kernel: bottleneck_forward.1
= control target key start
LH: loop header
LB: loop body
LE: loop exit
PB: predicated region body
PF: predicated region fallthrough
CT: control target
= control target key end

     0   :  { %15 = vsyncpa [#allocation5], 0  ;;  %s6388_s0 = inlined_call_operand.vmem [shape: bf16[16,8,8,128], index: 0, kind: input, shape index: {}]   ;;  %s6389_s1 = inlined_call_operand.vmem [shape: bf16[128,32], index: 1, kind: input, shape index: {}]   ;;  %s6390_s2 = inlined_call_operand.vmem [shape: f32[1,32], index: 2, kind: input, shape index: {}]   ;;  %s6391_s3 = inlined_call_operand.vmem [shape: f32[1,32], index: 3, kind: input, shape index: {}]   ;;  %s6392_s4 = inlined_call_operand.vmem [shape: bf16[288,32], index: 4, kind: input, shape index: {}]   ;;  %s6393_s5 = inlined_call_operand.vmem [shape: f32[1,32], index: 5, kind: input, shape index: {}]   ;;  %s6394_s6 = inlined_call_operand.vmem [shape: f32[1,32], index: 6, kind: input, shape index: {}]   ;;  %s6395_s7 = inlined_call_operand.vmem [shape: bf16[32,128], index: 7, kind: input, shape index: {}]   ;;  %s6396_s8 = inlined_call_operand.vmem [shape: f32[1,128], index: 8, kind: input, shape index: {}]   ;;  %s6397_s9 = inlined_call_operand.vmem [shape: f32[1,128], index: 9, kind: input, shape index: {}]   ;;  %s6398_s10 = inlined_call_operand.hbm [shape: f32[16,8,8,128], index: 10, kind: output, shape index: {}]  }
   0x1   :  { %17 = vsyncpa [#allocation5 + $0x1], 0  ;;  %s4655_s13 = smov 0   ;;  %s4657_s14 = smov 0  }
   0x2   :  { %s4659_s15 = smov 0   ;;  %s4661_s16 = smov 0  }
   0x3 LB: > { %s4676_s17 = sadd.s32 4294967295, %s4592_s16   ;;  %s3867_s18 = sadd.s32 4294967294, %s4592_s16   ;;  %s4592_s16 = sphi %s4661_s16, %s6404_s16   ;;  %s4588_s15 = sphi %s4659_s15, %s6403_s15   ;;  %s4584_s14 = sphi %s4657_s14, %s6402_s14   ;;  %s4580_s13 = sphi %s4655_s13, %s6401_s13  }
   0x4   : > { %s4680_s19 = sadd.s32 1, %s4592_s16   ;;  %s245_s20 = sadd.s32 1, %s4588_s15 }
   0x5   : > { %s242_s21 = ssub.s32 %s4592_s16, %s4680_s19  ;;  %p255_p0 = scmp.ne.s32.totalorder %s4588_s15, %s4584_s14 }
   0x6   : > { %p243_p1 = scmp.eq.s32.totalorder %s242_s21, 0  ;;  %p256_p2 = scmp.eq.s32.totalorder %s4676_s17, 3 }
   0x7   : > { %p261_p3 = scmp.ne.s32.totalorder %s4584_s14, %s4580_s13  ;;  %p262_p4 = scmp.eq.s32.totalorder %s3867_s18, 3 }
   0x8   : > { %s4691_s22 = scalar_select %p243_p1, %s4588_s15, %s245_s20  }
   0x9   : > { %p4693_p5 = por %p256_p2, %p255_p0  ;;  %p4697_p6 = por %p262_p4, %p261_p3 }
   0xa   : > { %p3870_p7 = scmp.ge.s32.totalorder %s4592_s16, 1  ;;  %p317_p8 = scmp.lt.s32.totalorder %s4592_s16, 5 }
   0xc   : > { %p318_p9 = pnand %p3870_p7, %p317_p8 }
   0xd   : > { %s3872_s18 = sshll.u32 (!%p318_p9), %s4676_s17, 2  ;;  %s4596_s25 = smov (!%p318_p9), 64  }
   0xe   : > { %321 = sbr.rel (%p318_p9) target bundleno = 1121 (0x461), region = 60  ;;  %p357_p10 = scmp.lt.s32.totalorder (!%p318_p9), %s3872_s18, 15 }
   0xf   : > { %s4597_s26 = smov (!%p318_p9), 96   ;;  %s353_s27 = sand.u32 (!%p318_p9), 1, %s4584_s14  }
  0x10   : > { %s3871_s28 = sshll.u32 (!%p318_p9), %s353_s27, 8 }
  0x13   : > { %v4305_v0 = vld [vmem:[%s6389_s1 + $0x38] sm:$0xff]  ;;  %v4304_v1 = vld [vmem:[%s6389_s1 + $0x30] sm:$0xff]  ;;  %v4303_v2 = vld [vmem:[%s6389_s1 + $0x28] sm:$0xff]  ;;  %s6406_s18 = smov (!%p357_p10, %s3872_s18), 15  ;;  %vm367_vm0 = vcmask 254976   ;;  %vm365_vm1 = vcmask 261120  }
  0x14   : > { %657 = vmatpush.bf16.msra.mxu0 %v4305_v0  ;;  %4455 = vmatpush.bf16.msra.mxu1 %v4305_v0  ;;  %v4302_v3 = vld [vmem:[%s6389_s1 + $0x20] sm:$0xff]  ;;  %v4301_v4 = vld [vmem:[%s6389_s1 + $0x18] sm:$0xff]  ;;  %v4300_v5 = vld [vmem:[%s6389_s1 + $0x10] sm:$0xff]  ;;  %s4281_s29 = sshll.u32 %s6406_s18, 5  ;;  %v4594_v14 = vmov 0.0   ;;  %vm384_vm2 = vcmask 253952  }
  0x15   : > { %4456 = vmatpush.bf16.msra.mxu2 %v4305_v0  ;;  %v4299_v6 = vld [vmem:[%s6389_s1 + $0x8] sm:$0xff]  ;;  %v4298_v7 = vld [vmem:[%s6389_s1] sm:$0xff]  ;;  %s4731_s21 = scalar_lea.vmem %s6388_s0, %s4281_s29  ;;  %368 = vst.msk [vmem:[#allocation2 + $0x8] sm:$0x3] %vm367_vm0, %v4594_v14  ;;  %s4595_s18 = smov 32   ;;  %vm947_vm3 = vcmask 257024  }
  0x16   : > { %v4282_v8 = vld [vmem:[%s4731_s21] sm:$0xff]  ;;  %v4292_v9 = vld [vmem:[%s4731_s21 + $0x50] sm:$0xff]  ;;  %v4283_v10 = vld [vmem:[%s4731_s21 + $0x8] sm:$0xff]  ;;  %366 = vst.msk [vmem:[#allocation2] sm:$0xff] %vm365_vm1, %v4594_v14  ;;  %vm1172_vm4 = vcmask 519424   ;;  %vm1397_vm5 = vcmask 781824  }
  0x17   : > { %v4293_v11 = vld [vmem:[%s4731_s21 + $0x58] sm:$0xff]  ;;  %v4284_v12 = vld [vmem:[%s4731_s21 + $0x10] sm:$0xff]  ;;  %v4286_v15 = vld [vmem:[%s4731_s21 + $0x20] sm:$0xff]  ;;  %381 = vst.msk [vmem:[#allocation2 + $0x1d8] sm:$0x3] %vm367_vm0, %v4594_v14  ;;  %vm1622_vm6 = vcmask 1044224  }
  0x18   : > { %658 = vmatpush.bf16.msra.mxu0 %v4304_v1  ;;  %4457 = vmatpush.bf16.msra.mxu1 %v4304_v1  ;;  %v4285_v13 = vld [vmem:[%s4731_s21 + $0x18] sm:$0xff]  ;;  %383 = vst.msk [vmem:[#allocation2 + $0x278] sm:$0x3] %vm367_vm0, %v4594_v14  ;;  %v4287_v20 = vld [vmem:[%s4731_s21 + $0x28] sm:$0xff]  ;;  %v4288_v21 = vld [vmem:[%s4731_s21 + $0x30] sm:$0xff]  ;;  %s6075_s29 = scalar_lea.vmem [#allocation4], %s3871_s28 }
  0x19   : > { %4458 = vmatpush.bf16.msra.mxu2 %v4304_v1  ;;  %425 = vst.msk [vmem:[#allocation2 + $0x9] sm:$0x1] %vm384_vm2, %v4594_v14  ;;  %v4289_v24 = vld [vmem:[%s4731_s21 + $0x38] sm:$0xff]  ;;  %v4290_v27 = vld [vmem:[%s4731_s21 + $0x40] sm:$0xff]  ;;  %v4291_v51 = vld [vmem:[%s4731_s21 + $0x48] sm:$0xff] }
  0x1a   : > { %454 = vst.msk [vmem:[#allocation2 + $0x1d9] sm:$0x1] %vm384_vm2, %v4594_v14  ;;  %v4912_v30 = vld [vmem:[%s6390_s2] ss:$0 sm:$0xff] }
  0x1b   : > { %464 = vst.msk [vmem:[#allocation2 + $0x279] sm:$0x1] %vm384_vm2, %v4594_v14  ;;  %v4926_v32 = vld [vmem:[%s6391_s3] ss:$0 sm:$0xff] }
  0x1c   : > { %659 = vmatpush.bf16.msra.mxu0 %v4303_v2  ;;  %4459 = vmatpush.bf16.msra.mxu1 %v4303_v2  ;;  %385 = vst.msk [vmem:[#allocation2] sm:$0x1] %vm384_vm2, %v4594_v14 }
  0x1d   : > { %4460 = vmatpush.bf16.msra.mxu2 %v4303_v2  ;;  %369 = vst.msk [vmem:[#allocation2 + $0xa0] sm:$0xff] %vm365_vm1, %v4594_v14  ;;  %v980_v16 = vld [vmem:[#allocation2 + $0x1] sm:$0xff] }
  0x1e   : > { %370 = vst.msk [vmem:[#allocation2 + $0xa8] sm:$0x3] %vm367_vm0, %v4594_v14  ;;  %v1012_v17 = vpack.c.bf16 %v980_v16, %v980_v16 }
  0x1f   : > { %371 = vst.msk [vmem:[#allocation2 + $0x140] sm:$0xff] %vm365_vm1, %v4594_v14 }
  0x20   : > { %660 = vmatpush.bf16.msra.mxu0 %v4302_v3  ;;  %4461 = vmatpush.bf16.msra.mxu1 %v4302_v3  ;;  %v1205_v18 = vld [vmem:[#allocation2 + $0x2] sm:$0xff]  ;;  %372 = vst.msk [vmem:[#allocation2 + $0x148] sm:$0x3] %vm367_vm0, %v4594_v14 }
  0x21   : > { %4462 = vmatpush.bf16.msra.mxu2 %v4302_v3  ;;  %1076 = vrot.lane.b32.xlu0 %v1012_v17, %s4595_s18  ;;  %v1237_v19 = vpack.c.bf16 %v1205_v18, %v1205_v18  ;;  %373 = vst.msk [vmem:[#allocation2 + $0x1e0] sm:$0xff] %vm365_vm1, %v4594_v14 }
  0x22   : > { %374 = vst.msk [vmem:[#allocation2 + $0x1e8] sm:$0x3] %vm367_vm0, %v4594_v14 }
  0x23   : > { %1301 = vrot.lane.b32.xlu2 %v1237_v19, %s4596_s25  ;;  %376 = vst.msk [vmem:[#allocation2 + $0x90] sm:$0xff] %vm365_vm1, %v4594_v14 }
  0x24   : > { %661 = vmatpush.bf16.msra.mxu0 %v4301_v4  ;;  %4463 = vmatpush.bf16.msra.mxu1 %v4301_v4  ;;  %377 = vst.msk [vmem:[#allocation2 + $0x98] sm:$0x3] %vm367_vm0, %v4594_v14 }
  0x25   : > { %4464 = vmatpush.bf16.msra.mxu2 %v4301_v4  ;;  %378 = vst.msk [vmem:[#allocation2 + $0x130] sm:$0xff] %vm365_vm1, %v4594_v14  ;;  %v988_v53 = vld [vmem:[#allocation2 + $0xa1] sm:$0xff] }
  0x26   : > { %379 = vst.msk [vmem:[#allocation2 + $0x138] sm:$0x3] %vm367_vm0, %v4594_v14  ;;  %v1020_v59 = vpack.c.bf16 %v988_v53, %v988_v53 }
  0x27   : > { %380 = vst.msk [vmem:[#allocation2 + $0x1d0] sm:$0xff] %vm365_vm1, %v4594_v14 }
  0x28   : > { %662 = vmatpush.bf16.msra.mxu0 %v4300_v5  ;;  %4465 = vmatpush.bf16.msra.mxu1 %v4300_v5  ;;  %382 = vst.msk [vmem:[#allocation2 + $0x270] sm:$0xff] %vm365_vm1, %v4594_v14 }
  0x29   : > { %4466 = vmatpush.bf16.msra.mxu2 %v4300_v5  ;;  %386 = vst.msk [vmem:[#allocation2 + $0x10] sm:$0x1] %vm384_vm2, %v4594_v14 }
  0x2a   : > { %387 = vst.msk [vmem:[#allocation2 + $0x20] sm:$0x1] %vm384_vm2, %v4594_v14 }
  0x2b   : > { %388 = vst.msk [vmem:[#allocation2 + $0x30] sm:$0x1] %vm384_vm2, %v4594_v14  ;;  %v2207_v22 = vld [vmem:[#allocation2 + $0x91] sm:$0xff] }
  0x2c   : > { %663 = vmatpush.bf16.msra.mxu0 %v4299_v6  ;;  %4467 = vmatpush.bf16.msra.mxu1 %v4299_v6  ;;  %389 = vst.msk [vmem:[#allocation2 + $0x40] sm:$0x1] %vm384_vm2, %v4594_v14  ;;  %v2239_v23 = vpack.c.bf16 %v2207_v22, %v2207_v22 }
  0x2d   : > { %4468 = vmatpush.bf16.msra.mxu2 %v4299_v6  ;;  %390 = vst.msk [vmem:[#allocation2 + $0x50] sm:$0x1] %vm384_vm2, %v4594_v14  ;;  %v2215_v63 = vld [vmem:[#allocation2 + $0x131] sm:$0xff] }
  0x2e   : > { %391 = vst.msk [vmem:[#allocation2 + $0x60] sm:$0x1] %vm384_vm2, %v4594_v14  ;;  %2310 = vrot.lane.b32.xlu2 %v2239_v23, %s4597_s26 }
  0x2f   : > { %392 = vst.msk [vmem:[#allocation2 + $0x70] sm:$0x1] %vm384_vm2, %v4594_v14 }
  0x30   : > { %664 = vmatpush.bf16.msra.mxu0 %v4298_v7  ;;  %4469 = vmatpush.bf16.msra.mxu1 %v4298_v7  ;;  %393 = vst.msk [vmem:[#allocation2 + $0x80] sm:$0x1] %vm384_vm2, %v4594_v14 }
  0x31   : > { %4470 = vmatpush.bf16.msra.mxu2 %v4298_v7  ;;  %396 = vst.msk [vmem:[#allocation2 + $0xb0] sm:$0x1] %vm384_vm2, %v4594_v14 }
  0x32   : > { %397 = vst.msk [vmem:[#allocation2 + $0xc0] sm:$0x1] %vm384_vm2, %v4594_v14 }
  0x33   : > { %665 = vmatmul.bf16.vlgmr.msra.gmra.mxu0 %v4282_v8  ;;  %715 = vmatmul.bf16.vlgmr.msra.gmra.mxu1 %v4292_v9  ;;  %398 = vst.msk [vmem:[#allocation2 + $0xd0] sm:$0x1] %vm384_vm2, %v4594_v14  ;;  %v2247_v9 = vpack.c.bf16 %v2215_v63, %v2215_v63 }
  0x34   : > { %399 = vst.msk [vmem:[#allocation2 + $0xe0] sm:$0x1] %vm384_vm2, %v4594_v14 }
  0x35   : > { %400 = vst.msk [vmem:[#allocation2 + $0xf0] sm:$0x1] %vm384_vm2, %v4594_v14 }
  0x36   : > { %401 = vst.msk [vmem:[#allocation2 + $0x100] sm:$0x1] %vm384_vm2, %v4594_v14 }
  0x37   : > { %402 = vst.msk [vmem:[#allocation2 + $0x110] sm:$0x1] %vm384_vm2, %v4594_v14 }
  0x38   : > { %403 = vst.msk [vmem:[#allocation2 + $0x120] sm:$0x1] %vm384_vm2, %v4594_v14 }
  0x39   : > { %406 = vst.msk [vmem:[#allocation2 + $0x150] sm:$0x1] %vm384_vm2, %v4594_v14 }
  0x3a   : > { %407 = vst.msk [vmem:[#allocation2 + $0x160] sm:$0x1] %vm384_vm2, %v4594_v14 }
  0x3b   : > { %408 = vst.msk [vmem:[#allocation2 + $0x170] sm:$0x1] %vm384_vm2, %v4594_v14 }
  0x3c   : > { %409 = vst.msk [vmem:[#allocation2 + $0x180] sm:$0x1] %vm384_vm2, %v4594_v14 }
  0x3d   : > { %410 = vst.msk [vmem:[#allocation2 + $0x190] sm:$0x1] %vm384_vm2, %v4594_v14 }
  0x3e   : > { %411 = vst.msk [vmem:[#allocation2 + $0x1a0] sm:$0x1] %vm384_vm2, %v4594_v14 }
  0x3f   : > { %412 = vst.msk [vmem:[#allocation2 + $0x1b0] sm:$0x1] %vm384_vm2, %v4594_v14 }
  0x40   : > { %413 = vst.msk [vmem:[#allocation2 + $0x1c0] sm:$0x1] %vm384_vm2, %v4594_v14 }
  0x41   : > { %416 = vst.msk [vmem:[#allocation2 + $0x1f0] sm:$0x1] %vm384_vm2, %v4594_v14 }
  0x42   : > { %417 = vst.msk [vmem:[#allocation2 + $0x200] sm:$0x1] %vm384_vm2, %v4594_v14 }
  0x43   : > { %670 = vmatmul.bf16.gmra.mxu0 %v4283_v10  ;;  %720 = vmatmul.bf16.gmra.mxu1 %v4293_v11  ;;  %418 = vst.msk [vmem:[#allocation2 + $0x210] sm:$0x1] %vm384_vm2, %v4594_v14 }
  0x44   : > { %419 = vst.msk [vmem:[#allocation2 + $0x220] sm:$0x1] %vm384_vm2, %v4594_v14 }
  0x45   : > { %420 = vst.msk [vmem:[#allocation2 + $0x230] sm:$0x1] %vm384_vm2, %v4594_v14 }
  0x46   : > { %421 = vst.msk [vmem:[#allocation2 + $0x240] sm:$0x1] %vm384_vm2, %v4594_v14 }
  0x47   : > { %422 = vst.msk [vmem:[#allocation2 + $0x250] sm:$0x1] %vm384_vm2, %v4594_v14 }
  0x48   : > { %423 = vst.msk [vmem:[#allocation2 + $0x260] sm:$0x1] %vm384_vm2, %v4594_v14 }
  0x49   : > { %426 = vst.msk [vmem:[#allocation2 + $0x19] sm:$0x1] %vm384_vm2, %v4594_v14 }
  0x4a   : > { %427 = vst.msk [vmem:[#allocation2 + $0x29] sm:$0x1] %vm384_vm2, %v4594_v14 }
  0x4b   : > { %428 = vst.msk [vmem:[#allocation2 + $0x39] sm:$0x1] %vm384_vm2, %v4594_v14 }
  0x4c   : > { %429 = vst.msk [vmem:[#allocation2 + $0x49] sm:$0x1] %vm384_vm2, %v4594_v14 }
  0x4d   : > { %430 = vst.msk [vmem:[#allocation2 + $0x59] sm:$0x1] %vm384_vm2, %v4594_v14 }
  0x4e   : > { %431 = vst.msk [vmem:[#allocation2 + $0x69] sm:$0x1] %vm384_vm2, %v4594_v14 }
  0x4f   : > { %432 = vst.msk [vmem:[#allocation2 + $0x79] sm:$0x1] %vm384_vm2, %v4594_v14 }
  0x50   : > { %433 = vst.msk [vmem:[#allocation2 + $0x89] sm:$0x1] %vm384_vm2, %v4594_v14 }
  0x51   : > { %436 = vst.msk [vmem:[#allocation2 + $0xb9] sm:$0x1] %vm384_vm2, %v4594_v14 }
  0x52   : > { %437 = vst.msk [vmem:[#allocation2 + $0xc9] sm:$0x1] %vm384_vm2, %v4594_v14 }
  0x53   : > { %675 = vmatmul.bf16.gmra.mxu0 %v4284_v12  ;;  %438 = vst.msk [vmem:[#allocation2 + $0xd9] sm:$0x1] %vm384_vm2, %v4594_v14 }
  0x54   : > { %439 = vst.msk [vmem:[#allocation2 + $0xe9] sm:$0x1] %vm384_vm2, %v4594_v14 }
  0x55   : > { %440 = vst.msk [vmem:[#allocation2 + $0xf9] sm:$0x1] %vm384_vm2, %v4594_v14 }
  0x56   : > { %441 = vst.msk [vmem:[#allocation2 + $0x109] sm:$0x1] %vm384_vm2, %v4594_v14 }
  0x57   : > { %442 = vst.msk [vmem:[#allocation2 + $0x119] sm:$0x1] %vm384_vm2, %v4594_v14 }
  0x58   : > { %443 = vst.msk [vmem:[#allocation2 + $0x129] sm:$0x1] %vm384_vm2, %v4594_v14 }
  0x59   : > { %446 = vst.msk [vmem:[#allocation2 + $0x159] sm:$0x1] %vm384_vm2, %v4594_v14 }
  0x5a   : > { %447 = vst.msk [vmem:[#allocation2 + $0x169] sm:$0x1] %vm384_vm2, %v4594_v14 }
  0x5b   : > { %448 = vst.msk [vmem:[#allocation2 + $0x179] sm:$0x1] %vm384_vm2, %v4594_v14 }
  0x5c   : > { %449 = vst.msk [vmem:[#allocation2 + $0x189] sm:$0x1] %vm384_vm2, %v4594_v14 }
  0x5d   : > { %450 = vst.msk [vmem:[#allocation2 + $0x199] sm:$0x1] %vm384_vm2, %v4594_v14 }
  0x5e   : > { %451 = vst.msk [vmem:[#allocation2 + $0x1a9] sm:$0x1] %vm384_vm2, %v4594_v14 }
  0x5f   : > { %452 = vst.msk [vmem:[#allocation2 + $0x1b9] sm:$0x1] %vm384_vm2, %v4594_v14 }
  0x60   : > { %453 = vst.msk [vmem:[#allocation2 + $0x1c9] sm:$0x1] %vm384_vm2, %v4594_v14 }
  0x61   : > { %456 = vst.msk [vmem:[#allocation2 + $0x1f9] sm:$0x1] %vm384_vm2, %v4594_v14 }
  0x62   : > { %457 = vst.msk [vmem:[#allocation2 + $0x209] sm:$0x1] %vm384_vm2, %v4594_v14 }
  0x63   : > { %680 = vmatmul.bf16.gmra.mxu0 %v4285_v13  ;;  %458 = vst.msk [vmem:[#allocation2 + $0x219] sm:$0x1] %vm384_vm2, %v4594_v14 }
  0x64   : > { %459 = vst.msk [vmem:[#allocation2 + $0x229] sm:$0x1] %vm384_vm2, %v4594_v14 }
  0x65   : > { %460 = vst.msk [vmem:[#allocation2 + $0x239] sm:$0x1] %vm384_vm2, %v4594_v14 }
  0x66   : > { %461 = vst.msk [vmem:[#allocation2 + $0x249] sm:$0x1] %vm384_vm2, %v4594_v14 }
  0x67   : > { %462 = vst.msk [vmem:[#allocation2 + $0x259] sm:$0x1] %vm384_vm2, %v4594_v14 }
  0x68   : > { %463 = vst.msk [vmem:[#allocation2 + $0x269] sm:$0x1] %vm384_vm2, %v4594_v14 }
  0x69   : > { %394 = vst.msk [vmem:[#allocation2 + $0x90] sm:$0x1] %vm384_vm2, %v4594_v14 }
  0x6a   : > { %395 = vst.msk [vmem:[#allocation2 + $0xa0] sm:$0x1] %vm384_vm2, %v4594_v14 }
  0x6b   : > { %404 = vst.msk [vmem:[#allocation2 + $0x130] sm:$0x1] %vm384_vm2, %v4594_v14 }
  0x6c   : > { %405 = vst.msk [vmem:[#allocation2 + $0x140] sm:$0x1] %vm384_vm2, %v4594_v14 }
  0x6d   : > { %414 = vst.msk [vmem:[#allocation2 + $0x1d0] sm:$0x1] %vm384_vm2, %v4594_v14 }
  0x6e   : > { %415 = vst.msk [vmem:[#allocation2 + $0x1e0] sm:$0x1] %vm384_vm2, %v4594_v14 }
  0x6f   : > { %424 = vst.msk [vmem:[#allocation2 + $0x270] sm:$0x1] %vm384_vm2, %v4594_v14 }
  0x70   : > { %434 = vst.msk [vmem:[#allocation2 + $0x99] sm:$0x1] %vm384_vm2, %v4594_v14  ;;  %v1983_v43 = vld [vmem:[#allocation2 + $0x90] sm:$0xff] }
  0x71   : > { %435 = vst.msk [vmem:[#allocation2 + $0xa9] sm:$0x1] %vm384_vm2, %v4594_v14  ;;  %v2015_v45 = vpack.c.bf16 %v1983_v43, %v1983_v43 }
  0x72   : > { %444 = vst.msk [vmem:[#allocation2 + $0x139] sm:$0x1] %vm384_vm2, %v4594_v14  ;;  %v1991_v1 = vld [vmem:[#allocation2 + $0x130] sm:$0xff] }
  0x73   : > { %685 = vmatmul.bf16.gmra.mxu0 %v4286_v15  ;;  %445 = vst.msk [vmem:[#allocation2 + $0x149] sm:$0x1] %vm384_vm2, %v4594_v14  ;;  %2086 = vrot.lane.b32.xlu0 %v2015_v45, %s4596_s25  ;;  %v2023_v10 = vpack.c.bf16 %v1991_v1, %v1991_v1 }
  0x74   : > { %455 = vst.msk [vmem:[#allocation2 + $0x1e9] sm:$0x1] %vm384_vm2, %v4594_v14 }
  0x78   : > { %v1213_v60 = vld [vmem:[#allocation2 + $0xa2] sm:$0xff] }
  0x79   : > { %v1245_v62 = vpack.c.bf16 %v1213_v60, %v1213_v60 }
  0x7b   : > { %1317 = vrot.lane.b32.xlu2 %v1245_v62, %s4596_s25  ;;  %1092 = vrot.lane.b32.xlu0 %v1020_v59, %s4595_s18 }
  0x83   : > { %690 = vmatmul.bf16.gmra.mxu0 %v4287_v20  ;;  %2326 = vrot.lane.b32.xlu2 %v2247_v9, %s4597_s26 }
  0x84   : > { %2102 = vrot.lane.b32.xlu0 %v2023_v10, %s4596_s25 }
  0x93   : > { %695 = vmatmul.bf16.gmra.mxu0 %v4288_v21 }
  0xa3   : > { %700 = vmatmul.bf16.gmra.mxu0 %v4289_v24  ;;  %v4371_v24 = vld [vmem:[%s6392_s4 + $0x88] sm:$0xff] }
  0xa4   : > { %3200 = vmatpush.bf16.msrb.mxu0 %v4371_v24  ;;  %4471 = vmatpush.bf16.msra.mxu3 %v4371_v24 }
  0xb0   : > { %v666_v25 = vpop.f32.mrf.mxu0  ;;  %v716_v26 = vpop.f32.mrf.mxu1 }
  0xb1   : > { %v750_v31 = vmul.f32 %v4912_v30, %v666_v25  ;;  %v770_v33 = vmul.f32 %v4912_v30, %v716_v26  ;;  %v1221_v26 = vld [vmem:[#allocation2 + $0x142] sm:$0xff] }
  0xb3   : > { %705 = vmatmul.bf16.gmra.mxu0 %v4290_v27  ;;  %v786_v38 = vadd.f32 %v4926_v32, %v750_v31  ;;  %v806_v40 = vadd.f32 %v4926_v32, %v770_v33  ;;  %v996_v27 = vld [vmem:[#allocation2 + $0x141] sm:$0xff] }
  0xb5   : > { %v818_v46 = vmax.f32 %v786_v38, 0.0  ;;  %v838_v48 = vmax.f32 %v806_v40, 0.0  ;;  %v1253_v38 = vpack.c.bf16 %v1221_v26, %v1221_v26 }
  0xb7   : > { %851 = vst.msk [vmem:[#allocation2 + $0x11] sm:$0xff] %vm365_vm1, %v818_v46  ;;  %1333 = vrot.lane.b32.xlu2 %v1253_v38, %s4596_s25 }
  0xb8   : > { %v668_v28 = vpop.f32.mrf.mxu0  ;;  %v718_v29 = vpop.f32.mrf.mxu1  ;;  %871 = vst.msk [vmem:[#allocation2 + $0x191] sm:$0xff] %vm365_vm1, %v838_v48 }
  0xb9   : > { %v751_v34 = vmul.f32 %v4912_v30, %v668_v28  ;;  %v771_v37 = vmul.f32 %v4912_v30, %v718_v29 }
  0xbb   : > { %v787_v42 = vadd.f32 %v4926_v32, %v751_v34  ;;  %v807_v44 = vadd.f32 %v4926_v32, %v771_v37 }
  0xbd   : > { %v819_v50 = vmax.f32 %v787_v42, 0.0  ;;  %v839_v54 = vmax.f32 %v807_v44, 0.0 }
  0xbe   : > { %v981_v2 = vld [vmem:[#allocation2 + $0x11] sm:$0xff] }
  0xbf   : > { %852 = vst.msk [vmem:[#allocation2 + $0x21] sm:$0xff] %vm365_vm1, %v819_v50  ;;  %v1430_v3 = vld [vmem:[#allocation2 + $0x10] sm:$0xff]  ;;  %v1013_v5 = vpack.c.bf16 %v981_v2, %v981_v2 }
  0xc0   : > { %v671_v35 = vpop.f32.mrf.mxu0  ;;  %v721_v36 = vpop.f32.mrf.mxu1  ;;  %872 = vst.msk [vmem:[#allocation2 + $0x1a1] sm:$0xff] %vm365_vm1, %v839_v54  ;;  %v1462_v6 = vpack.c.bf16 %v1430_v3, %v1430_v3  ;;  %v2219_v19 = vld [vmem:[#allocation2 + $0x191] sm:$0xff] }
  0xc1   : > { %v752_v39 = vmul.f32 %v4912_v30, %v671_v35  ;;  %v772_v41 = vmul.f32 %v4912_v30, %v721_v36  ;;  %1078 = vrot.lane.b32.xlu1 %v1013_v5, %s4595_s18  ;;  %1719 = vst.msk [vmem:[#allocation3 + $0x4] sm:$0xf] %vm947_vm3, %v1013_v5  ;;  %v2251_v33 = vpack.c.bf16 %v2219_v19, %v2219_v19  ;;  %v4370_v35 = vld [vmem:[%s6392_s4 + $0x80] sm:$0xff]  ;;  %v2443_v37 = vld [vmem:[#allocation2 + $0x192] sm:$0xff] }
  0xc2   : > { %949 = vst.msk [vmem:[#allocation3 + $0xc] sm:$0xf] %vm947_vm3, %v1462_v6  ;;  %v1450_v43 = vld [vmem:[#allocation2 + $0x190] sm:$0xff]  ;;  %3201 = vmatpush.bf16.msrb.mxu0 %v4370_v35  ;;  %4472 = vmatpush.bf16.msra.mxu3 %v4370_v35  ;;  %v5016_v45 = vpack.c.bf16 %v2443_v37, %v2443_v37 }
  0xc3   : > { %v788_v47 = vadd.f32 %v4926_v32, %v752_v39  ;;  %v808_v49 = vadd.f32 %v4926_v32, %v772_v41  ;;  %710 = vmatmul.bf16.gmra.mxu0 %v4291_v51  ;;  %v1028_v39 = vpack.c.bf16 %v996_v27, %v996_v27  ;;  %1739 = vst.msk [vmem:[#allocation3 + $0xf4] sm:$0xf] %vm947_vm3, %v2251_v33  ;;  %v1751_v54 = vld [vmem:[#allocation2 + $0x12] sm:$0xff] }
  0xc4   : > { %v5027_v53 = vpack.c.bf16 %v1450_v43, %v1450_v43  ;;  %2507 = vst.msk [vmem:[#allocation3 + $0xec] sm:$0xf] %vm947_vm3, %v5016_v45  ;;  %v1783_v59 = vpack.c.bf16 %v1751_v54, %v1751_v54  ;;  %2334 = vrot.lane.b32.xlu2 %v2251_v33, %s4597_s26  ;;  %v1995_v19 = vld [vmem:[#allocation2 + $0x190] sm:$0xff] }
  0xc5   : > { %v820_v56 = vmax.f32 %v788_v47, 0.0  ;;  %v840_v57 = vmax.f32 %v808_v49, 0.0  ;;  %1108 = vrot.lane.b32.xlu0 %v1028_v39, %s4595_s18 }
  0xc6   : > { %v1207_v8 = vld [vmem:[#allocation2 + $0x22] sm:$0xff]  ;;  %969 = vst.msk [vmem:[#allocation3 + $0xfc] sm:$0xf] %vm947_vm3, %v5027_v53 }
  0xc7   : > { %853 = vst.msk [vmem:[#allocation2 + $0x31] sm:$0xff] %vm365_vm1, %v820_v56  ;;  %v4977_v11 = vpack.c.bf16 %v1207_v8, %v1207_v8  ;;  %v1772_v14 = vld [vmem:[#allocation2 + $0x1a2] sm:$0xff] }
  0xc8   : > { %v673_v52 = vpop.f32.mrf.mxu0  ;;  %873 = vst.msk [vmem:[#allocation2 + $0x1b1] sm:$0xff] %vm365_vm1, %v840_v57  ;;  %v1676_v17 = vld [vmem:[#allocation2 + $0x1a1] sm:$0xff]  ;;  %v4986_v22 = vpack.c.bf16 %v1772_v14, %v1772_v14 }
  0xc9   : > { %v753_v55 = vmul.f32 %v4912_v30, %v673_v52  ;;  %2488 = vst.msk [vmem:[#allocation3 + $0x8] sm:$0xf] %vm947_vm3, %v4977_v11  ;;  %v2200_v21 = vld [vmem:[#allocation2 + $0x21] sm:$0xff]  ;;  %v1708_v31 = vpack.c.bf16 %v1676_v17, %v1676_v17  ;;  %1526 = vrot.lane.b32.xlu1 %v1462_v6, %s4597_s26 }
  0xca   : > { %v1976_v28 = vld [vmem:[#allocation2 + $0x20] sm:$0xff]  ;;  %v5001_v34 = vpack.c.bf16 %v2200_v21, %v2200_v21  ;;  %2508 = vst.msk [vmem:[#allocation3 + $0xf8] sm:$0xf] %vm947_vm3, %v4986_v22 }
  0xcb   : > { %v789_v58 = vadd.f32 %v4926_v32, %v753_v55  ;;  %v5010_v40 = vpack.c.bf16 %v1976_v28, %v1976_v28  ;;  %v1451_v41 = vld [vmem:[#allocation2 + $0x1a0] sm:$0xff]  ;;  %1740 = vst.msk [vmem:[#allocation3 + $0x100] sm:$0xf] %vm947_vm3, %v1708_v31 }
  0xcc   : > { %1720 = vst.msk [vmem:[#allocation3 + $0x10] sm:$0xf] %vm947_vm3, %v5001_v34  ;;  %v5021_v49 = vpack.c.bf16 %v1451_v41, %v1451_v41  ;;  %2296 = vrot.lane.b32.xlu2 %v5001_v34, %s4597_s26  ;;  %v1996_v41 = vld [vmem:[#allocation2 + $0x1a0] sm:$0xff] }
  0xcd   : > { %v821_v61 = vmax.f32 %v789_v58, 0.0  ;;  %950 = vst.msk [vmem:[#allocation3 + $0x18] sm:$0xf] %vm947_vm3, %v5010_v40  ;;  %1847 = vrot.lane.b32.xlu0 %v1783_v59, %s4595_s18 }
  0xce   : > { %v2425_v12 = vld [vmem:[#allocation2 + $0x32] sm:$0xff]  ;;  %970 = vst.msk [vmem:[#allocation3 + $0x108] sm:$0xf] %vm947_vm3, %v5021_v49 }
  0xcf   : > { %854 = vst.msk [vmem:[#allocation2 + $0x41] sm:$0xff] %vm365_vm1, %v821_v61  ;;  %v4981_v15 = vpack.c.bf16 %v2425_v12, %v2425_v12  ;;  %v2445_v16 = vld [vmem:[#allocation2 + $0x1b2] sm:$0xff] }
  0xd0   : > { %v676_v0 = vpop.f32.mrf.mxu0  ;;  %v2477_v18 = vpack.c.bf16 %v2445_v16, %v2445_v16  ;;  %v3981_v47 = vld [vmem:[#allocation3 + $0x8] sm:$0xf]  ;;  %v1977_v61 = vld [vmem:[#allocation2 + $0x30] sm:$0xff] }
  0xd1   : > { %v754_v4 = vmul.f32 %v4912_v30, %v676_v0  ;;  %2489 = vst.msk [vmem:[#allocation3 + $0x14] sm:$0xf] %vm947_vm3, %v4981_v15  ;;  %v4101_v56 = vld [vmem:[#allocation3 + $0xf8] sm:$0xf]  ;;  %2072 = vrot.lane.b32.xlu1 %v5010_v40, %s4596_s25  ;;  %v2009_v1 = vpack.c.bf16 %v1977_v61, %v1977_v61 }
  0xd2   : > { %2509 = vst.msk [vmem:[#allocation3 + $0x104] sm:$0xf] %vm947_vm3, %v2477_v18  ;;  %v2201_v62 = vld [vmem:[#allocation2 + $0x31] sm:$0xff] }
  0xd3   : > { %v790_v7 = vadd.f32 %v4926_v32, %v754_v4  ;;  %v5043_v2 = vpack.c.bf16 %v2201_v62, %v2201_v62  ;;  %951 = vst.msk [vmem:[#allocation3 + $0x24] sm:$0xf] %vm947_vm3, %v2009_v1 }
  0xd4   : > { %1528 = vrot.lane.b32.xlu2 %v5010_v40, %s4597_s26 }
  0xd5   : > { %v822_v13 = vmax.f32 %v790_v7, 0.0  ;;  %1721 = vst.msk [vmem:[#allocation3 + $0x1c] sm:$0xf] %vm947_vm3, %v5043_v2  ;;  %1303 = vrot.lane.b32.xlu0 %v1783_v59, %s4596_s25 }
  0xd6   : > { %v2426_v20 = vld [vmem:[#allocation2 + $0x42] sm:$0xff] }
  0xd7   : > { %855 = vst.msk [vmem:[#allocation2 + $0x51] sm:$0xff] %vm365_vm1, %v822_v13  ;;  %v4992_v23 = vpack.c.bf16 %v2426_v20, %v2426_v20  ;;  %v1978_v63 = vld [vmem:[#allocation2 + $0x40] sm:$0xff] }
  0xd8   : > { %v678_v25 = vpop.f32.mrf.mxu0  ;;  %v4308_v48 = vld [vmem:[#allocation3 + $0x10] sm:$0xf0]  ;;  %v2202_v3 = vld [vmem:[#allocation2 + $0x41] sm:$0xff]  ;;  %v5052_v7 = vpack.c.bf16 %v1978_v63, %v1978_v63 }
  0xd9   : > { %v755_v29 = vmul.f32 %v4912_v30, %v678_v25  ;;  %2490 = vst.msk [vmem:[#allocation3 + $0x20] sm:$0xf] %vm947_vm3, %v4992_v23  ;;  %v3982_v50 = vor.u32 %v4308_v48, %v3981_v47  ;;  %v4338_v51 = vld [vmem:[#allocation3 + $0x100] sm:$0xf0]  ;;  %v5048_v5 = vpack.c.bf16 %v2202_v3, %v2202_v3  ;;  %1889 = vrot.lane.b32.xlu1 %v4986_v22, %s4595_s18 }
  0xda   : > { %v4102_v57 = vor.u32 %v4338_v51, %v4101_v56  ;;  %952 = vst.msk [vmem:[#allocation3 + $0x30] sm:$0xf] %vm947_vm3, %v5052_v7  ;;  %v2027_v22 = vpack.c.bf16 %v1995_v19, %v1995_v19  ;;  %v2028_v47 = vpack.c.bf16 %v1996_v41, %v1996_v41 }
  0xdb   : > { %v791_v36 = vadd.f32 %v4926_v32, %v755_v29  ;;  %4235 = vmatmul.msk.bf16.vlgmr.msrb.gmra.mxu0 %vm365_vm1, %v3982_v50  ;;  %1722 = vst.msk [vmem:[#allocation3 + $0x28] sm:$0xf] %vm947_vm3, %v5048_v5  ;;  %v1771_v29 = vld [vmem:[#allocation2 + $0x192] sm:$0xff] }
  0xdc   : > { %4245 = vmatmul.msk.bf16.vlgmr.msra.gmra.mxu3 %vm365_vm1, %v4102_v57  ;;  %v1803_v35 = vpack.c.bf16 %v1771_v29, %v1771_v29  ;;  %1305 = vrot.lane.b32.xlu2 %v4977_v11, %s4596_s25 }
  0xdd   : > { %v823_v42 = vmax.f32 %v791_v36, 0.0  ;;  %2110 = vrot.lane.b32.xlu0 %v2027_v22, %s4596_s25 }
  0xde   : > { %v2427_v44 = vld [vmem:[#allocation2 + $0x52] sm:$0xff] }
  0xdf   : > { %v5018_v46 = vpack.c.bf16 %v2427_v44, %v2427_v44  ;;  %856 = vst.msk [vmem:[#allocation2 + $0x61] sm:$0xff] %vm365_vm1, %v823_v42  ;;  %v2431_v44 = vld [vmem:[#allocation2 + $0x92] sm:$0xff] }
  0xe0   : > { %v681_v52 = vpop.f32.mrf.mxu0  ;;  %v3993_v14 = vld [vmem:[#allocation3 + $0x20] sm:$0xf]  ;;  %v2463_v50 = vpack.c.bf16 %v2431_v44, %v2431_v44  ;;  %v2203_v54 = vld [vmem:[#allocation2 + $0x51] sm:$0xff] }
  0xe1   : > { %2491 = vst.msk [vmem:[#allocation3 + $0x2c] sm:$0xf] %vm947_vm3, %v5018_v46  ;;  %v756_v55 = vmul.f32 %v4912_v30, %v681_v52  ;;  %2074 = vrot.lane.b32.xlu1 %v2009_v1, %s4596_s25  ;;  %v5109_v56 = vpack.c.bf16 %v2203_v54, %v2203_v54 }
  0xe2   : > { %2495 = vst.msk [vmem:[#allocation3 + $0x5c] sm:$0xf] %vm947_vm3, %v2463_v50 }
  0xe3   : > { %v792_v58 = vadd.f32 %v4926_v32, %v756_v55  ;;  %1723 = vst.msk [vmem:[#allocation3 + $0x34] sm:$0xf] %vm947_vm3, %v5109_v56 }
  0xe4   : > { %2112 = vrot.lane.b32.xlu2 %v2028_v47, %s4596_s25 }
  0xe5   : > { %v824_v60 = vmax.f32 %v792_v58, 0.0  ;;  %1887 = vrot.lane.b32.xlu0 %v1803_v35, %s4595_s18  ;;  %v891_v35 = vld [vmem:[#allocation2 + $0xa0] sm:$0xff] }
  0xe6   : > { %v2428_v0 = vld [vmem:[#allocation2 + $0x62] sm:$0xff] }
  0xe7   : > { %v5045_v4 = vpack.c.bf16 %v2428_v0, %v2428_v0  ;;  %857 = vst.msk [vmem:[#allocation2 + $0x71] sm:$0xff] %vm365_vm1, %v824_v60  ;;  %v1980_v58 = vld [vmem:[#allocation2 + $0x60] sm:$0xff] }
  0xe8   : > { %v683_v6 = vpop.f32.mrf.mxu0  ;;  %v4311_v16 = vld [vmem:[#allocation3 + $0x28] sm:$0xf0]  ;;  %v2204_v59 = vld [vmem:[#allocation2 + $0x61] sm:$0xff] }
  0xe9   : > { %2492 = vst.msk [vmem:[#allocation3 + $0x38] sm:$0xf] %vm947_vm3, %v5045_v4  ;;  %v757_v8 = vmul.f32 %v4912_v30, %v683_v6  ;;  %v3994_v17 = vor.u32 %v4311_v16, %v3993_v14  ;;  %1082 = vrot.lane.b32.xlu1 %v5043_v2, %s4595_s18  ;;  %v4294_v0 = vld [vmem:[%s4731_s21 + $0x60] sm:$0xff]  ;;  %v4317_v3 = vld [vmem:[#allocation3 + $0x58] sm:$0xf0]  ;;  %v5121_v6 = vpack.c.bf16 %v2204_v59, %v2204_v59  ;;  %v1077_v14 = vpop.permute.xlu0 %1076 }
  0xea   : > { %725 = vmatmul.bf16.vlgmr.msra.gmra.mxu2 %v4294_v0  ;;  %v899_v59 = vld [vmem:[#allocation2 + $0x140] sm:$0xff]  ;;  %v4360_v0 = vld [vmem:[%s6392_s4 + $0x30] sm:$0xff] }
  0xeb   : > { %v793_v9 = vadd.f32 %v4926_v32, %v757_v8  ;;  %4236 = vmatmul.msk.bf16.gmra.mxu0 %vm365_vm1, %v3994_v17  ;;  %1724 = vst.msk [vmem:[#allocation3 + $0x40] sm:$0xf] %vm947_vm3, %v5121_v6  ;;  %v5144_v17 = vpop.permute.xlu2 %1301 }
  0xec   : > { %2298 = vrot.lane.b32.xlu2 %v5043_v2, %s4597_s26 }
  0xed   : > { %v825_v10 = vmax.f32 %v793_v9, 0.0  ;;  %1849 = vrot.lane.b32.xlu0 %v4977_v11, %s4595_s18  ;;  %v1979_v11 = vld [vmem:[#allocation2 + $0x50] sm:$0xff]  ;;  %v5127_v9 = vpack.c.bf16 %v1980_v58, %v1980_v58 }
  0xee   : > { %v2429_v12 = vld [vmem:[#allocation2 + $0x72] sm:$0xff]  ;;  %v5116_v61 = vpack.c.bf16 %v1979_v11, %v1979_v11 }
  0xef   : > { %v5067_v13 = vpack.c.bf16 %v2429_v12, %v2429_v12  ;;  %858 = vst.msk [vmem:[#allocation2 + $0x81] sm:$0xff] %vm365_vm1, %v825_v10  ;;  %v883_v10 = vld [vmem:[#allocation2] sm:$0xff]  ;;  %v2205_v44 = vld [vmem:[#allocation2 + $0x71] sm:$0xff] }
  0xf0   : > { %v686_v18 = vpop.f32.mrf.mxu0  ;;  %v4005_v36 = vld [vmem:[#allocation3 + $0x38] sm:$0xf]  ;;  %953 = vst.msk [vmem:[#allocation3 + $0x3c] sm:$0xf] %vm947_vm3, %v5116_v61  ;;  %v1981_v47 = vld [vmem:[#allocation2 + $0x70] sm:$0xff] }
  0xf1   : > { %2493 = vst.msk [vmem:[#allocation3 + $0x44] sm:$0xf] %vm947_vm3, %v5067_v13  ;;  %v758_v20 = vmul.f32 %v4912_v30, %v686_v18  ;;  %1530 = vrot.lane.b32.xlu1 %v2009_v1, %s4597_s26  ;;  %v5198_v50 = vpack.c.bf16 %v1981_v47, %v1981_v47 }
  0xf2   : > { %954 = vst.msk [vmem:[#allocation3 + $0x48] sm:$0xf] %vm947_vm3, %v5127_v9 }
  0xf3   : > { %v794_v21 = vadd.f32 %v4926_v32, %v758_v20  ;;  %955 = vst.msk [vmem:[#allocation3 + $0x54] sm:$0xf] %vm947_vm3, %v5198_v50 }
  0xf4   : > { %2076 = vrot.lane.b32.xlu2 %v5052_v7, %s4596_s25 }
  0xf5   : > { %v826_v24 = vmax.f32 %v794_v21, 0.0  ;;  %1080 = vrot.lane.b32.xlu0 %v5001_v34, %s4595_s18  ;;  %v915_v34 = vpack.c.bf16 %v883_v10, %v883_v10 }
  0xf6   : > { %v2430_v25 = vld [vmem:[#allocation2 + $0x82] sm:$0xff] }
  0xf7   : > { %v5079_v26 = vpack.c.bf16 %v2430_v25, %v2430_v25  ;;  %859 = vst.msk [vmem:[#allocation2 + $0xb1] sm:$0xff] %vm365_vm1, %v826_v24 }
  0xf8   : > { %v688_v27 = vpop.f32.mrf.mxu0  ;;  %v4314_v37 = vld [vmem:[#allocation3 + $0x40] sm:$0xf0]  ;;  %948 = vst.msk [vmem:[#allocation3] sm:$0xf] %vm947_vm3, %v915_v34 }
  0xf9   : > { %2494 = vst.msk [vmem:[#allocation3 + $0x50] sm:$0xf] %vm947_vm3, %v5079_v26  ;;  %v759_v28 = vmul.f32 %v4912_v30, %v688_v27  ;;  %v4006_v38 = vor.u32 %v4314_v37, %v4005_v36  ;;  %1853 = vrot.lane.b32.xlu1 %v4992_v23, %s4595_s18  ;;  %v4295_v27 = vld [vmem:[%s4731_s21 + $0x68] sm:$0xff] }
  0xfa   : > { %1173 = vst.msk [vmem:[#allocation3] sm:$0xf] %vm1172_vm4, %v1077_v14  ;;  %730 = vmatmul.bf16.gmra.mxu2 %v4295_v27  ;;  %v4297_v27 = vld [vmem:[%s4731_s21 + $0x78] sm:$0xff] }
  0xfb   : > { %v795_v31 = vadd.f32 %v4926_v32, %v759_v28  ;;  %4237 = vmatmul.msk.bf16.gmra.mxu0 %vm365_vm1, %v4006_v38  ;;  %v923_v38 = vpack.c.bf16 %v891_v35, %v891_v35  ;;  %1398 = vst.msk [vmem:[#allocation3] sm:$0xf] %vm1397_vm5, %v5144_v17  ;;  %v4356_v35 = vld [vmem:[%s6392_s4 + $0x10] sm:$0xff] }
  0xfc   : > { %1532 = vrot.lane.b32.xlu2 %v5052_v7, %s4597_s26 }
  0xfd   : > { %v827_v33 = vmax.f32 %v795_v31, 0.0  ;;  %1851 = vrot.lane.b32.xlu0 %v4981_v15, %s4595_s18  ;;  %v5165_v31 = vpop.permute.xlu2 %2310  ;;  %956 = vst.msk [vmem:[#allocation3 + $0x60] sm:$0xf] %vm947_vm3, %v923_v38 }
  0xff   : > { %860 = vst.msk [vmem:[#allocation2 + $0xc1] sm:$0xff] %vm365_vm1, %v827_v33 }
 0x100   : > { %v691_v39 = vpop.f32.mrf.mxu0  ;;  %v4017_v1 = vld [vmem:[#allocation3 + $0x50] sm:$0xf] }
 0x101   : > { %v760_v40 = vmul.f32 %v4912_v30, %v691_v39  ;;  %v4018_v8 = vor.u32 %v4317_v3, %v4017_v1  ;;  %2300 = vrot.lane.b32.xlu1 %v5048_v5, %s4597_s26  ;;  %v4359_v1 = vld [vmem:[%s6392_s4 + $0x28] sm:$0xff] }
 0x103   : > { %v796_v42 = vadd.f32 %v4926_v32, %v760_v40 }
 0x104   : > { %1309 = vrot.lane.b32.xlu2 %v4992_v23, %s4596_s25  ;;  %v5191_v23 = vpack.c.bf16 %v2205_v44, %v2205_v44 }
 0x105   : > { %v828_v43 = vmax.f32 %v796_v42, 0.0  ;;  %1307 = vrot.lane.b32.xlu0 %v4981_v15, %s4596_s25  ;;  %v5183_v41 = vpop.permute.xlu2 %1317 }
 0x106   : > { %v2432_v48 = vld [vmem:[#allocation2 + $0xc2] sm:$0xff]  ;;  %1725 = vst.msk [vmem:[#allocation3 + $0x4c] sm:$0xf] %vm947_vm3, %v5191_v23 }
 0x107   : > { %v5099_v51 = vpack.c.bf16 %v2432_v48, %v2432_v48  ;;  %861 = vst.msk [vmem:[#allocation2 + $0xd1] sm:$0xff] %vm365_vm1, %v828_v43  ;;  %v4361_v43 = vld [vmem:[%s6392_s4 + $0x38] sm:$0xff]  ;;  %v2206_v48 = vld [vmem:[#allocation2 + $0x81] sm:$0xff] }
 0x108   : > { %v693_v52 = vpop.f32.mrf.mxu0  ;;  %3016 = vmatpush.bf16.msrb.mxu1 %v4361_v43 }
 0x109   : > { %2496 = vst.msk [vmem:[#allocation3 + $0x68] sm:$0xf] %vm947_vm3, %v5099_v51  ;;  %v761_v55 = vmul.f32 %v4912_v30, %v693_v52  ;;  %1086 = vrot.lane.b32.xlu1 %v5109_v56, %s4595_s18  ;;  %v5200_v52 = vpack.c.bf16 %v2206_v48, %v2206_v48  ;;  %v4354_v48 = vld [vmem:[%s6392_s4] sm:$0xff] }
 0x10b   : > { %v797_v57 = vadd.f32 %v4926_v32, %v761_v55  ;;  %4238 = vmatmul.msk.bf16.gmra.mxu0 %vm365_vm1, %v4018_v8  ;;  %v4296_v55 = vld [vmem:[%s4731_s21 + $0x70] sm:$0xff]  ;;  %1726 = vst.msk [vmem:[#allocation3 + $0x58] sm:$0xf] %vm947_vm3, %v5200_v52 }
 0x10c   : > { %2302 = vrot.lane.b32.xlu2 %v5109_v56, %s4597_s26  ;;  %735 = vmatmul.bf16.gmra.mxu2 %v4296_v55 }
 0x10d   : > { %v829_v63 = vmax.f32 %v797_v57, 0.0  ;;  %1084 = vrot.lane.b32.xlu0 %v5048_v5, %s4595_s18  ;;  %v5215_v56 = vpop.permute.xlu2 %2326  ;;  %3017 = vmatpush.bf16.msrb.mxu1 %v4360_v0  ;;  %v4367_v0 = vld [vmem:[%s6392_s4 + $0x68] sm:$0xff] }
 0x10e   : > { %v2433_v60 = vld [vmem:[#allocation2 + $0xd2] sm:$0xff] }
 0x10f   : > { %v5118_v62 = vpack.c.bf16 %v2433_v60, %v2433_v60  ;;  %862 = vst.msk [vmem:[#allocation2 + $0xe1] sm:$0xff] %vm365_vm1, %v829_v63  ;;  %v931_v63 = vpack.c.bf16 %v899_v59, %v899_v59  ;;  %v1438_v59 = vld [vmem:[#allocation2 + $0xb0] sm:$0xff] }
 0x110   : > { %v696_v12 = vpop.f32.mrf.mxu0  ;;  %v4029_v28 = vld [vmem:[#allocation3 + $0x68] sm:$0xf] }
 0x111   : > { %2497 = vst.msk [vmem:[#allocation3 + $0x74] sm:$0xf] %vm947_vm3, %v5118_v62  ;;  %v762_v2 = vmul.f32 %v4912_v30, %v696_v12  ;;  %1534 = vrot.lane.b32.xlu1 %v5116_v61, %s4597_s26  ;;  %3018 = vmatpush.bf16.msrb.mxu1 %v4359_v1  ;;  %v5303_v1 = vpack.c.bf16 %v1438_v59, %v1438_v59 }
 0x112   : > { %964 = vst.msk [vmem:[#allocation3 + $0xc0] sm:$0xf] %vm947_vm3, %v931_v63 }
 0x113   : > { %v798_v16 = vadd.f32 %v4926_v32, %v762_v2  ;;  %v4358_v2 = vld [vmem:[%s6392_s4 + $0x20] sm:$0xff]  ;;  %957 = vst.msk [vmem:[#allocation3 + $0x6c] sm:$0xf] %vm947_vm3, %v5303_v1 }
 0x114   : > { %2080 = vrot.lane.b32.xlu2 %v5127_v9, %s4596_s25 }
 0x115   : > { %v830_v18 = vmax.f32 %v798_v16, 0.0  ;;  %2078 = vrot.lane.b32.xlu0 %v5116_v61, %s4596_s25  ;;  %v5238_v14 = vpop.permute.xlu2 %1333  ;;  %v5240_v16 = vpop.permute.xlu0 %2086  ;;  %3019 = vmatpush.bf16.msrb.mxu1 %v4358_v2 }
 0x116   : > { %v2434_v19 = vld [vmem:[#allocation2 + $0xe2] sm:$0xff] }
 0x117   : > { %863 = vst.msk [vmem:[#allocation2 + $0xf1] sm:$0xff] %vm365_vm1, %v830_v18  ;;  %v5152_v20 = vpack.c.bf16 %v2434_v19, %v2434_v19  ;;  %v4357_v19 = vld [vmem:[%s6392_s4 + $0x18] sm:$0xff] }
 0x118   : > { %v698_v21 = vpop.f32.mrf.mxu0  ;;  %v4320_v29 = vld [vmem:[#allocation3 + $0x70] sm:$0xf0] }
 0x119   : > { %v763_v22 = vmul.f32 %v4912_v30, %v698_v21  ;;  %2498 = vst.msk [vmem:[#allocation3 + $0x80] sm:$0xf] %vm947_vm3, %v5152_v20  ;;  %v4030_v36 = vor.u32 %v4320_v29, %v4029_v28  ;;  %1857 = vrot.lane.b32.xlu1 %v5045_v4, %s4595_s18  ;;  %3020 = vmatpush.bf16.msrb.mxu1 %v4357_v19 }
 0x11b   : > { %v799_v24 = vadd.f32 %v4926_v32, %v763_v22  ;;  %4239 = vmatmul.msk.bf16.gmra.mxu0 %vm365_vm1, %v4030_v36 }
 0x11c   : > { %1536 = vrot.lane.b32.xlu2 %v5127_v9, %s4597_s26  ;;  %740 = vmatmul.bf16.gmra.mxu2 %v4297_v27  ;;  %v4355_v9 = vld [vmem:[%s6392_s4 + $0x8] sm:$0xff] }
 0x11d   : > { %v831_v25 = vmax.f32 %v799_v24, 0.0  ;;  %1855 = vrot.lane.b32.xlu0 %v5018_v46, %s4595_s18  ;;  %v1093_v36 = vpop.permute.xlu0 %1092  ;;  %3021 = vmatpush.bf16.msrb.mxu1 %v4356_v35  ;;  %v2209_v35 = vld [vmem:[#allocation2 + $0xd1] sm:$0xff] }
 0x11e   : > { %v2435_v33 = vld [vmem:[#allocation2 + $0xf2] sm:$0xff]  ;;  %v5261_v38 = vpop.permute.xlu2 %2334  ;;  %1181 = vst.msk [vmem:[#allocation3 + $0x60] sm:$0xf] %vm1172_vm4, %v1093_v36 }
 0x11f   : > { %v5167_v37 = vpack.c.bf16 %v2435_v33, %v2435_v33  ;;  %864 = vst.msk [vmem:[#allocation2 + $0x101] sm:$0xff] %vm365_vm1, %v831_v25 }
 0x120   : > { %v701_v15 = vpop.f32.mrf.mxu0  ;;  %v4041_v57 = vld [vmem:[#allocation3 + $0x80] sm:$0xf]  ;;  %1406 = vst.msk [vmem:[#allocation3 + $0x60] sm:$0xf] %vm1397_vm5, %v5183_v41 }
 0x121   : > { %2499 = vst.msk [vmem:[#allocation3 + $0x8c] sm:$0xf] %vm947_vm3, %v5167_v37  ;;  %v764_v39 = vmul.f32 %v4912_v30, %v701_v15  ;;  %2304 = vrot.lane.b32.xlu1 %v5121_v6, %s4597_s26  ;;  %3022 = vmatpush.bf16.msrb.mxu1 %v4355_v9  ;;  %v5350_v9 = vpack.c.bf16 %v2209_v35, %v2209_v35 }
 0x123   : > { %v800_v42 = vadd.f32 %v4926_v32, %v764_v39  ;;  %v1984_v39 = vld [vmem:[#allocation2 + $0xc0] sm:$0xff]  ;;  %1729 = vst.msk [vmem:[#allocation3 + $0x7c] sm:$0xf] %vm947_vm3, %v5350_v9 }
 0x124   : > { %v5278_v41 = vpack.c.bf16 %v1984_v39, %v1984_v39  ;;  %1313 = vrot.lane.b32.xlu2 %v5045_v4, %s4596_s25  ;;  %v4368_v4 = vld [vmem:[%s6392_s4 + $0x70] sm:$0xff] }
 0x125   : > { %v832_v5 = vmax.f32 %v800_v42, 0.0  ;;  %1311 = vrot.lane.b32.xlu0 %v5018_v46, %s4596_s25  ;;  %v2439_v42 = vld [vmem:[#allocation2 + $0x132] sm:$0xff]  ;;  %3023 = vmatpush.bf16.msrb.mxu1 %v4354_v48 }
 0x126   : > { %v2436_v7 = vld [vmem:[#allocation2 + $0x102] sm:$0xff]  ;;  %v2471_v44 = vpack.c.bf16 %v2439_v42, %v2439_v42  ;;  %958 = vst.msk [vmem:[#allocation3 + $0x78] sm:$0xf] %vm947_vm3, %v5278_v41  ;;  %v2297_v55 = vpop.permute.xlu2 %2296 }
 0x127   : > { %v5181_v40 = vpack.c.bf16 %v2436_v7, %v2436_v7  ;;  %865 = vst.msk [vmem:[#allocation2 + $0x111] sm:$0xff] %vm365_vm1, %v832_v5  ;;  %v4369_v7 = vld [vmem:[%s6392_s4 + $0x78] sm:$0xff] }
 0x128   : > { %v703_v54 = vpop.f32.mrf.mxu0  ;;  %v4323_v11 = vld [vmem:[#allocation3 + $0x88] sm:$0xf0]  ;;  %3105 = vmatpush.bf16.msrb.mxu2 %v4369_v7  ;;  %2503 = vst.msk [vmem:[#allocation3 + $0xbc] sm:$0xf] %vm947_vm3, %v2471_v44  ;;  %v1759_v44 = vld [vmem:[#allocation2 + $0xb2] sm:$0xff] }
 0x129   : > { %2500 = vst.msk [vmem:[#allocation3 + $0x98] sm:$0xf] %vm947_vm3, %v5181_v40  ;;  %v765_v58 = vmul.f32 %v4912_v30, %v703_v54  ;;  %v4042_v60 = vor.u32 %v4323_v11, %v4041_v57  ;;  %1090 = vrot.lane.b32.xlu1 %v5191_v23, %s4595_s18  ;;  %v5291_v54 = vpop.permute.xlu0 %2102  ;;  %v1791_v48 = vpack.c.bf16 %v1759_v44, %v1759_v44 }
 0x12b   : > { %v801_v61 = vadd.f32 %v4926_v32, %v765_v58  ;;  %4240 = vmatmul.msk.bf16.gmra.mxu0 %vm365_vm1, %v4042_v60  ;;  %v989_v58 = vld [vmem:[#allocation2 + $0xb1] sm:$0xff] }
 0x12c   : > { %3106 = vmatpush.bf16.msrb.mxu2 %v4368_v4  ;;  %2306 = vrot.lane.b32.xlu2 %v5191_v23, %s4597_s26  ;;  %v4366_v23 = vld [vmem:[%s6392_s4 + $0x60] sm:$0xff] }
 0x12d   : > { %v833_v3 = vmax.f32 %v801_v61, 0.0  ;;  %1088 = vrot.lane.b32.xlu0 %v5121_v6, %s4595_s18  ;;  %v1021_v61 = vpack.c.bf16 %v989_v58, %v989_v58 }
 0x12e   : > { %v2437_v8 = vld [vmem:[#allocation2 + $0x112] sm:$0xff] }
 0x12f   : > { %v5225_v10 = vpack.c.bf16 %v2437_v8, %v2437_v8  ;;  %866 = vst.msk [vmem:[#allocation2 + $0x121] sm:$0xff] %vm365_vm1, %v833_v3  ;;  %v990_v3 = vld [vmem:[#allocation2 + $0xc1] sm:$0xff] }
 0x130   : > { %v706_v12 = vpop.f32.mrf.mxu0  ;;  %v4053_v28 = vld [vmem:[#allocation3 + $0x98] sm:$0xf]  ;;  %3107 = vmatpush.bf16.msrb.mxu2 %v4367_v0  ;;  %1727 = vst.msk [vmem:[#allocation3 + $0x64] sm:$0xf] %vm947_vm3, %v1021_v61  ;;  %v992_v0 = vld [vmem:[#allocation2 + $0xe1] sm:$0xff] }
 0x131   : > { %2501 = vst.msk [vmem:[#allocation3 + $0xa4] sm:$0xf] %vm947_vm3, %v5225_v10  ;;  %v766_v34 = vmul.f32 %v4912_v30, %v706_v12  ;;  %1538 = vrot.lane.b32.xlu1 %v5198_v50, %s4597_s26  ;;  %v4329_v12 = vld [vmem:[#allocation3 + $0xb8] sm:$0xf0] }
 0x133   : > { %v802_v18 = vadd.f32 %v4926_v32, %v766_v34  ;;  %v1079_v43 = vpop.permute.xlu1 %1078 }
 0x134   : > { %1174 = vst.msk [vmem:[#allocation3 + $0xc] sm:$0xf] %vm1172_vm4, %v1079_v43  ;;  %3108 = vmatpush.bf16.msrb.mxu2 %v4366_v23 }
 0x135   : > { %v834_v21 = vmax.f32 %v802_v18, 0.0  ;;  %2082 = vrot.lane.b32.xlu0 %v5198_v50, %s4596_s25  ;;  %v5312_v18 = vpack.c.bf16 %v990_v3, %v990_v3  ;;  %v4335_v3 = vld [vmem:[#allocation3 + $0xe8] sm:$0xf0] }
 0x136   : > { %v2438_v22 = vld [vmem:[#allocation2 + $0x122] sm:$0xff] }
 0x137   : > { %v2470_v24 = vpack.c.bf16 %v2438_v22, %v2438_v22  ;;  %867 = vst.msk [vmem:[#allocation2 + $0x151] sm:$0xff] %vm365_vm1, %v834_v21  ;;  %v1109_v19 = vpop.permute.xlu0 %1108  ;;  %v1529_v21 = vpop.permute.xlu2 %1528 }
 0x138   : > { %v708_v25 = vpop.f32.mrf.mxu0  ;;  %v4326_v29 = vld [vmem:[#allocation3 + $0xa0] sm:$0xf0]  ;;  %1189 = vst.msk [vmem:[#allocation3 + $0xc0] sm:$0xf] %vm1172_vm4, %v1109_v19  ;;  %v2211_v19 = vld [vmem:[#allocation2 + $0xf1] sm:$0xff] }
 0x139   : > { %2502 = vst.msk [vmem:[#allocation3 + $0xb0] sm:$0xf] %vm947_vm3, %v2470_v24  ;;  %v767_v17 = vmul.f32 %v4912_v30, %v708_v25  ;;  %v4054_v33 = vor.u32 %v4326_v29, %v4053_v28  ;;  %1861 = vrot.lane.b32.xlu1 %v5079_v26, %s4595_s18  ;;  %v4365_v24 = vld [vmem:[%s6392_s4 + $0x58] sm:$0xff]  ;;  %v4364_v29 = vld [vmem:[%s6392_s4 + $0x50] sm:$0xff]  ;;  %v5403_v23 = vpack.c.bf16 %v2211_v19, %v2211_v19 }
 0x13a   : > { %1414 = vst.msk [vmem:[#allocation3 + $0xc0] sm:$0xf] %vm1397_vm5, %v5238_v14  ;;  %3109 = vmatpush.bf16.msrb.mxu2 %v4365_v24 }
 0x13b   : > { %v803_v15 = vadd.f32 %v4926_v32, %v767_v17  ;;  %4241 = vmatmul.msk.bf16.gmra.mxu0 %vm365_vm1, %v4054_v33  ;;  %v1527_v63 = vpop.permute.xlu1 %1526  ;;  %1728 = vst.msk [vmem:[#allocation3 + $0x70] sm:$0xf] %vm947_vm3, %v5312_v18  ;;  %v4363_v33 = vld [vmem:[%s6392_s4 + $0x48] sm:$0xff] }
 0x13c   : > { %1623 = vst.msk [vmem:[#allocation3] sm:$0xf] %vm1622_vm6, %v1527_v63 }
 0x13d   : > { %v835_v46 = vmax.f32 %v803_v15, 0.0  ;;  %1859 = vrot.lane.b32.xlu0 %v5067_v13, %s4595_s18  ;;  %1731 = vst.msk [vmem:[#allocation3 + $0x94] sm:$0xf] %vm947_vm3, %v5403_v23 }
 0x13e   : > { %3110 = vmatpush.bf16.msrb.mxu2 %v4364_v29  ;;  %v994_v29 = vld [vmem:[#allocation2 + $0x101] sm:$0xff] }
 0x13f   : > { %868 = vst.msk [vmem:[#allocation2 + $0x161] sm:$0xff] %vm365_vm1, %v835_v46  ;;  %v5337_v14 = vpop.permute.xlu2 %1305  ;;  %v1985_v46 = vld [vmem:[#allocation2 + $0xd0] sm:$0xff] }
 0x140   : > { %v711_v5 = vpop.f32.mrf.mxu0  ;;  %v4065_v8 = vld [vmem:[#allocation3 + $0xb0] sm:$0xf]  ;;  %v5356_v42 = vpack.c.bf16 %v1985_v46, %v1985_v46 }
 0x141   : > { %v768_v47 = vmul.f32 %v4912_v30, %v711_v5  ;;  %v4066_v2 = vor.u32 %v4329_v12, %v4065_v8  ;;  %2308 = vrot.lane.b32.xlu1 %v5200_v52, %s4597_s26  ;;  %v1848_v52 = vpop.permute.xlu0 %1847 }
 0x142   : > { %1943 = vst.msk [vmem:[#allocation3 + $0x4] sm:$0xf] %vm1172_vm4, %v1848_v52  ;;  %3111 = vmatpush.bf16.msrb.mxu2 %v4363_v33  ;;  %v5435_v33 = vpack.c.bf16 %v994_v29, %v994_v29 }
 0x143   : > { %v804_v57 = vadd.f32 %v4926_v32, %v768_v47  ;;  %v2073_v28 = vpop.permute.xlu1 %2072  ;;  %959 = vst.msk [vmem:[#allocation3 + $0x84] sm:$0xf] %vm947_vm3, %v5356_v42 }
 0x144   : > { %2168 = vst.msk [vmem:[#allocation3 + $0x4] sm:$0xf] %vm1397_vm5, %v2073_v28 }
 0x145   : > { %v836_v6 = vmax.f32 %v804_v57, 0.0  ;;  %2392 = vst.msk [vmem:[#allocation3 + $0x4] sm:$0xf] %vm1622_vm6, %v2297_v55  ;;  %1315 = vrot.lane.b32.xlu0 %v5067_v13, %s4596_s25  ;;  %v4362_v13 = vld [vmem:[%s6392_s4 + $0x40] sm:$0xff] }
 0x146   : > { %v2440_v11 = vld [vmem:[#allocation2 + $0x162] sm:$0xff]  ;;  %3112 = vmatpush.bf16.msrb.mxu2 %v4362_v13  ;;  %1732 = vst.msk [vmem:[#allocation3 + $0xa0] sm:$0xf] %vm947_vm3, %v5435_v33 }
 0x147   : > { %v2472_v60 = vpack.c.bf16 %v2440_v11, %v2440_v11  ;;  %869 = vst.msk [vmem:[#allocation2 + $0x171] sm:$0xff] %vm365_vm1, %v836_v6  ;;  %v2113_v47 = vpop.permute.xlu2 %2112  ;;  %v1986_v55 = vld [vmem:[#allocation2 + $0xe0] sm:$0xff] }
 0x148   : > { %v713_v26 = vpop.f32.mrf.mxu0  ;;  %v5370_v4 = vpack.c.bf16 %v1986_v55, %v1986_v55  ;;  %v3973_v6 = vld [vmem:[#allocation3] sm:$0xf] }
 0x149   : > { %2504 = vst.msk [vmem:[#allocation3 + $0xc8] sm:$0xf] %vm947_vm3, %v2472_v60  ;;  %v769_v34 = vmul.f32 %v4912_v30, %v713_v26  ;;  %v1982_v30 = vld [vmem:[#allocation2 + $0x80] sm:$0xff]  ;;  %1094 = vrot.lane.b32.xlu1 %v1021_v61, %s4595_s18  ;;  %v1304_v5 = vpop.permute.xlu0 %1303 }
 0x14a   : > { %v2014_v25 = vpack.c.bf16 %v1982_v30, %v1982_v30  ;;  %1399 = vst.msk [vmem:[#allocation3 + $0xc] sm:$0xf] %vm1397_vm5, %v1304_v5 }
 0x14b   : > { %v805_v22 = vadd.f32 %v4926_v32, %v769_v34  ;;  %4242 = vmatmul.msk.bf16.gmra.mxu0 %vm365_vm1, %v4066_v2  ;;  %v1890_v15 = vpop.permute.xlu1 %1889  ;;  %1624 = vst.msk [vmem:[#allocation3 + $0xc] sm:$0xf] %vm1622_vm6, %v1529_v21  ;;  %v1987_v21 = vld [vmem:[#allocation2 + $0xf0] sm:$0xff] }
 0x14c   : > { %2084 = vrot.lane.b32.xlu2 %v2014_v25, %s4596_s25  ;;  %1964 = vst.msk [vmem:[#allocation3 + $0x100] sm:$0xf] %vm1172_vm4, %v1890_v15  ;;  %v723_v15 = vpop.f32.mrf.mxu1 }
 0x14d   : > { %v837_v50 = vmax.f32 %v805_v22, 0.0  ;;  %1863 = vrot.lane.b32.xlu0 %v1791_v48, %s4595_s18  ;;  %960 = vst.msk [vmem:[#allocation3 + $0x90] sm:$0xf] %vm947_vm3, %v5370_v4 }
 0x14e   : > { %v2441_v32 = vld [vmem:[#allocation2 + $0x172] sm:$0xff] }
 0x14f   : > { %v2473_v27 = vpack.c.bf16 %v2441_v32, %v2441_v32  ;;  %870 = vst.msk [vmem:[#allocation2 + $0x181] sm:$0xff] %vm365_vm1, %v837_v50  ;;  %v2299_v58 = vpop.permute.xlu2 %2298  ;;  %v4306_v50 = vld [vmem:[#allocation3 + $0x4] sm:$0xf] }
 0x150   : > { %v4077_v7 = vld [vmem:[#allocation3 + $0xc8] sm:$0xf] }
 0x151   : > { %2505 = vst.msk [vmem:[#allocation3 + $0xd4] sm:$0xf] %vm947_vm3, %v2473_v27  ;;  %1542 = vrot.lane.b32.xlu1 %v5303_v1, %s4597_s26  ;;  %v5377_v11 = vpop.permute.xlu0 %2110  ;;  %v5381_v1 = vpack.c.bf16 %v992_v0, %v992_v0 }
 0x152   : > { %v4307_v59 = vld [vmem:[#allocation3 + $0x8] sm:$0xf0] }
 0x153   : > { %v2075_v57 = vpop.permute.xlu1 %2074  ;;  %v3974_v60 = vor.u32 %v4307_v59, %v3973_v6  ;;  %1730 = vst.msk [vmem:[#allocation3 + $0x88] sm:$0xf] %vm947_vm3, %v5381_v1  ;;  %v1989_v59 = vld [vmem:[#allocation2 + $0x110] sm:$0xff] }
 0x154   : > { %1540 = vrot.lane.b32.xlu2 %v2014_v25, %s4597_s26  ;;  %v1988_v25 = vld [vmem:[#allocation2 + $0x100] sm:$0xff] }
 0x155   : > { %3024 = vmatmul.bf16.vlgmr.msrb.gmra.mxu1 %v3974_v60  ;;  %1319 = vrot.lane.b32.xlu0 %v1791_v48, %s4596_s25  ;;  %v5422_v28 = vpack.c.bf16 %v1988_v25, %v1988_v25 }
 0x156   : > { %v2442_v17 = vld [vmem:[#allocation2 + $0x182] sm:$0xff] }
 0x157   : > { %v2474_v36 = vpack.c.bf16 %v2442_v17, %v2442_v17  ;;  %v2077_v12 = vpop.permute.xlu2 %2076  ;;  %962 = vst.msk [vmem:[#allocation3 + $0xa8] sm:$0xf] %vm947_vm3, %v5422_v28 }
 0x158   : > { %v4332_v39 = vld [vmem:[#allocation3 + $0xd0] sm:$0xf0] }
 0x159   : > { %2506 = vst.msk [vmem:[#allocation3 + $0xe0] sm:$0xf] %vm947_vm3, %v2474_v36  ;;  %v4078_v43 = vor.u32 %v4332_v39, %v4077_v7  ;;  %1865 = vrot.lane.b32.xlu1 %v5099_v51, %s4595_s18  ;;  %v1888_v8 = vpop.permute.xlu0 %1887 }
 0x15a   : > { %1963 = vst.msk [vmem:[#allocation3 + $0xf4] sm:$0xf] %vm1172_vm4, %v1888_v8  ;;  %v2447_v8 = vld [vmem:[#allocation2 + $0x1d2] sm:$0xff] }
 0x15b   : > { %4243 = vmatmul.msk.bf16.gmra.mxu0 %vm365_vm1, %v4078_v43  ;;  %v1083_v61 = vpop.permute.xlu1 %1082  ;;  %2188 = vst.msk [vmem:[#allocation3 + $0xf4] sm:$0xf] %vm1397_vm5, %v2113_v47 }
 0x15c   : > { %2088 = vrot.lane.b32.xlu2 %v5278_v41, %s4596_s25  ;;  %1176 = vst.msk [vmem:[#allocation3 + $0x24] sm:$0xf] %vm1172_vm4, %v1083_v61  ;;  %v5486_v61 = vpack.c.bf16 %v1989_v59, %v1989_v59 }
 0x15d   : > { %1096 = vrot.lane.b32.xlu0 %v5312_v18, %s4595_s18 }
 0x15e   : > { %963 = vst.msk [vmem:[#allocation3 + $0xb4] sm:$0xf] %vm947_vm3, %v5486_v61 }
 0x15f   : > { %v1533_v2 = vpop.permute.xlu2 %1532 }
 0x160   : > { %v4089_v63 = vld [vmem:[#allocation3 + $0xe0] sm:$0xf] }
 0x161   : > { %v4090_v26 = vor.u32 %v4335_v3, %v4089_v63  ;;  %2312 = vrot.lane.b32.xlu1 %v5312_v18, %s4597_s26 }
 0x163   : > { %v1531_v34 = vpop.permute.xlu1 %1530 }
 0x164   : > { %1544 = vrot.lane.b32.xlu2 %v5278_v41, %s4597_s26  ;;  %v1850_v41 = vpop.permute.xlu0 %1849 }
 0x165   : > { %1944 = vst.msk [vmem:[#allocation3 + $0x10] sm:$0xf] %vm1172_vm4, %v1850_v41  ;;  %2090 = vrot.lane.b32.xlu0 %v5356_v42, %s4596_s25 }
 0x166   : > { %2169 = vst.msk [vmem:[#allocation3 + $0x10] sm:$0xf] %vm1397_vm5, %v2075_v57 }
 0x167   : > { %2393 = vst.msk [vmem:[#allocation3 + $0x10] sm:$0xf] %vm1622_vm6, %v2299_v58  ;;  %v1310_v30 = vpop.permute.xlu2 %1309  ;;  %v2213_v58 = vld [vmem:[#allocation2 + $0x111] sm:$0xff] }
 0x168   : > { %v5479_v0 = vpack.c.bf16 %v2213_v58, %v2213_v58 }
 0x169   : > { %1098 = vrot.lane.b32.xlu1 %v5350_v9, %s4595_s18 }
 0x16a   : > { %1733 = vst.msk [vmem:[#allocation3 + $0xac] sm:$0xf] %vm947_vm3, %v5479_v0 }
 0x16b   : > { %4244 = vmatmul.msk.bf16.gmra.mxu0 %vm365_vm1, %v4090_v26  ;;  %v1854_v22 = vpop.permute.xlu1 %1853 }
 0x16c   : > { %1321 = vrot.lane.b32.xlu2 %v5099_v51, %s4596_s25  ;;  %1946 = vst.msk [vmem:[#allocation3 + $0x28] sm:$0xf] %vm1172_vm4, %v1854_v22  ;;  %v5406_v51 = vpack.c.bf16 %v1987_v21, %v1987_v21  ;;  %v1081_v18 = vpop.permute.xlu0 %1080 }
 0x16d   : > { %1175 = vst.msk [vmem:[#allocation3 + $0x18] sm:$0xf] %vm1172_vm4, %v1081_v18  ;;  %1867 = vrot.lane.b32.xlu0 %v5118_v62, %s4595_s18  ;;  %v726_v46 = vpop.f32.mrf.mxu2 }
 0x16e   : > { %961 = vst.msk [vmem:[#allocation3 + $0x9c] sm:$0xf] %vm947_vm3, %v5406_v51  ;;  %v3975_v32 = vld [vmem:[#allocation3 + $0xc] sm:$0xf0] }
 0x16f   : > { %1400 = vst.msk [vmem:[#allocation3 + $0x18] sm:$0xf] %vm1397_vm5, %v5337_v14  ;;  %v3978_v24 = vor.u32 %v4306_v50, %v3975_v32  ;;  %v2303_v14 = vpop.permute.xlu2 %2302 }
 0x170   : > { %1625 = vst.msk [vmem:[#allocation3 + $0x18] sm:$0xf] %vm1622_vm6, %v1531_v34 }
 0x171   : > { %1546 = vrot.lane.b32.xlu1 %v5356_v42, %s4597_s26  ;;  %3113 = vmatmul.bf16.vlgmr.msrb.gmra.mxu2 %v3978_v24  ;;  %v5460_v42 = vld [vmem:[%s6391_s3] ss:$0 sm:$0xff] }
 0x173   : > { %v2301_v27 = vpop.permute.xlu1 %2300 }
 0x174   : > { %2314 = vrot.lane.b32.xlu2 %v5350_v9, %s4597_s26  ;;  %v1852_v52 = vpop.permute.xlu0 %1851 }
 0x175   : > { %1945 = vst.msk [vmem:[#allocation3 + $0x1c] sm:$0xf] %vm1172_vm4, %v1852_v52  ;;  %1323 = vrot.lane.b32.xlu0 %v5118_v62, %s4596_s25  ;;  %v5453_v62 = vld [vmem:[%s6390_s2] ss:$0 sm:$0xff] }
 0x176   : > { %2170 = vst.msk [vmem:[#allocation3 + $0x1c] sm:$0xf] %vm1397_vm5, %v2077_v12  ;;  %v773_v9 = vmul.f32 %v5453_v62, %v723_v15  ;;  %v774_v7 = vmul.f32 %v5453_v62, %v726_v46  ;;  %v2479_v12 = vpack.c.bf16 %v2447_v8, %v2447_v8 }
 0x177   : > { %2394 = vst.msk [vmem:[#allocation3 + $0x1c] sm:$0xf] %vm1622_vm6, %v2301_v27  ;;  %v5444_v36 = vpop.permute.xlu2 %2080  ;;  %v3985_v48 = vld [vmem:[#allocation3 + $0x18] sm:$0xf] }
 0x178   : > { %v809_v43 = vadd.f32 %v5460_v42, %v773_v9  ;;  %v810_v44 = vadd.f32 %v5460_v42, %v774_v7  ;;  %2511 = vst.msk [vmem:[#allocation3 + $0x11c] sm:$0xf] %vm947_vm3, %v2479_v12  ;;  %v1990_v12 = vld [vmem:[#allocation2 + $0x120] sm:$0xff] }
 0x179   : > { %1869 = vrot.lane.b32.xlu1 %v5152_v20, %s4595_s18 }
 0x17a   : > { %v841_v13 = vmax.f32 %v809_v43, 0.0 }
 0x17b   : > { %v1087_v17 = vpop.permute.xlu1 %1086 }
 0x17c   : > { %2092 = vrot.lane.b32.xlu2 %v5370_v4, %s4596_s25  ;;  %1178 = vst.msk [vmem:[#allocation3 + $0x3c] sm:$0xf] %vm1172_vm4, %v1087_v17  ;;  %v1308_v35 = vpop.permute.xlu0 %1307  ;;  %v2214_v17 = vld [vmem:[#allocation2 + $0x121] sm:$0xff] }
 0x17d   : > { %1401 = vst.msk [vmem:[#allocation3 + $0x24] sm:$0xf] %vm1397_vm5, %v1308_v35  ;;  %1100 = vrot.lane.b32.xlu0 %v5381_v1, %s4595_s18  ;;  %v5519_v15 = vpack.c.bf16 %v2214_v17, %v2214_v17  ;;  %v997_v17 = vld [vmem:[#allocation2 + $0x151] sm:$0xff] }
 0x17e   : > { %1626 = vst.msk [vmem:[#allocation3 + $0x24] sm:$0xf] %vm1622_vm6, %v1533_v2 }
 0x17f   : > { %v5468_v47 = vpop.permute.xlu2 %1536  ;;  %874 = vst.msk [vmem:[#allocation2 + $0x1c1] sm:$0xff] %vm365_vm1, %v841_v13 }
 0x180   : > { %1734 = vst.msk [vmem:[#allocation3 + $0xb8] sm:$0xf] %vm947_vm3, %v5519_v15 }
 0x181   : > { %2316 = vrot.lane.b32.xlu1 %v5381_v1, %s4597_s26 }
 0x183   : > { %v1535_v39 = vpop.permute.xlu1 %1534 }
 0x184   : > { %1548 = vrot.lane.b32.xlu2 %v5370_v4, %s4597_s26  ;;  %v1085_v5 = vpop.permute.xlu0 %1084  ;;  %v728_v4 = vpop.f32.mrf.mxu2 }
 0x185   : > { %1177 = vst.msk [vmem:[#allocation3 + $0x30] sm:$0xf] %vm1172_vm4, %v1085_v5  ;;  %v4310_v55 = vld [vmem:[#allocation3 + $0x20] sm:$0xf0]  ;;  %v775_v6 = vmul.f32 %v5453_v62, %v728_v4  ;;  %2094 = vrot.lane.b32.xlu0 %v5406_v51, %s4596_s25 }
 0x186   : > { %1402 = vst.msk [vmem:[#allocation3 + $0x30] sm:$0xf] %vm1397_vm5, %v1310_v30  ;;  %v3986_v57 = vor.u32 %v4310_v55, %v3985_v48  ;;  %v2446_v41 = vld [vmem:[#allocation2 + $0x1c2] sm:$0xff]  ;;  %v4309_v30 = vld [vmem:[#allocation3 + $0x1c] sm:$0xf] }
 0x187   : > { %1627 = vst.msk [vmem:[#allocation3 + $0x30] sm:$0xf] %vm1622_vm6, %v1535_v39  ;;  %v811_v63 = vadd.f32 %v5460_v42, %v775_v6  ;;  %v5490_v26 = vpop.permute.xlu2 %1313  ;;  %v2478_v19 = vpack.c.bf16 %v2446_v41, %v2446_v41 }
 0x188   : > { %3029 = vmatmul.bf16.gmra.mxu1 %v3986_v57 }
 0x189   : > { %1102 = vrot.lane.b32.xlu1 %v5403_v23, %s4595_s18  ;;  %v843_v1 = vmax.f32 %v811_v63, 0.0  ;;  %2510 = vst.msk [vmem:[#allocation3 + $0x110] sm:$0xf] %vm947_vm3, %v2478_v19 }
 0x18b   : > { %v1858_v60 = vpop.permute.xlu1 %1857  ;;  %876 = vst.msk [vmem:[#allocation2 + $0x201] sm:$0xff] %vm365_vm1, %v843_v1 }
 0x18c   : > { %1325 = vrot.lane.b32.xlu2 %v5152_v20, %s4596_s25  ;;  %v842_v20 = vmax.f32 %v810_v44, 0.0  ;;  %1948 = vst.msk [vmem:[#allocation3 + $0x40] sm:$0xf] %vm1172_vm4, %v1858_v60  ;;  %v2079_v3 = vpop.permute.xlu0 %2078  ;;  %v731_v34 = vpop.f32.mrf.mxu2  ;;  %v1992_v44 = vld [vmem:[#allocation2 + $0x160] sm:$0xff] }
 0x18d   : > { %2171 = vst.msk [vmem:[#allocation3 + $0x28] sm:$0xf] %vm1397_vm5, %v2079_v3  ;;  %v776_v2 = vmul.f32 %v5453_v62, %v731_v34  ;;  %1871 = vrot.lane.b32.xlu0 %v5167_v37, %s4595_s18  ;;  %v5539_v55 = vpack.c.bf16 %v1992_v44, %v1992_v44  ;;  %v1767_v44 = vld [vmem:[#allocation2 + $0x152] sm:$0xff] }
 0x18e   : > { %875 = vst.msk [vmem:[#allocation2 + $0x1f1] sm:$0xff] %vm365_vm1, %v842_v20  ;;  %v3997_v4 = vld [vmem:[#allocation3 + $0x30] sm:$0xf] }
 0x18f   : > { %2395 = vst.msk [vmem:[#allocation3 + $0x28] sm:$0xf] %vm1622_vm6, %v2303_v14  ;;  %v812_v22 = vadd.f32 %v5460_v42, %v776_v2  ;;  %v4341_v14 = vld [vmem:[#allocation3 + $0x118] sm:$0xf0] }
 0x190   : > { %966 = vst.msk [vmem:[#allocation3 + $0xd8] sm:$0xf] %vm947_vm3, %v5539_v55 }
 0x191   : > { %1550 = vrot.lane.b32.xlu1 %v5406_v51, %s4597_s26  ;;  %v5507_v51 = vpop.permute.xlu2 %2306  ;;  %v844_v18 = vmax.f32 %v812_v22, 0.0  ;;  %v998_v22 = vld [vmem:[#allocation2 + $0x161] sm:$0xff] }
 0x192   : > { %v2448_v24 = vld [vmem:[#allocation2 + $0x202] sm:$0xff] }
 0x193   : > { %v2305_v21 = vpop.permute.xlu1 %2304  ;;  %v2480_v27 = vpack.c.bf16 %v2448_v24, %v2448_v24  ;;  %877 = vst.msk [vmem:[#allocation2 + $0x211] sm:$0xff] %vm365_vm1, %v844_v18  ;;  %v1766_v18 = vld [vmem:[#allocation2 + $0x122] sm:$0xff] }
 0x194   : > { %2318 = vrot.lane.b32.xlu2 %v5403_v23, %s4597_s26  ;;  %v1856_v23 = vpop.permute.xlu0 %1855  ;;  %v733_v25 = vpop.f32.mrf.mxu2  ;;  %v1798_v24 = vpack.c.bf16 %v1766_v18, %v1766_v18  ;;  %v2455_v18 = vld [vmem:[#allocation2 + $0x272] sm:$0xff] }
 0x195   : > { %1947 = vst.msk [vmem:[#allocation3 + $0x34] sm:$0xf] %vm1172_vm4, %v1856_v23  ;;  %v777_v52 = vmul.f32 %v5453_v62, %v733_v25  ;;  %1327 = vrot.lane.b32.xlu0 %v5167_v37, %s4596_s25 }
 0x196   : > { %v3987_v50 = vld [vmem:[#allocation3 + $0x24] sm:$0xf0]  ;;  %2172 = vst.msk [vmem:[#allocation3 + $0x34] sm:$0xf] %vm1397_vm5, %v5444_v36  ;;  %v4113_v36 = vld [vmem:[#allocation3 + $0x110] sm:$0xf] }
 0x197   : > { %v3990_v32 = vor.u32 %v4309_v30, %v3987_v50  ;;  %2396 = vst.msk [vmem:[#allocation3 + $0x34] sm:$0xf] %vm1622_vm6, %v2305_v21  ;;  %v813_v35 = vadd.f32 %v5460_v42, %v777_v52  ;;  %v4114_v46 = vor.u32 %v4341_v14, %v4113_v36  ;;  %v5580_v50 = vpack.c.bf16 %v998_v22, %v998_v22  ;;  %v1223_v22 = vld [vmem:[#allocation2 + $0x162] sm:$0xff] }
 0x198   : > { %2512 = vst.msk [vmem:[#allocation3 + $0x128] sm:$0xf] %vm947_vm3, %v2480_v27 }
 0x199   : > { %1873 = vrot.lane.b32.xlu1 %v5181_v40, %s4595_s18  ;;  %3118 = vmatmul.bf16.gmra.mxu2 %v3990_v32  ;;  %v845_v9 = vmax.f32 %v813_v35, 0.0  ;;  %1736 = vst.msk [vmem:[#allocation3 + $0xd0] sm:$0xf] %vm947_vm3, %v5580_v50 }
 0x19a   : > { %4246 = vmatmul.msk.bf16.gmra.mxu3 %vm365_vm1, %v4114_v46  ;;  %v1029_v46 = vpack.c.bf16 %v997_v17, %v997_v17 }
 0x19b   : > { %v1091_v29 = vpop.permute.xlu1 %1090  ;;  %878 = vst.msk [vmem:[#allocation2 + $0x221] sm:$0xff] %vm365_vm1, %v845_v9  ;;  %v1446_v9 = vld [vmem:[#allocation2 + $0x150] sm:$0xff] }
 0x19c   : > { %2096 = vrot.lane.b32.xlu2 %v5422_v28, %s4596_s25  ;;  %1180 = vst.msk [vmem:[#allocation3 + $0x54] sm:$0xf] %vm1172_vm4, %v1091_v29  ;;  %v1312_v7 = vpop.permute.xlu0 %1311  ;;  %v736_v37 = vpop.f32.mrf.mxu2 }
 0x19d   : > { %1403 = vst.msk [vmem:[#allocation3 + $0x3c] sm:$0xf] %vm1397_vm5, %v1312_v7  ;;  %v778_v43 = vmul.f32 %v5453_v62, %v736_v37  ;;  %1104 = vrot.lane.b32.xlu0 %v5435_v33, %s4595_s18  ;;  %v5596_v37 = vpack.c.bf16 %v1446_v9, %v1446_v9  ;;  %v1769_v9 = vld [vmem:[#allocation2 + $0x172] sm:$0xff] }
 0x19e   : > { %1628 = vst.msk [vmem:[#allocation3 + $0x3c] sm:$0xf] %vm1622_vm6, %v5468_v47  ;;  %v4312_v27 = vld [vmem:[#allocation3 + $0x34] sm:$0xf] }
 0x19f   : > { %v814_v48 = vadd.f32 %v5460_v42, %v778_v43  ;;  %v4125_v63 = vld [vmem:[#allocation3 + $0x128] sm:$0xf]  ;;  %v2217_v43 = vld [vmem:[#allocation2 + $0x171] sm:$0xff]  ;;  %1735 = vst.msk [vmem:[#allocation3 + $0xc4] sm:$0xf] %vm947_vm3, %v1029_v46 }
 0x1a0   : > { %965 = vst.msk [vmem:[#allocation3 + $0xcc] sm:$0xf] %vm947_vm3, %v5596_v37 }
 0x1a1   : > { %2320 = vrot.lane.b32.xlu1 %v5435_v33, %s4597_s26  ;;  %v846_v20 = vmax.f32 %v814_v48, 0.0 }
 0x1a2   : > { %v2450_v58 = vld [vmem:[#allocation2 + $0x222] sm:$0xff] }
 0x1a3   : > { %v1539_v13 = vpop.permute.xlu1 %1538  ;;  %v2482_v59 = vpack.c.bf16 %v2450_v58, %v2450_v58  ;;  %879 = vst.msk [vmem:[#allocation2 + $0x231] sm:$0xff] %vm365_vm1, %v846_v20  ;;  %v1799_v20 = vpack.c.bf16 %v1767_v44, %v1767_v44 }
 0x1a4   : > { %1552 = vrot.lane.b32.xlu2 %v5422_v28, %s4597_s26  ;;  %v2449_v28 = vld [vmem:[#allocation2 + $0x212] sm:$0xff]  ;;  %v1089_v47 = vpop.permute.xlu0 %1088  ;;  %v738_v33 = vpop.f32.mrf.mxu2 }
 0x1a5   : > { %v2481_v5 = vpack.c.bf16 %v2449_v28, %v2449_v28  ;;  %1179 = vst.msk [vmem:[#allocation3 + $0x48] sm:$0xf] %vm1172_vm4, %v1089_v47  ;;  %v4313_v6 = vld [vmem:[#allocation3 + $0x38] sm:$0xf0]  ;;  %v779_v60 = vmul.f32 %v5453_v62, %v738_v33  ;;  %2098 = vrot.lane.b32.xlu0 %v5486_v61, %s4596_s25  ;;  %v5609_v47 = vpack.c.bf16 %v2217_v43, %v2217_v43  ;;  %v4373_v43 = vld [vmem:[%s6395_s7 + $0x8] sm:$0xff] }
 0x1a6   : > { %v5528_v39 = vpop.permute.xlu2 %2084  ;;  %1404 = vst.msk [vmem:[#allocation3 + $0x48] sm:$0xf] %vm1397_vm5, %v5490_v26  ;;  %3473 = vmatpush.bf16.msrb.mxu3 %v4373_v43 }
 0x1a7   : > { %2513 = vst.msk [vmem:[#allocation3 + $0x134] sm:$0xf] %vm947_vm3, %v2481_v5  ;;  %v815_v3 = vadd.f32 %v5460_v42, %v779_v60  ;;  %v1993_v5 = vld [vmem:[#allocation2 + $0x170] sm:$0xff] }
 0x1a8   : > { %1629 = vst.msk [vmem:[#allocation3 + $0x48] sm:$0xf] %vm1622_vm6, %v1539_v13 }
 0x1a9   : > { %1106 = vrot.lane.b32.xlu1 %v5479_v0, %s4595_s18  ;;  %2514 = vst.msk [vmem:[#allocation3 + $0x140] sm:$0xf] %vm947_vm3, %v2482_v59  ;;  %v847_v34 = vmax.f32 %v815_v3, 0.0 }
 0x1aa   : > { %1737 = vst.msk [vmem:[#allocation3 + $0xdc] sm:$0xf] %vm947_vm3, %v5609_v47 }
 0x1ab   : > { %v1862_v1 = vpop.permute.xlu1 %1861  ;;  %880 = vst.msk [vmem:[#allocation2 + $0x241] sm:$0xff] %vm365_vm1, %v847_v34 }
 0x1ac   : > { %1329 = vrot.lane.b32.xlu2 %v5181_v40, %s4596_s25  ;;  %v3998_v40 = vor.u32 %v4313_v6, %v3997_v4  ;;  %1950 = vst.msk [vmem:[#allocation3 + $0x58] sm:$0xf] %vm1172_vm4, %v1862_v1  ;;  %v2083_v41 = vpop.permute.xlu0 %2082  ;;  %v741_v19 = vpop.f32.mrf.mxu2  ;;  %v5615_v4 = vpack.c.bf16 %v1993_v5, %v1993_v5 }
 0x1ad   : > { %2175 = vst.msk [vmem:[#allocation3 + $0x58] sm:$0xf] %vm1397_vm5, %v5240_v16  ;;  %v2451_v16 = vld [vmem:[#allocation2 + $0x232] sm:$0xff]  ;;  %v780_v21 = vmul.f32 %v5453_v62, %v741_v19  ;;  %1875 = vrot.lane.b32.xlu0 %v5225_v10, %s4595_s18 }
 0x1ae   : > { %v5548_v57 = vpop.permute.xlu2 %1540  ;;  %3034 = vmatmul.bf16.gmra.mxu1 %v3998_v40  ;;  %v4344_v26 = vld [vmem:[#allocation3 + $0x130] sm:$0xf0]  ;;  %2399 = vst.msk [vmem:[#allocation3 + $0x58] sm:$0xf] %vm1622_vm6, %v5165_v31  ;;  %v2483_v23 = vpack.c.bf16 %v2451_v16, %v2451_v16 }
 0x1af   : > { %v4126_v8 = vor.u32 %v4344_v26, %v4125_v63  ;;  %2173 = vst.msk [vmem:[#allocation3 + $0x40] sm:$0xf] %vm1397_vm5, %v2083_v41  ;;  %v816_v30 = vadd.f32 %v5460_v42, %v780_v21  ;;  %v2221_v40 = vld [vmem:[#allocation2 + $0x1b1] sm:$0xff] }
 0x1b0   : > { %2397 = vst.msk [vmem:[#allocation3 + $0x40] sm:$0xf] %vm1622_vm6, %v5507_v51  ;;  %v4137_v36 = vld [vmem:[#allocation3 + $0x140] sm:$0xf]  ;;  %v5624_v63 = vpack.c.bf16 %v2221_v40, %v2221_v40 }
 0x1b1   : > { %4247 = vmatmul.msk.bf16.gmra.mxu3 %vm365_vm1, %v4126_v8  ;;  %1554 = vrot.lane.b32.xlu1 %v5486_v61, %s4597_s26  ;;  %2515 = vst.msk [vmem:[#allocation3 + $0x14c] sm:$0xf] %vm947_vm3, %v2483_v23  ;;  %v1220_v61 = vld [vmem:[#allocation2 + $0x112] sm:$0xff]  ;;  %v848_v25 = vmax.f32 %v816_v30, 0.0  ;;  %v1255_v30 = vpack.c.bf16 %v1223_v22, %v1223_v22  ;;  %v2220_v40 = vld [vmem:[#allocation2 + $0x1a1] sm:$0xff] }
 0x1b2   : > { %v1252_v14 = vpack.c.bf16 %v1220_v61, %v1220_v61  ;;  %v2452_v29 = vld [vmem:[#allocation2 + $0x242] sm:$0xff]  ;;  %967 = vst.msk [vmem:[#allocation3 + $0xe4] sm:$0xf] %vm947_vm3, %v5615_v4 }
 0x1b3   : > { %v2309_v31 = vpop.permute.xlu1 %2308  ;;  %v2484_v35 = vpack.c.bf16 %v2452_v29, %v2452_v29  ;;  %881 = vst.msk [vmem:[#allocation2 + $0x251] sm:$0xff] %vm365_vm1, %v848_v25 }
 0x1b4   : > { %2322 = vrot.lane.b32.xlu2 %v5479_v0, %s4597_s26  ;;  %v2022_v0 = vpack.c.bf16 %v1990_v12, %v1990_v12  ;;  %v1860_v51 = vpop.permute.xlu0 %1859  ;;  %v743_v6 = vpop.f32.mrf.mxu2  ;;  %1741 = vst.msk [vmem:[#allocation3 + $0x10c] sm:$0xf] %vm947_vm3, %v5624_v63 }
 0x1b5   : > { %1949 = vst.msk [vmem:[#allocation3 + $0x4c] sm:$0xf] %vm1172_vm4, %v1860_v51  ;;  %1331 = vrot.lane.b32.xlu0 %v1252_v14, %s4596_s25  ;;  %v781_v33 = vmul.f32 %v5453_v62, %v743_v6  ;;  %v4011_v62 = vld [vmem:[#allocation3 + $0x54] sm:$0xf0] }
 0x1b6   : > { %v5567_v2 = vpop.permute.xlu2 %2088  ;;  %2174 = vst.msk [vmem:[#allocation3 + $0x4c] sm:$0xf] %vm1397_vm5, %v5528_v39 }
 0x1b7   : > { %v3999_v52 = vld [vmem:[#allocation3 + $0x3c] sm:$0xf0]  ;;  %2398 = vst.msk [vmem:[#allocation3 + $0x4c] sm:$0xf] %vm1622_vm6, %v2309_v31 }
 0x1b8   : > { %v4002_v10 = vor.u32 %v4312_v27, %v3999_v52  ;;  %2516 = vst.msk [vmem:[#allocation3 + $0x158] sm:$0xf] %vm947_vm3, %v2484_v35  ;;  %v4347_v39 = vld [vmem:[#allocation3 + $0x148] sm:$0xf0]  ;;  %v1000_v35 = vld [vmem:[#allocation2 + $0x181] sm:$0xff] }
 0x1b9   : > { %1877 = vrot.lane.b32.xlu1 %v1798_v24, %s4595_s18  ;;  %v4138_v28 = vor.u32 %v4347_v39, %v4137_v36  ;;  %v1801_v39 = vpack.c.bf16 %v1769_v9, %v1769_v9 }
 0x1ba   : > { %3123 = vmatmul.bf16.gmra.mxu2 %v4002_v10  ;;  %v2453_v58 = vld [vmem:[#allocation2 + $0x252] sm:$0xff] }
 0x1bb   : > { %v1095_v7 = vpop.permute.xlu1 %1094  ;;  %v2485_v59 = vpack.c.bf16 %v2453_v58, %v2453_v58  ;;  %v1997_v58 = vld [vmem:[#allocation2 + $0x1b0] sm:$0xff] }
 0x1bc   : > { %2100 = vrot.lane.b32.xlu2 %v2022_v0, %s4596_s25  ;;  %1182 = vst.msk [vmem:[#allocation3 + $0x6c] sm:$0xf] %vm1172_vm4, %v1095_v7  ;;  %v1316_v13 = vpop.permute.xlu0 %1315 }
 0x1bd   : > { %1405 = vst.msk [vmem:[#allocation3 + $0x54] sm:$0xf] %vm1397_vm5, %v1316_v13  ;;  %1879 = vrot.lane.b32.xlu0 %v1799_v20, %s4595_s18 }
 0x1be   : > { %v5588_v32 = vpop.permute.xlu2 %1544  ;;  %1630 = vst.msk [vmem:[#allocation3 + $0x54] sm:$0xf] %vm1622_vm6, %v5548_v57  ;;  %v4315_v57 = vld [vmem:[#allocation3 + $0x4c] sm:$0xf] }
 0x1bf   : > { %2517 = vst.msk [vmem:[#allocation3 + $0x164] sm:$0xf] %vm947_vm3, %v2485_v59  ;;  %v4014_v8 = vor.u32 %v4315_v57, %v4011_v62  ;;  %v4149_v41 = vld [vmem:[#allocation3 + $0x158] sm:$0xf]  ;;  %v3203_v62 = vpop.f32.mrf.mxu0 }
 0x1c1   : > { %4248 = vmatmul.msk.bf16.gmra.mxu3 %vm365_vm1, %v4138_v28  ;;  %2324 = vrot.lane.b32.xlu1 %v5519_v15, %s4597_s26  ;;  %v817_v15 = vadd.f32 %v5460_v42, %v781_v33  ;;  %v4009_v42 = vld [vmem:[#allocation3 + $0x48] sm:$0xf] }
 0x1c3   : > { %v1543_v60 = vpop.permute.xlu1 %1542  ;;  %v849_v1 = vmax.f32 %v817_v15, 0.0 }
 0x1c4   : > { %1556 = vrot.lane.b32.xlu2 %v2022_v0, %s4597_s26  ;;  %1631 = vst.msk [vmem:[#allocation3 + $0x60] sm:$0xf] %vm1622_vm6, %v1543_v60  ;;  %v1864_v3 = vpop.permute.xlu0 %1863  ;;  %v1994_v0 = vld [vmem:[#allocation2 + $0x180] sm:$0xff]  ;;  %v5698_v60 = vpack.c.bf16 %v2220_v40, %v2220_v40 }
 0x1c5   : > { %1951 = vst.msk [vmem:[#allocation3 + $0x64] sm:$0xf] %vm1172_vm4, %v1864_v3  ;;  %v4316_v12 = vld [vmem:[#allocation3 + $0x50] sm:$0xf0]  ;;  %v5639_v16 = vpack.c.bf16 %v1994_v0, %v1994_v0  ;;  %1335 = vrot.lane.b32.xlu0 %v1799_v20, %s4596_s25 }
 0x1c6   : > { %v5603_v48 = vpop.permute.xlu2 %1321  ;;  %2176 = vst.msk [vmem:[#allocation3 + $0x64] sm:$0xf] %vm1397_vm5, %v5567_v2  ;;  %v4010_v34 = vor.u32 %v4316_v12, %v4009_v42  ;;  %v4350_v21 = vld [vmem:[#allocation3 + $0x160] sm:$0xf0] }
 0x1c7   : > { %882 = vst.msk [vmem:[#allocation2 + $0x261] sm:$0xff] %vm365_vm1, %v849_v1  ;;  %v4150_v2 = vor.u32 %v4350_v21, %v4149_v41  ;;  %v1225_v1 = vld [vmem:[#allocation2 + $0x182] sm:$0xff] }
 0x1c8   : > { %3039 = vmatmul.bf16.gmra.mxu1 %v4010_v34  ;;  %968 = vst.msk [vmem:[#allocation3 + $0xf0] sm:$0xf] %vm947_vm3, %v5639_v16  ;;  %v1257_v41 = vpack.c.bf16 %v1225_v1, %v1225_v1  ;;  %v1227_v1 = vld [vmem:[#allocation2 + $0x1a2] sm:$0xff] }
 0x1c9   : > { %1110 = vrot.lane.b32.xlu1 %v1029_v46, %s4595_s18  ;;  %v5664_v46 = vpack.c.bf16 %v1000_v35, %v1000_v35 }
 0x1ca   : > { %3128 = vmatmul.bf16.gmra.mxu2 %v4014_v8 }
 0x1cb   : > { %v1866_v19 = vpop.permute.xlu1 %1865  ;;  %1738 = vst.msk [vmem:[#allocation3 + $0xe8] sm:$0xf] %vm947_vm3, %v5664_v46 }
 0x1cc   : > { %2104 = vrot.lane.b32.xlu2 %v5539_v55, %s4596_s25  ;;  %1952 = vst.msk [vmem:[#allocation3 + $0x70] sm:$0xf] %vm1172_vm4, %v1866_v19  ;;  %v1320_v23 = vpop.permute.xlu0 %1319  ;;  %v2222_v19 = vld [vmem:[#allocation2 + $0x1c1] sm:$0xff] }
 0x1cd   : > { %1407 = vst.msk [vmem:[#allocation3 + $0x6c] sm:$0xf] %vm1397_vm5, %v1320_v23  ;;  %1112 = vrot.lane.b32.xlu0 %v5580_v50, %s4595_s18 }
 0x1ce   : > { %v5632_v26 = vpop.permute.xlu2 %2314  ;;  %1632 = vst.msk [vmem:[#allocation3 + $0x6c] sm:$0xf] %vm1622_vm6, %v5588_v32  ;;  %v2454_v61 = vld [vmem:[#allocation2 + $0x262] sm:$0xff] }
 0x1cf   : > { %v2486_v51 = vpack.c.bf16 %v2454_v61, %v2454_v61  ;;  %v4021_v32 = vld [vmem:[#allocation3 + $0x60] sm:$0xf] }
 0x1d1   : > { %4249 = vmatmul.msk.bf16.gmra.mxu3 %vm365_vm1, %v4150_v2  ;;  %1558 = vrot.lane.b32.xlu1 %v5596_v37, %s4597_s26  ;;  %2518 = vst.msk [vmem:[#allocation3 + $0x170] sm:$0xf] %vm947_vm3, %v2486_v51  ;;  %v5717_v2 = vpack.c.bf16 %v2222_v19, %v2222_v19 }
 0x1d2   : > { %v3025_v15 = vpop.f32.mrf.mxu1 }
 0x1d3   : > { %v2313_v24 = vpop.permute.xlu1 %2312  ;;  %1742 = vst.msk [vmem:[#allocation3 + $0x118] sm:$0xf] %vm947_vm3, %v5717_v2 }
 0x1d4   : > { %1560 = vrot.lane.b32.xlu2 %v5539_v55, %s4597_s26  ;;  %v2487_v55 = vpack.c.bf16 %v2455_v18, %v2455_v18  ;;  %2400 = vst.msk [vmem:[#allocation3 + $0x64] sm:$0xf] %vm1622_vm6, %v2313_v24  ;;  %v1097_v25 = vpop.permute.xlu0 %1096 }
 0x1d5   : > { %1183 = vst.msk [vmem:[#allocation3 + $0x78] sm:$0xf] %vm1172_vm4, %v1097_v25  ;;  %v4319_v52 = vld [vmem:[#allocation3 + $0x68] sm:$0xf0]  ;;  %2106 = vrot.lane.b32.xlu0 %v5615_v4, %s4596_s25 }
 0x1d6   : > { %v2093_v31 = vpop.permute.xlu2 %2092  ;;  %2519 = vst.msk [vmem:[#allocation3 + $0x17c] sm:$0xf] %vm947_vm3, %v2487_v55  ;;  %v4022_v10 = vor.u32 %v4319_v52, %v4021_v32  ;;  %v5735_v55 = vld [vmem:[%s6394_s6] ss:$0 sm:$0xff]  ;;  %v3205_v32 = vpop.f32.mrf.mxu0 }
 0x1d7   : > { %1408 = vst.msk [vmem:[#allocation3 + $0x78] sm:$0xf] %vm1397_vm5, %v5603_v48 }
 0x1d8   : > { %3044 = vmatmul.bf16.gmra.mxu1 %v4022_v10  ;;  %v4161_v17 = vld [vmem:[#allocation3 + $0x170] sm:$0xf] }
 0x1d9   : > { %1881 = vrot.lane.b32.xlu1 %v1255_v30, %s4595_s18 }
 0x1db   : > { %v1099_v29 = vpop.permute.xlu1 %1098  ;;  %v4318_v44 = vld [vmem:[#allocation3 + $0x64] sm:$0xf] }
 0x1dc   : > { %1337 = vrot.lane.b32.xlu2 %v1255_v30, %s4596_s25  ;;  %1184 = vst.msk [vmem:[#allocation3 + $0x84] sm:$0xf] %vm1172_vm4, %v1099_v29  ;;  %v2091_v7 = vpop.permute.xlu0 %2090  ;;  %v1998_v29 = vld [vmem:[#allocation2 + $0x1c0] sm:$0xff] }
 0x1dd   : > { %v4353_v14 = vld [vmem:[#allocation3 + $0x178] sm:$0xf0]  ;;  %2177 = vst.msk [vmem:[#allocation3 + $0x70] sm:$0xf] %vm1397_vm5, %v2091_v7  ;;  %1883 = vrot.lane.b32.xlu0 %v1801_v39, %s4595_s18 }
 0x1de   : > { %v1549_v27 = vpop.permute.xlu2 %1548  ;;  %v4162_v36 = vor.u32 %v4353_v14, %v4161_v17  ;;  %2401 = vst.msk [vmem:[#allocation3 + $0x70] sm:$0xf] %vm1622_vm6, %v5632_v26  ;;  %v1773_v17 = vld [vmem:[#allocation2 + $0x1b2] sm:$0xff] }
 0x1e1   : > { %4250 = vmatmul.msk.bf16.gmra.mxu3 %vm365_vm1, %v4162_v36  ;;  %2328 = vrot.lane.b32.xlu1 %v5580_v50, %s4597_s26  ;;  %v4372_v50 = vld [vmem:[%s6395_s7] sm:$0xff] }
 0x1e2   : > { %3474 = vmatpush.bf16.msrb.mxu3 %v4372_v50 }
 0x1e3   : > { %v1547_v28 = vpop.permute.xlu1 %1546 }
 0x1e4   : > { %2330 = vrot.lane.b32.xlu2 %v5609_v47, %s4597_s26  ;;  %1633 = vst.msk [vmem:[#allocation3 + $0x78] sm:$0xf] %vm1622_vm6, %v1547_v28  ;;  %v1868_v5 = vpop.permute.xlu0 %1867  ;;  %v2030_v28 = vpack.c.bf16 %v1998_v29, %v1998_v29 }
 0x1e5   : > { %1953 = vst.msk [vmem:[#allocation3 + $0x7c] sm:$0xf] %vm1172_vm4, %v1868_v5  ;;  %v4023_v48 = vld [vmem:[#allocation3 + $0x6c] sm:$0xf0]  ;;  %1339 = vrot.lane.b32.xlu0 %v1801_v39, %s4596_s25 }
 0x1e6   : > { %v1326_v37 = vpop.permute.xlu2 %1325  ;;  %2178 = vst.msk [vmem:[#allocation3 + $0x7c] sm:$0xf] %vm1397_vm5, %v2093_v31  ;;  %v4026_v20 = vor.u32 %v4318_v44, %v4023_v48  ;;  %v5722_v31 = vld [vmem:[%s6393_s5] ss:$0 sm:$0xff]  ;;  %v1001_v5 = vld [vmem:[#allocation2 + $0x191] sm:$0xff] }
 0x1e7   : > { %v1999_v48 = vld [vmem:[#allocation2 + $0x1d0] sm:$0xff] }
 0x1e8   : > { %3133 = vmatmul.bf16.gmra.mxu2 %v4026_v20  ;;  %v1033_v20 = vpack.c.bf16 %v1001_v5, %v1001_v5  ;;  %v2031_v40 = vpack.c.bf16 %v1999_v48, %v1999_v48 }
 0x1e9   : > { %1114 = vrot.lane.b32.xlu1 %v5609_v47, %s4595_s18  ;;  %v5702_v47 = vpack.c.bf16 %v1997_v58, %v1997_v58 }
 0x1eb   : > { %v1870_v6 = vpop.permute.xlu1 %1869  ;;  %v4033_v3 = vld [vmem:[#allocation3 + $0x78] sm:$0xf] }
 0x1ec   : > { %2338 = vrot.lane.b32.xlu2 %v5624_v63, %s4597_s26  ;;  %1954 = vst.msk [vmem:[#allocation3 + $0x88] sm:$0xf] %vm1172_vm4, %v1870_v6  ;;  %v1324_v33 = vpop.permute.xlu0 %1323 }
 0x1ed   : > { %1409 = vst.msk [vmem:[#allocation3 + $0x84] sm:$0xf] %vm1397_vm5, %v1324_v33  ;;  %2114 = vrot.lane.b32.xlu0 %v5702_v47, %s4596_s25  ;;  %v2225_v33 = vld [vmem:[#allocation2 + $0x211] sm:$0xff] }
 0x1ee   : > { %v2319_v13 = vpop.permute.xlu2 %2318  ;;  %1634 = vst.msk [vmem:[#allocation3 + $0x84] sm:$0xf] %vm1622_vm6, %v1549_v27 }
 0x1f1   : > { %2336 = vrot.lane.b32.xlu1 %v5698_v60, %s4597_s26 }
 0x1f3   : > { %v2317_v57 = vpop.permute.xlu1 %2316 }
 0x1f4   : > { %2108 = vrot.lane.b32.xlu2 %v5639_v16, %s4596_s25  ;;  %2402 = vst.msk [vmem:[#allocation3 + $0x7c] sm:$0xf] %vm1622_vm6, %v2317_v57  ;;  %v3114_v26 = vpop.f32.mrf.mxu2  ;;  %v1101_v8 = vpop.permute.xlu0 %1100 }
 0x1f5   : > { %v3115_v42 = vadd.f32 %v3114_v26, %v3025_v15  ;;  %1185 = vst.msk [vmem:[#allocation3 + $0x90] sm:$0xf] %vm1172_vm4, %v1101_v8  ;;  %v4322_v34 = vld [vmem:[#allocation3 + $0x80] sm:$0xf0]  ;;  %1116 = vrot.lane.b32.xlu0 %v5664_v46, %s4595_s18  ;;  %v5771_v26 = vpop.f32.mrf.mxu3 }
 0x1f6   : > { %v5696_v59 = vpop.permute.xlu2 %2096  ;;  %1410 = vst.msk [vmem:[#allocation3 + $0x90] sm:$0xf] %vm1397_vm5, %v1326_v37  ;;  %v4034_v0 = vor.u32 %v4322_v34, %v4033_v3 }
 0x1f7   : > { %v3204_v23 = vadd.f32 %v3203_v62, %v3115_v42  ;;  %v1259_v42 = vpack.c.bf16 %v1227_v1, %v1227_v1  ;;  %v1229_v1 = vld [vmem:[#allocation2 + $0x1e2] sm:$0xff] }
 0x1f8   : > { %3049 = vmatmul.bf16.gmra.mxu1 %v4034_v0  ;;  %v3208_v0 = vpop.f32.mrf.mxu0 }
 0x1f9   : > { %1562 = vrot.lane.b32.xlu1 %v5615_v4, %s4597_s26  ;;  %v3027_v4 = vpop.f32.mrf.mxu1  ;;  %v3287_v61 = vmul.f32 %v5722_v31, %v3204_v23 }
 0x1fb   : > { %v1103_v21 = vpop.permute.xlu1 %1102  ;;  %v3323_v52 = vadd.f32 %v5735_v55, %v3287_v61  ;;  %v4321_v35 = vld [vmem:[#allocation3 + $0x7c] sm:$0xf] }
 0x1fc   : > { %1564 = vrot.lane.b32.xlu2 %v5639_v16, %s4597_s26  ;;  %v906_v16 = vld [vmem:[#allocation2 + $0x1b0] sm:$0xff]  ;;  %1186 = vst.msk [vmem:[#allocation3 + $0x9c] sm:$0xf] %vm1172_vm4, %v1103_v21  ;;  %v3116_v18 = vpop.f32.mrf.mxu2  ;;  %v2095_v30 = vpop.permute.xlu0 %2094 }
 0x1fd   : > { %v938_v22 = vpack.c.bf16 %v906_v16, %v906_v16  ;;  %v3117_v51 = vadd.f32 %v3116_v18, %v3027_v4  ;;  %2179 = vst.msk [vmem:[#allocation3 + $0x88] sm:$0xf] %vm1397_vm5, %v2095_v30  ;;  %1343 = vrot.lane.b32.xlu0 %v5016_v45, %s4596_s25  ;;  %v3355_v9 = vmax.f32 %v3323_v52, 0.0  ;;  %v5785_v23 = vpop.f32.mrf.mxu3 }
 0x1fe   : > { %v5712_v12 = vpop.permute.xlu2 %1552  ;;  %2403 = vst.msk [vmem:[#allocation3 + $0x88] sm:$0xf] %vm1622_vm6, %v2319_v13  ;;  %v2223_v13 = vld [vmem:[#allocation2 + $0x1d1] sm:$0xff] }
 0x1ff   : > { %971 = vst.msk [vmem:[#allocation3 + $0x114] sm:$0xf] %vm947_vm3, %v938_v22  ;;  %v3206_v25 = vadd.f32 %v3205_v32, %v3117_v51  ;;  %v1775_v51 = vld [vmem:[#allocation2 + $0x1f2] sm:$0xff] }
 0x200   : > { %v3210_v52 = vpop.f32.mrf.mxu0 }
 0x201   : > { %1885 = vrot.lane.b32.xlu1 %v1257_v41, %s4595_s18  ;;  %v3288_v10 = vmul.f32 %v5722_v31, %v3206_v25 }
 0x203   : > { %v1551_v27 = vpop.permute.xlu1 %1550  ;;  %v3324_v14 = vadd.f32 %v5735_v55, %v3288_v10 }
 0x204   : > { %1341 = vrot.lane.b32.xlu2 %v1257_v41, %s4596_s25  ;;  %1635 = vst.msk [vmem:[#allocation3 + $0x90] sm:$0xf] %vm1622_vm6, %v1551_v27  ;;  %v1872_v36 = vpop.permute.xlu0 %1871  ;;  %v1774_v41 = vld [vmem:[#allocation2 + $0x1c2] sm:$0xff] }
 0x205   : > { %v3356_v7 = vmax.f32 %v3324_v14, 0.0  ;;  %1955 = vst.msk [vmem:[#allocation3 + $0x94] sm:$0xf] %vm1172_vm4, %v1872_v36  ;;  %v4035_v39 = vld [vmem:[#allocation3 + $0x84] sm:$0xf0]  ;;  %v3030_v34 = vpop.f32.mrf.mxu1  ;;  %v1806_v22 = vpack.c.bf16 %v1774_v41, %v1774_v41  ;;  %v1261_v41 = vpack.c.bf16 %v1229_v1, %v1229_v1 }
 0x206   : > { %v1330_v24 = vpop.permute.xlu2 %1329  ;;  %2180 = vst.msk [vmem:[#allocation3 + $0x94] sm:$0xf] %vm1397_vm5, %v5696_v59  ;;  %v4038_v43 = vor.u32 %v4321_v35, %v4035_v39  ;;  %v5762_v59 = vpack.c.bf16 %v2225_v33, %v2225_v33  ;;  %v5797_v35 = vpack.c.bf16 %v1775_v51, %v1775_v51 }
 0x207   : > { %v3387_v45 = vpack.c.bf16 %v3356_v7, %v3355_v9  ;;  %v1005_v9 = vld [vmem:[#allocation2 + $0x1f1] sm:$0xff] }
 0x208   : > { %3138 = vmatmul.bf16.gmra.mxu2 %v4038_v43  ;;  %1745 = vst.msk [vmem:[#allocation3 + $0x13c] sm:$0xf] %vm947_vm3, %v5762_v59  ;;  %v5805_v43 = vpack.c.bf16 %v1005_v9, %v1005_v9 }
 0x209   : > { %2332 = vrot.lane.b32.xlu1 %v5664_v46, %s4597_s26  ;;  %4259 = vmatmul.msk.bf16.vlgmr.msrb.gmra.mxu3 %vm365_vm1, %v3387_v45  ;;  %v2255_v46 = vpack.c.bf16 %v2223_v13, %v2223_v13  ;;  %v909_v45 = vld [vmem:[#allocation2 + $0x200] sm:$0xff]  ;;  %v1454_v13 = vld [vmem:[#allocation2 + $0x1f0] sm:$0xff] }
 0x20a   : > { %1743 = vst.msk [vmem:[#allocation3 + $0x124] sm:$0xf] %vm947_vm3, %v5805_v43 }
 0x20b   : > { %v1874_v44 = vpop.permute.xlu1 %1873  ;;  %v4045_v57 = vld [vmem:[#allocation3 + $0x90] sm:$0xf] }
 0x20c   : > { %1568 = vrot.lane.b32.xlu2 %v5021_v49, %s4597_s26  ;;  %v1805_v49 = vpack.c.bf16 %v1773_v17, %v1773_v17  ;;  %1956 = vst.msk [vmem:[#allocation3 + $0xa0] sm:$0xf] %vm1172_vm4, %v1874_v44  ;;  %v1328_v50 = vpop.permute.xlu0 %1327  ;;  %v2001_v44 = vld [vmem:[#allocation2 + $0x210] sm:$0xff] }
 0x20d   : > { %1411 = vst.msk [vmem:[#allocation3 + $0x9c] sm:$0xf] %vm1397_vm5, %v1328_v50  ;;  %v3032_v30 = vpop.f32.mrf.mxu1 }
 0x20e   : > { %v2323_v37 = vpop.permute.xlu2 %2322  ;;  %1891 = vrot.lane.b32.xlu0 %v1805_v49, %s4595_s18  ;;  %1636 = vst.msk [vmem:[#allocation3 + $0x9c] sm:$0xf] %vm1622_vm6, %v5712_v12 }
 0x211   : > { %1118 = vrot.lane.b32.xlu1 %v1033_v20, %s4595_s18 }
 0x213   : > { %v2321_v58 = vpop.permute.xlu1 %2320 }
 0x214   : > { %2116 = vrot.lane.b32.xlu2 %v2030_v28, %s4596_s25  ;;  %2404 = vst.msk [vmem:[#allocation3 + $0x94] sm:$0xf] %vm1622_vm6, %v2321_v58  ;;  %v1105_v15 = vpop.permute.xlu0 %1104  ;;  %v2002_v58 = vld [vmem:[#allocation2 + $0x220] sm:$0xff] }
 0x215   : > { %1187 = vst.msk [vmem:[#allocation3 + $0xa8] sm:$0xf] %vm1172_vm4, %v1105_v15  ;;  %v4325_v3 = vld [vmem:[#allocation3 + $0x98] sm:$0xf0] }
 0x216   : > { %v2101_v6 = vpop.permute.xlu2 %2100  ;;  %2118 = vrot.lane.b32.xlu0 %v2031_v40, %s4596_s25  ;;  %1412 = vst.msk [vmem:[#allocation3 + $0xa8] sm:$0xf] %vm1397_vm5, %v1330_v24  ;;  %v4046_v8 = vor.u32 %v4325_v3, %v4045_v57  ;;  %v5826_v40 = vpack.c.bf16 %v2001_v44, %v2001_v44  ;;  %v2227_v57 = vld [vmem:[#allocation2 + $0x231] sm:$0xff]  ;;  %v1004_v3 = vld [vmem:[#allocation2 + $0x1e1] sm:$0xff] }
 0x217   : > { %v5837_v15 = vpack.c.bf16 %v2227_v57, %v2227_v57 }
 0x218   : > { %3054 = vmatmul.bf16.gmra.mxu1 %v4046_v8 }
 0x219   : > { %1566 = vrot.lane.b32.xlu1 %v5027_v53, %s4597_s26  ;;  %1747 = vst.msk [vmem:[#allocation3 + $0x154] sm:$0xf] %vm947_vm3, %v5837_v15 }
 0x21b   : > { %v1107_v12 = vpop.permute.xlu1 %1106  ;;  %v4324_v24 = vld [vmem:[#allocation3 + $0x94] sm:$0xf] }
 0x21c   : > { %2342 = vrot.lane.b32.xlu2 %v2255_v46, %s4597_s26  ;;  %1188 = vst.msk [vmem:[#allocation3 + $0xb4] sm:$0xf] %vm1172_vm4, %v1107_v12  ;;  %v3119_v19 = vpop.f32.mrf.mxu2  ;;  %v2099_v21 = vpop.permute.xlu0 %2098 }
 0x21d   : > { %v3120_v16 = vadd.f32 %v3119_v19, %v3030_v34  ;;  %2181 = vst.msk [vmem:[#allocation3 + $0xa0] sm:$0xf] %vm1397_vm5, %v2099_v21  ;;  %v5803_v39 = vpop.f32.mrf.mxu3 }
 0x21e   : > { %v5769_v62 = vpop.permute.xlu2 %1556  ;;  %1120 = vrot.lane.b32.xlu0 %v5698_v60, %s4595_s18  ;;  %2405 = vst.msk [vmem:[#allocation3 + $0xa0] sm:$0xf] %vm1622_vm6, %v2323_v37  ;;  %v2000_v60 = vld [vmem:[#allocation2 + $0x200] sm:$0xff] }
 0x21f   : > { %v3209_v4 = vadd.f32 %v3208_v0, %v3120_v16  ;;  %v5794_v14 = vpack.c.bf16 %v2000_v60, %v2000_v60  ;;  %v1036_v0 = vpack.c.bf16 %v1004_v3, %v1004_v3  ;;  %v3213_v16 = vpop.f32.mrf.mxu0 }
 0x221   : > { %1893 = vrot.lane.b32.xlu1 %v1806_v22, %s4595_s18  ;;  %v3289_v32 = vmul.f32 %v5722_v31, %v3209_v4  ;;  %v2226_v22 = vld [vmem:[#allocation2 + $0x221] sm:$0xff]  ;;  %v910_v4 = vld [vmem:[#allocation2 + $0x210] sm:$0xff] }
 0x222   : > { %v942_v51 = vpack.c.bf16 %v910_v4, %v910_v4 }
 0x223   : > { %v1555_v18 = vpop.permute.xlu1 %1554  ;;  %v3325_v37 = vadd.f32 %v5735_v55, %v3289_v32 }
 0x224   : > { %1345 = vrot.lane.b32.xlu2 %v1259_v42, %s4596_s25  ;;  %1637 = vst.msk [vmem:[#allocation3 + $0xa8] sm:$0xf] %vm1622_vm6, %v1555_v18  ;;  %v3121_v61 = vpop.f32.mrf.mxu2  ;;  %v1876_v27 = vpop.permute.xlu0 %1875 }
 0x225   : > { %v3122_v25 = vadd.f32 %v3121_v61, %v3032_v30  ;;  %1957 = vst.msk [vmem:[#allocation3 + $0xac] sm:$0xf] %vm1172_vm4, %v1876_v27  ;;  %v4047_v29 = vld [vmem:[#allocation3 + $0x9c] sm:$0xf0]  ;;  %v3357_v50 = vmax.f32 %v3325_v37, 0.0  ;;  %v5860_v61 = vpack.c.bf16 %v2226_v22, %v2226_v22 }
 0x226   : > { %v5781_v53 = vpop.permute.xlu2 %2104  ;;  %1347 = vrot.lane.b32.xlu0 %v1805_v49, %s4596_s25  ;;  %2182 = vst.msk [vmem:[#allocation3 + $0xac] sm:$0xf] %vm1397_vm5, %v2101_v6  ;;  %v4050_v36 = vor.u32 %v4324_v24, %v4047_v29  ;;  %v2224_v49 = vld [vmem:[#allocation2 + $0x201] sm:$0xff]  ;;  %v941_v6 = vpack.c.bf16 %v909_v45, %v909_v45 }
 0x227   : > { %v3211_v17 = vadd.f32 %v3210_v52, %v3122_v25  ;;  %v5817_v5 = vpack.c.bf16 %v2224_v49, %v2224_v49  ;;  %v1776_v24 = vld [vmem:[#allocation2 + $0x202] sm:$0xff]  ;;  %1746 = vst.msk [vmem:[#allocation3 + $0x148] sm:$0xf] %vm947_vm3, %v5860_v61  ;;  %v3215_v9 = vpop.f32.mrf.mxu0 }
 0x228   : > { %3143 = vmatmul.bf16.gmra.mxu2 %v4050_v36  ;;  %974 = vst.msk [vmem:[#allocation3 + $0x138] sm:$0xf] %vm947_vm3, %v941_v6  ;;  %v5870_v52 = vpack.c.bf16 %v1776_v24, %v1776_v24 }
 0x229   : > { %2340 = vrot.lane.b32.xlu1 %v5717_v2, %s4597_s26  ;;  %v3290_v7 = vmul.f32 %v5722_v31, %v3211_v17  ;;  %1744 = vst.msk [vmem:[#allocation3 + $0x130] sm:$0xf] %vm947_vm3, %v5817_v5 }
 0x22a   : > { %975 = vst.msk [vmem:[#allocation3 + $0x144] sm:$0xf] %vm947_vm3, %v942_v51 }
 0x22b   : > { %v3326_v2 = vadd.f32 %v5735_v55, %v3290_v7  ;;  %v4057_v8 = vld [vmem:[#allocation3 + $0xa8] sm:$0xf]  ;;  %v3035_v21 = vpop.f32.mrf.mxu1 }
 0x22c   : > { %1572 = vrot.lane.b32.xlu2 %v2030_v28, %s4597_s26  ;;  %v1878_v28 = vpop.permute.xlu1 %1877  ;;  %v1332_v48 = vpop.permute.xlu0 %1331 }
 0x22d   : > { %1958 = vst.msk [vmem:[#allocation3 + $0xb8] sm:$0xf] %vm1172_vm4, %v1878_v28  ;;  %v3358_v20 = vmax.f32 %v3326_v2, 0.0  ;;  %v1777_v28 = vld [vmem:[#allocation2 + $0x212] sm:$0xff] }
 0x22e   : > { %v5792_v10 = vpop.permute.xlu2 %1560  ;;  %1895 = vrot.lane.b32.xlu0 %v5797_v35, %s4595_s18  ;;  %2183 = vst.msk [vmem:[#allocation3 + $0xb8] sm:$0xf] %vm1397_vm5, %v5291_v54 }
 0x22f   : > { %2407 = vst.msk [vmem:[#allocation3 + $0xb8] sm:$0xf] %vm1622_vm6, %v5215_v56  ;;  %v3388_v54 = vpack.c.bf16 %v3358_v20, %v3357_v50  ;;  %v5830_v56 = vpack.c.bf16 %v1454_v13, %v1454_v13  ;;  %v5888_v13 = vpack.c.bf16 %v1777_v28, %v1777_v28  ;;  %v3218_v1 = vpop.f32.mrf.mxu0 }
 0x230   : > { %1413 = vst.msk [vmem:[#allocation3 + $0xb4] sm:$0xf] %vm1397_vm5, %v1332_v48 }
 0x231   : > { %1638 = vst.msk [vmem:[#allocation3 + $0xb4] sm:$0xf] %vm1622_vm6, %v5769_v62  ;;  %1122 = vrot.lane.b32.xlu1 %v5624_v63, %s4595_s18  ;;  %4260 = vmatmul.msk.bf16.gmra.mxu3 %vm365_vm1, %v3388_v54  ;;  %v5843_v63 = vpop.f32.mrf.mxu3  ;;  %v5845_v62 = vpack.c.bf16 %v2002_v58, %v2002_v58 }
 0x232   : > { %973 = vst.msk [vmem:[#allocation3 + $0x12c] sm:$0xf] %vm947_vm3, %v5830_v56 }
 0x233   : > { %976 = vst.msk [vmem:[#allocation3 + $0x150] sm:$0xf] %vm947_vm3, %v5845_v62  ;;  %v3037_v7 = vpop.f32.mrf.mxu1 }
 0x234   : > { %2120 = vrot.lane.b32.xlu2 %v5794_v14, %s4596_s25  ;;  %v2325_v33 = vpop.permute.xlu1 %2324  ;;  %v1880_v42 = vpop.permute.xlu0 %1879 }
 0x235   : > { %2406 = vst.msk [vmem:[#allocation3 + $0xac] sm:$0xf] %vm1622_vm6, %v2325_v33 }
 0x236   : > { %v5822_v46 = vpop.permute.xlu2 %1337  ;;  %2122 = vrot.lane.b32.xlu0 %v5826_v40, %s4596_s25  ;;  %1959 = vst.msk [vmem:[#allocation3 + $0xc4] sm:$0xf] %vm1172_vm4, %v1880_v42  ;;  %v4059_v30 = vld [vmem:[#allocation3 + $0xb4] sm:$0xf0] }
 0x237   : > { %2184 = vst.msk [vmem:[#allocation3 + $0xc4] sm:$0xf] %vm1397_vm5, %v5781_v53 }
 0x238   : > { %v4328_v34 = vld [vmem:[#allocation3 + $0xb0] sm:$0xf0] }
 0x239   : > { %v4058_v19 = vor.u32 %v4328_v34, %v4057_v8  ;;  %1570 = vrot.lane.b32.xlu1 %v5702_v47, %s4597_s26  ;;  %v5868_v27 = vpop.f32.mrf.mxu3  ;;  %v2003_v8 = vld [vmem:[#allocation2 + $0x230] sm:$0xff] }
 0x23b   : > { %3059 = vmatmul.bf16.gmra.mxu1 %v4058_v19 }
 0x23c   : > { %2346 = vrot.lane.b32.xlu2 %v5762_v59, %s4597_s26  ;;  %v1111_v18 = vpop.permute.xlu1 %1110  ;;  %v4327_v60 = vld [vmem:[#allocation3 + $0xac] sm:$0xf]  ;;  %v1336_v25 = vpop.permute.xlu0 %1335 }
 0x23d   : > { %1190 = vst.msk [vmem:[#allocation3 + $0xcc] sm:$0xf] %vm1172_vm4, %v1111_v18  ;;  %v4062_v53 = vor.u32 %v4327_v60, %v4059_v30  ;;  %v3124_v47 = vpop.f32.mrf.mxu2  ;;  %v2229_v60 = vld [vmem:[#allocation2 + $0x251] sm:$0xff] }
 0x23e   : > { %v5854_v12 = vpop.permute.xlu2 %2330  ;;  %1124 = vrot.lane.b32.xlu0 %v1036_v0, %s4595_s18  ;;  %v3125_v32 = vadd.f32 %v3124_v47, %v3035_v21  ;;  %1415 = vst.msk [vmem:[#allocation3 + $0xcc] sm:$0xf] %vm1397_vm5, %v1336_v25  ;;  %v5907_v21 = vpack.c.bf16 %v2003_v8, %v2003_v8  ;;  %v5917_v30 = vpack.c.bf16 %v2229_v60, %v2229_v60  ;;  %v3220_v47 = vpop.f32.mrf.mxu0 }
 0x23f   : > { %3148 = vmatmul.bf16.gmra.mxu2 %v4062_v53  ;;  %1640 = vst.msk [vmem:[#allocation3 + $0xcc] sm:$0xf] %vm1622_vm6, %v5792_v10 }
 0x240   : > { %v3214_v17 = vadd.f32 %v3213_v16, %v3125_v32  ;;  %1749 = vst.msk [vmem:[#allocation3 + $0x16c] sm:$0xf] %vm947_vm3, %v5917_v30 }
 0x241   : > { %1897 = vrot.lane.b32.xlu1 %v5870_v52, %s4595_s18  ;;  %v5890_v48 = vpop.f32.mrf.mxu3 }
 0x242   : > { %v3291_v49 = vmul.f32 %v5722_v31, %v3214_v17  ;;  %v2228_v17 = vld [vmem:[#allocation2 + $0x241] sm:$0xff] }
 0x244   : > { %1349 = vrot.lane.b32.xlu2 %v1261_v41, %s4596_s25  ;;  %v1559_v36 = vpop.permute.xlu1 %1558  ;;  %v1113_v45 = vpop.permute.xlu0 %1112  ;;  %v3327_v50 = vadd.f32 %v5735_v55, %v3291_v49 }
 0x245   : > { %1639 = vst.msk [vmem:[#allocation3 + $0xc0] sm:$0xf] %vm1622_vm6, %v1559_v36  ;;  %v3126_v37 = vpop.f32.mrf.mxu2  ;;  %v3040_v33 = vpop.f32.mrf.mxu1  ;;  %v912_v36 = vld [vmem:[#allocation2 + $0x230] sm:$0xff] }
 0x246   : > { %v5872_v29 = vpop.permute.xlu2 %2338  ;;  %1351 = vrot.lane.b32.xlu0 %v5797_v35, %s4596_s25  ;;  %v3127_v10 = vadd.f32 %v3126_v37, %v3037_v7  ;;  %1191 = vst.msk [vmem:[#allocation3 + $0xd8] sm:$0xf] %vm1172_vm4, %v1113_v45  ;;  %v4331_v54 = vld [vmem:[#allocation3 + $0xc8] sm:$0xf0]  ;;  %v3359_v34 = vmax.f32 %v3327_v50, 0.0  ;;  %v944_v45 = vpack.c.bf16 %v912_v36, %v912_v36  ;;  %v2230_v36 = vld [vmem:[#allocation2 + $0x261] sm:$0xff] }
 0x247   : > { %1416 = vst.msk [vmem:[#allocation3 + $0xd8] sm:$0xf] %vm1397_vm5, %v5822_v46 }
 0x248   : > { %v3216_v44 = vadd.f32 %v3215_v9, %v3127_v10  ;;  %v5932_v10 = vpack.c.bf16 %v2228_v17, %v2228_v17  ;;  %977 = vst.msk [vmem:[#allocation3 + $0x15c] sm:$0xf] %vm947_vm3, %v944_v45  ;;  %v1780_v45 = vld [vmem:[#allocation2 + $0x242] sm:$0xff] }
 0x249   : > { %2344 = vrot.lane.b32.xlu1 %v5817_v5, %s4597_s26  ;;  %v5914_v4 = vpop.f32.mrf.mxu3 }
 0x24a   : > { %v3292_v35 = vmul.f32 %v5722_v31, %v3216_v44  ;;  %1748 = vst.msk [vmem:[#allocation3 + $0x160] sm:$0xf] %vm947_vm3, %v5932_v10 }
 0x24c   : > { %1576 = vrot.lane.b32.xlu2 %v5794_v14, %s4597_s26  ;;  %v2004_v14 = vld [vmem:[#allocation2 + $0x240] sm:$0xff]  ;;  %v1882_v20 = vpop.permute.xlu1 %1881  ;;  %v3328_v57 = vadd.f32 %v5735_v55, %v3292_v35  ;;  %v2107_v42 = vpop.permute.xlu0 %2106 }
 0x24d   : > { %v4069_v6 = vld [vmem:[#allocation3 + $0xc0] sm:$0xf]  ;;  %v5896_v58 = vpack.c.bf16 %v2004_v14, %v2004_v14  ;;  %1960 = vst.msk [vmem:[#allocation3 + $0xd0] sm:$0xf] %vm1172_vm4, %v1882_v20  ;;  %v3129_v3 = vpop.f32.mrf.mxu2 }
 0x24e   : > { %v2109_v2 = vpop.permute.xlu2 %2108  ;;  %v4070_v46 = vor.u32 %v4331_v54, %v4069_v6  ;;  %1899 = vrot.lane.b32.xlu0 %v5888_v13, %s4595_s18  ;;  %v3360_v41 = vmax.f32 %v3328_v57, 0.0  ;;  %v3130_v0 = vadd.f32 %v3129_v3, %v3040_v33  ;;  %2185 = vst.msk [vmem:[#allocation3 + $0xd0] sm:$0xf] %vm1397_vm5, %v2107_v42  ;;  %v1779_v33 = vld [vmem:[#allocation2 + $0x232] sm:$0xff] }
 0x24f   : > { %978 = vst.msk [vmem:[#allocation3 + $0x168] sm:$0xf] %vm947_vm3, %v5896_v58  ;;  %v5964_v3 = vpack.c.bf16 %v1779_v33, %v1779_v33 }
 0x250   : > { %3064 = vmatmul.bf16.gmra.mxu1 %v4070_v46  ;;  %v3389_v16 = vpack.c.bf16 %v3360_v41, %v3359_v34  ;;  %2409 = vst.msk [vmem:[#allocation3 + $0xd0] sm:$0xf] %vm1622_vm6, %v5854_v12  ;;  %v3219_v22 = vadd.f32 %v3218_v1, %v3130_v0  ;;  %v3042_v12 = vpop.f32.mrf.mxu1  ;;  %v2005_v34 = vld [vmem:[#allocation2 + $0x250] sm:$0xff] }
 0x251   : > { %1126 = vrot.lane.b32.xlu1 %v5805_v43, %s4595_s18 }
 0x252   : > { %4261 = vmatmul.msk.bf16.gmra.mxu3 %vm365_vm1, %v3389_v16  ;;  %v3293_v43 = vmul.f32 %v5722_v31, %v3219_v22 }
 0x254   : > { %2124 = vrot.lane.b32.xlu2 %v5845_v62, %s4596_s25  ;;  %v2329_v18 = vpop.permute.xlu1 %2328  ;;  %v1884_v53 = vpop.permute.xlu0 %1883  ;;  %v3329_v7 = vadd.f32 %v5735_v55, %v3293_v43 }
 0x255   : > { %2408 = vst.msk [vmem:[#allocation3 + $0xc4] sm:$0xf] %vm1622_vm6, %v2329_v18  ;;  %v3131_v51 = vpop.f32.mrf.mxu2 }
 0x256   : > { %v1565_v19 = vpop.permute.xlu2 %1564  ;;  %2126 = vrot.lane.b32.xlu0 %v5907_v21, %s4596_s25  ;;  %v3132_v24 = vadd.f32 %v3131_v51, %v3042_v12  ;;  %1961 = vst.msk [vmem:[#allocation3 + $0xdc] sm:$0xf] %vm1172_vm4, %v1884_v53  ;;  %v3361_v50 = vmax.f32 %v3329_v7, 0.0 }
 0x257   : > { %2186 = vst.msk [vmem:[#allocation3 + $0xdc] sm:$0xf] %vm1397_vm5, %v2109_v2  ;;  %v4071_v49 = vld [vmem:[#allocation3 + $0xcc] sm:$0xf0]  ;;  %v1778_v2 = vld [vmem:[#allocation2 + $0x222] sm:$0xff] }
 0x258   : > { %v3221_v25 = vadd.f32 %v3220_v47, %v3132_v24  ;;  %v5945_v6 = vpack.c.bf16 %v1778_v2, %v1778_v2 }
 0x259   : > { %1574 = vrot.lane.b32.xlu1 %v5830_v56, %s4597_s26  ;;  %v5939_v56 = vpop.f32.mrf.mxu3 }
 0x25a   : > { %v3294_v9 = vmul.f32 %v5722_v31, %v3221_v25 }
 0x25c   : > { %2350 = vrot.lane.b32.xlu2 %v5837_v15, %s4597_s26  ;;  %v1115_v37 = vpop.permute.xlu1 %1114  ;;  %v4330_v28 = vld [vmem:[#allocation3 + $0xc4] sm:$0xf]  ;;  %v3330_v14 = vadd.f32 %v5735_v55, %v3294_v9  ;;  %v1340_v35 = vpop.permute.xlu0 %1339  ;;  %v914_v9 = vld [vmem:[#allocation2 + $0x250] sm:$0xff] }
 0x25d   : > { %1192 = vst.msk [vmem:[#allocation3 + $0xe4] sm:$0xf] %vm1172_vm4, %v1115_v37  ;;  %v4074_v44 = vor.u32 %v4330_v28, %v4071_v49  ;;  %v6001_v28 = vpack.c.bf16 %v2230_v36, %v2230_v36  ;;  %v946_v49 = vpack.c.bf16 %v914_v9, %v914_v9 }
 0x25e   : > { %v1342_v32 = vpop.permute.xlu2 %1341  ;;  %1128 = vrot.lane.b32.xlu0 %v5817_v5, %s4595_s18  ;;  %v3362_v20 = vmax.f32 %v3330_v14, 0.0  ;;  %1417 = vst.msk [vmem:[#allocation3 + $0xe4] sm:$0xf] %vm1397_vm5, %v1340_v35  ;;  %v6012_v35 = vpack.c.bf16 %v1780_v45, %v1780_v45 }
 0x25f   : > { %3153 = vmatmul.bf16.gmra.mxu2 %v4074_v44  ;;  %1642 = vst.msk [vmem:[#allocation3 + $0xe4] sm:$0xf] %vm1622_vm6, %v1565_v19  ;;  %v5977_v19 = vpack.c.bf16 %v2005_v34, %v2005_v34  ;;  %v6042_v34 = vld [vmem:[%s6396_s8] ss:$0 sm:$0xff] }
 0x260   : > { %v3390_v5 = vpack.c.bf16 %v3362_v20, %v3361_v50  ;;  %1750 = vst.msk [vmem:[#allocation3 + $0x178] sm:$0xf] %vm947_vm3, %v6001_v28 }
 0x261   : > { %1901 = vrot.lane.b32.xlu1 %v5945_v6, %s4595_s18  ;;  %v5959_v57 = vpop.f32.mrf.mxu3  ;;  %979 = vst.msk [vmem:[#allocation3 + $0x174] sm:$0xf] %vm947_vm3, %v946_v49 }
 0x262   : > { %4262 = vmatmul.msk.bf16.gmra.mxu3 %vm365_vm1, %v3390_v5 }
 0x264   : > { %1353 = vrot.lane.b32.xlu2 %v5870_v52, %s4596_s25  ;;  %v2337_v52 = vpop.permute.xlu1 %2336  ;;  %v2115_v46 = vpop.permute.xlu0 %2114 }
 0x265   : > { %2412 = vst.msk [vmem:[#allocation3 + $0xf4] sm:$0xf] %vm1622_vm6, %v2337_v52 }
 0x266   : > { %v5947_v54 = vpop.permute.xlu2 %1568  ;;  %1355 = vrot.lane.b32.xlu0 %v5888_v13, %s4596_s25  ;;  %2189 = vst.msk [vmem:[#allocation3 + $0x100] sm:$0xf] %vm1397_vm5, %v2115_v46  ;;  %v3223_v13 = vpop.f32.mrf.mxu0  ;;  %v4334_v12 = vld [vmem:[#allocation3 + $0xe0] sm:$0xf0] }
 0x267   : > { %2413 = vst.msk [vmem:[#allocation3 + $0x100] sm:$0xf] %vm1622_vm6, %v5872_v29  ;;  %v2006_v46 = vld [vmem:[#allocation2 + $0x260] sm:$0xff] }
 0x269   : > { %2348 = vrot.lane.b32.xlu1 %v5860_v61, %s4597_s26  ;;  %v5979_v16 = vpop.f32.mrf.mxu3 }
 0x26b   : > { %v3134_v42 = vpop.f32.mrf.mxu2 }
 0x26c   : > { %1580 = vrot.lane.b32.xlu2 %v5845_v62, %s4597_s26  ;;  %v1563_v8 = vpop.permute.xlu1 %1562  ;;  %v3045_v62 = vpop.f32.mrf.mxu1  ;;  %v4336_v36 = vld [vmem:[#allocation3 + $0xf4] sm:$0xf] }
 0x26d   : > { %1641 = vst.msk [vmem:[#allocation3 + $0xd8] sm:$0xf] %vm1622_vm6, %v1563_v8  ;;  %v1117_v41 = vpop.permute.xlu0 %1116  ;;  %v3135_v29 = vadd.f32 %v3134_v42, %v3045_v62 }
 0x26e   : > { %v2117_v1 = vpop.permute.xlu2 %2116  ;;  %1903 = vrot.lane.b32.xlu0 %v5964_v3, %s4595_s18  ;;  %1193 = vst.msk [vmem:[#allocation3 + $0xf0] sm:$0xf] %vm1172_vm4, %v1117_v41  ;;  %v4095_v9 = vld [vmem:[#allocation3 + $0xfc] sm:$0xf0] }
 0x26f   : > { %1418 = vst.msk [vmem:[#allocation3 + $0xf0] sm:$0xf] %vm1397_vm5, %v1342_v32  ;;  %v3224_v22 = vadd.f32 %v3223_v13, %v3135_v29  ;;  %v3225_v32 = vpop.f32.mrf.mxu0  ;;  %v6033_v13 = vpack.c.bf16 %v2006_v46, %v2006_v46  ;;  %v6053_v29 = vld [vmem:[%s6397_s9] ss:$0 sm:$0xff] }
 0x271   : > { %1130 = vrot.lane.b32.xlu1 %v5762_v59, %s4595_s18  ;;  %v3295_v59 = vmul.f32 %v5722_v31, %v3224_v22  ;;  %v5998_v7 = vpop.f32.mrf.mxu3 }
 0x273   : > { %v3136_v53 = vpop.f32.mrf.mxu2 }
 0x274   : > { %2128 = vrot.lane.b32.xlu2 %v5896_v58, %s4596_s25  ;;  %v1886_v18 = vpop.permute.xlu1 %1885  ;;  %v4081_v60 = vld [vmem:[#allocation3 + $0xd8] sm:$0xf]  ;;  %v3047_v43 = vpop.f32.mrf.mxu1 }
 0x275   : > { %1962 = vst.msk [vmem:[#allocation3 + $0xe8] sm:$0xf] %vm1172_vm4, %v1886_v18  ;;  %v4082_v51 = vor.u32 %v4334_v12, %v4081_v60  ;;  %v1344_v24 = vpop.permute.xlu0 %1343  ;;  %v3137_v47 = vadd.f32 %v3136_v53, %v3047_v43  ;;  %v2231_v18 = vld [vmem:[#allocation2 + $0x271] sm:$0xff] }
 0x276   : > { %v5973_v0 = vpop.permute.xlu2 %2342  ;;  %2130 = vrot.lane.b32.xlu0 %v5977_v19, %s4596_s25  ;;  %2187 = vst.msk [vmem:[#allocation3 + $0xe8] sm:$0xf] %vm1397_vm5, %v5377_v11  ;;  %v2007_v60 = vld [vmem:[#allocation2 + $0x270] sm:$0xff] }
 0x277   : > { %2411 = vst.msk [vmem:[#allocation3 + $0xe8] sm:$0xf] %vm1622_vm6, %v5261_v38  ;;  %3069 = vmatmul.bf16.gmra.mxu1 %v4082_v51  ;;  %v3226_v17 = vadd.f32 %v3225_v32, %v3137_v47  ;;  %v3331_v38 = vadd.f32 %v5735_v55, %v3295_v59  ;;  %v3228_v41 = vpop.f32.mrf.mxu0  ;;  %v907_v47 = vld [vmem:[#allocation2 + $0x1e0] sm:$0xff]  ;;  %v2263_v32 = vpack.c.bf16 %v2231_v18, %v2231_v18 }
 0x279   : > { %1578 = vrot.lane.b32.xlu1 %v5826_v40, %s4597_s26  ;;  %v3296_v11 = vmul.f32 %v5722_v31, %v3226_v17  ;;  %v3363_v2 = vmax.f32 %v3331_v38, 0.0  ;;  %v6026_v33 = vpop.f32.mrf.mxu3  ;;  %v2039_v17 = vpack.c.bf16 %v2007_v60, %v2007_v60 }
 0x27b   : > { %v3332_v40 = vadd.f32 %v5735_v55, %v3296_v11  ;;  %v939_v11 = vpack.c.bf16 %v907_v47, %v907_v47 }
 0x27c   : > { %2354 = vrot.lane.b32.xlu2 %v5917_v30, %s4597_s26  ;;  %v2333_v37 = vpop.permute.xlu1 %2332  ;;  %v3050_v42 = vpop.f32.mrf.mxu1 }
 0x27d   : > { %2410 = vst.msk [vmem:[#allocation3 + $0xdc] sm:$0xf] %vm1622_vm6, %v2333_v37  ;;  %v3364_v14 = vmax.f32 %v3332_v40, 0.0 }
 0x27e   : > { %v5993_v25 = vpop.permute.xlu2 %1345  ;;  %1132 = vrot.lane.b32.xlu0 %v5860_v61, %s4595_s18  ;;  %v4083_v5 = vld [vmem:[#allocation3 + $0xe4] sm:$0xf0]  ;;  %972 = vst.msk [vmem:[#allocation3 + $0x120] sm:$0xf] %vm947_vm3, %v939_v11 }
 0x27f   : > { %v3391_v20 = vpack.c.bf16 %v3364_v14, %v3363_v2  ;;  %v4098_v2 = vor.u32 %v4336_v36, %v4095_v9  ;;  %v3230_v46 = vpop.f32.mrf.mxu0 }
 0x280   : > { %v1892_v44 = vpop.permute.xlu0 %1891 }
 0x281   : > { %1965 = vst.msk [vmem:[#allocation3 + $0x10c] sm:$0xf] %vm1172_vm4, %v1892_v44  ;;  %1905 = vrot.lane.b32.xlu1 %v6012_v35, %s4595_s18  ;;  %4263 = vmatmul.msk.bf16.gmra.mxu3 %vm365_vm1, %v3391_v20 }
 0x282   : > { %2190 = vst.msk [vmem:[#allocation3 + $0x10c] sm:$0xf] %vm1397_vm5, %v2117_v1  ;;  %v1781_v1 = vld [vmem:[#allocation2 + $0x252] sm:$0xff] }
 0x284   : > { %1357 = vrot.lane.b32.xlu2 %v5945_v6, %s4596_s25  ;;  %v1119_v61 = vpop.permute.xlu1 %1118  ;;  %v4333_v6 = vld [vmem:[#allocation3 + $0xdc] sm:$0xf] }
 0x285   : > { %1194 = vst.msk [vmem:[#allocation3 + $0xfc] sm:$0xf] %vm1172_vm4, %v1119_v61  ;;  %v4086_v52 = vor.u32 %v4333_v6, %v4083_v5 }
 0x286   : > { %v6014_v50 = vpop.permute.xlu2 %1572  ;;  %1359 = vrot.lane.b32.xlu0 %v5964_v3, %s4596_s25  ;;  %1419 = vst.msk [vmem:[#allocation3 + $0xfc] sm:$0xf] %vm1397_vm5, %v1344_v24 }
 0x287   : > { %1644 = vst.msk [vmem:[#allocation3 + $0xfc] sm:$0xf] %vm1622_vm6, %v5947_v54  ;;  %3158 = vmatmul.bf16.gmra.mxu2 %v4086_v52  ;;  %v4377_v54 = vld [vmem:[%s4731_s21] sm:$0xff]  }
 0x288   : > { %v2119_v8 = vpop.permute.xlu0 %2118  ;;  %v4378_v59 = vunpack.c.l.bf16 %v4377_v54 }
 0x289   : > { %2352 = vrot.lane.b32.xlu1 %v5932_v10, %s4597_s26 }
 0x28b   : > { %v3139_v22 = vpop.f32.mrf.mxu2 }
 0x28c   : > { %1584 = vrot.lane.b32.xlu2 %v5896_v58, %s4597_s26  ;;  %v6035_v58 = vpack.c.bf16 %v1781_v1, %v1781_v1  ;;  %v1567_v3 = vpop.permute.xlu1 %1566  ;;  %v3476_v12 = vpop.f32.mrf.mxu3  ;;  %v3140_v43 = vadd.f32 %v3139_v22, %v3050_v42 }
 0x28d   : > { %1643 = vst.msk [vmem:[#allocation3 + $0xf0] sm:$0xf] %vm1622_vm6, %v1567_v3  ;;  %v3560_v53 = vmul.f32 %v6042_v34, %v3476_v12  ;;  %v1782_v12 = vld [vmem:[#allocation2 + $0x262] sm:$0xff] }
 0x28e   : > { %v6031_v62 = vpop.permute.xlu2 %2120  ;;  %1907 = vrot.lane.b32.xlu0 %v6035_v58, %s4595_s18  ;;  %v3229_v37 = vadd.f32 %v3228_v41, %v3140_v43  ;;  %v4337_v40 = vld [vmem:[#allocation3 + $0xf8] sm:$0xf0] }
 0x28f   : > { %v3596_v38 = vadd.f32 %v6053_v29, %v3560_v53 }
 0x290   : > { %v1121_v51 = vpop.permute.xlu0 %1120  ;;  %v3297_v61 = vmul.f32 %v5722_v31, %v3229_v37 }
 0x291   : > { %1195 = vst.msk [vmem:[#allocation3 + $0x108] sm:$0xf] %vm1172_vm4, %v1121_v51  ;;  %1134 = vrot.lane.b32.xlu1 %v5837_v15, %s4595_s18  ;;  %v3692_v44 = vadd.f32 %v4378_v59, %v3596_v38  ;;  %v3052_v15 = vpop.f32.mrf.mxu1  ;;  %v1814_v59 = vpack.c.bf16 %v1782_v12, %v1782_v12 }
 0x292   : > { %1420 = vst.msk [vmem:[#allocation3 + $0x108] sm:$0xf] %vm1397_vm5, %v5993_v25  ;;  %v3333_v22 = vadd.f32 %v5735_v55, %v3297_v61 }
 0x293   : > { %v3724_v14 = vmax.f32 %v3692_v44, 0.0  ;;  %v3141_v20 = vpop.f32.mrf.mxu2  ;;  %v4440_v44 = vld [vmem:[%s4731_s21 + $0x8] sm:$0xff]  }
 0x294   : > { %2132 = vrot.lane.b32.xlu2 %v6033_v13, %s4596_s25  ;;  %v1894_v49 = vpop.permute.xlu1 %1893  ;;  %v4093_v45 = vld [vmem:[#allocation3 + $0xf0] sm:$0xf]  ;;  %v3478_v6 = vpop.f32.mrf.mxu3  ;;  %v3142_v52 = vadd.f32 %v3141_v20, %v3052_v15  ;;  %v3365_v43 = vmax.f32 %v3333_v22, 0.0 }
 0x295   : > { %1966 = vst.msk [vmem:[#allocation3 + $0x118] sm:$0xf] %vm1172_vm4, %v1894_v49  ;;  %v4094_v25 = vor.u32 %v4337_v40, %v4093_v45  ;;  %v3561_v1 = vmul.f32 %v6042_v34, %v3478_v6 }
 0x296   : > { %v6057_v24 = vpop.permute.xlu2 %2346  ;;  %2134 = vrot.lane.b32.xlu0 %v2039_v17, %s4596_s25  ;;  %2191 = vst.msk [vmem:[#allocation3 + $0x118] sm:$0xf] %vm1397_vm5, %v2119_v8  ;;  %v4379_v8 = vunpack.c.h.bf16 %v4377_v54  ;;  %v3231_v42 = vadd.f32 %v3230_v46, %v3142_v52 }
 0x297   : > { %2415 = vst.msk [vmem:[#allocation3 + $0x118] sm:$0xf] %vm1622_vm6, %v5973_v0  ;;  %3074 = vmatmul.bf16.gmra.mxu1 %v4094_v25  ;;  %3163 = vmatmul.bf16.gmra.mxu2 %v4098_v2  ;;  %v3597_v0 = vadd.f32 %v6053_v29, %v3561_v1 }
 0x298   : > { %v1348_v5 = vpop.permute.xlu0 %1347  ;;  %3756 = vst [vmem:[%s6075_s29] sm:$0xff] %v3724_v14  ;;  %v3298_v41 = vmul.f32 %v5722_v31, %v3231_v42 }
 0x299   : > { %1582 = vrot.lane.b32.xlu1 %v5907_v21, %s4597_s26  ;;  %v3693_v60 = vadd.f32 %v4379_v8, %v3597_v0  ;;  %v3055_v9 = vpop.f32.mrf.mxu1 }
 0x29a   : > { %v3334_v21 = vadd.f32 %v5735_v55, %v3298_v41 }
 0x29b   : > { %v3725_v54 = vmax.f32 %v3693_v60, 0.0 }
 0x29c   : > { %2358 = vrot.lane.b32.xlu2 %v2263_v32, %s4597_s26  ;;  %v2341_v18 = vpop.permute.xlu1 %2340  ;;  %v3366_v53 = vmax.f32 %v3334_v21, 0.0  ;;  %v4383_v21 = vunpack.c.h.bf16 %v4440_v44 }
 0x29d   : > { %2414 = vst.msk [vmem:[#allocation3 + $0x10c] sm:$0xf] %vm1622_vm6, %v2341_v18 }
 0x29e   : > { %v1350_v3 = vpop.permute.xlu2 %1349  ;;  %1136 = vrot.lane.b32.xlu0 %v5932_v10, %s4595_s18  ;;  %3757 = vst [vmem:[%s6075_s29 + $0x8] sm:$0xff] %v3725_v54  ;;  %v3392_v32 = vpack.c.bf16 %v3366_v53, %v3365_v43  ;;  %v4107_v17 = vld [vmem:[#allocation3 + $0x114] sm:$0xf0] }
 0x2a0   : > { %v1896_v51 = vpop.permute.xlu0 %1895  ;;  %4264 = vmatmul.msk.bf16.gmra.mxu3 %vm365_vm1, %v3392_v32 }
 0x2a1   : > { %1967 = vst.msk [vmem:[#allocation3 + $0x124] sm:$0xf] %vm1172_vm4, %v1896_v51  ;;  %1909 = vrot.lane.b32.xlu1 %v1814_v59, %s4595_s18  ;;  %v3057_v2 = vpop.f32.mrf.mxu1 }
 0x2a2   : > { %2192 = vst.msk [vmem:[#allocation3 + $0x124] sm:$0xf] %vm1397_vm5, %v6031_v62 }
 0x2a4   : > { %1361 = vrot.lane.b32.xlu2 %v6012_v35, %s4596_s25  ;;  %v1123_v10 = vpop.permute.xlu1 %1122  ;;  %v4339_v35 = vld [vmem:[#allocation3 + $0x10c] sm:$0xf] }
 0x2a5   : > { %1196 = vst.msk [vmem:[#allocation3 + $0x114] sm:$0xf] %vm1172_vm4, %v1123_v10  ;;  %v4110_v36 = vor.u32 %v4339_v35, %v4107_v17 }
 0x2a6   : > { %v6091_v47 = vpop.permute.xlu2 %1576  ;;  %1363 = vrot.lane.b32.xlu0 %v6035_v58, %s4596_s25  ;;  %1421 = vst.msk [vmem:[#allocation3 + $0x114] sm:$0xf] %vm1397_vm5, %v1348_v5  ;;  %v4382_v5 = vunpack.c.l.bf16 %v4440_v44  ;;  %s4550_s25 = scalar_lea.hbm %s6398_s10, 1024 }
 0x2a7   : > { %1646 = vst.msk [vmem:[#allocation3 + $0x114] sm:$0xf] %vm1622_vm6, %v6014_v50  ;;  %3168 = vmatmul.bf16.gmra.mxu2 %v4110_v36 }
 0x2a8   : > { %v2123_v62 = vpop.permute.xlu0 %2122 }
 0x2a9   : > { %2356 = vrot.lane.b32.xlu1 %v6001_v28, %s4597_s26 }
 0x2ab   : > { %v3144_v37 = vpop.f32.mrf.mxu2 }
 0x2ac   : > { %1588 = vrot.lane.b32.xlu2 %v6033_v13, %s4597_s26  ;;  %v1571_v38 = vpop.permute.xlu1 %1570  ;;  %v3233_v13 = vpop.f32.mrf.mxu0  ;;  %v3145_v58 = vadd.f32 %v3144_v37, %v3055_v9 }
 0x2ad   : > { %1645 = vst.msk [vmem:[#allocation3 + $0x108] sm:$0xf] %vm1622_vm6, %v1571_v38 }
 0x2ae   : > { %v2125_v11 = vpop.permute.xlu2 %2124  ;;  %v3234_v50 = vadd.f32 %v3233_v13, %v3145_v58  ;;  %v4340_v40 = vld [vmem:[#allocation3 + $0x110] sm:$0xf0] }
 0x2b0   : > { %v1125_v49 = vpop.permute.xlu0 %1124  ;;  %v3299_v61 = vmul.f32 %v5722_v31, %v3234_v50 }
 0x2b1   : > { %1197 = vst.msk [vmem:[#allocation3 + $0x120] sm:$0xf] %vm1172_vm4, %v1125_v49  ;;  %1138 = vrot.lane.b32.xlu1 %v5917_v30, %s4595_s18  ;;  %s4375_s18 = sshll.u32 %s4676_s17, 8  ;;  %s3789_s17 = scalar_lea.sflag [#allocation5], %s353_s27 }
 0x2b2   : > { %1422 = vst.msk [vmem:[#allocation3 + $0x120] sm:$0xf] %vm1397_vm5, %v1350_v3  ;;  %v3335_v3 = vadd.f32 %v5735_v55, %v3299_v61  ;;  %s3801_s30 = scalar_lea.hbm %s6398_s10, %s4375_s18 }
 0x2b3   : > { %v3146_v20 = vpop.f32.mrf.mxu2  ;;  %s3804_s11 = sshll.u32 %s3801_s30, 4  ;;  %s3805_s11 = int_to_ptr.hbm [resolvable:$true] %s3804_s11 }
 0x2b4   : > { %v1898_v45 = vpop.permute.xlu1 %1897  ;;  %v4105_v28 = vld [vmem:[#allocation3 + $0x108] sm:$0xf]  ;;  %v3481_v14 = vpop.f32.mrf.mxu3  ;;  %v3147_v46 = vadd.f32 %v3146_v20, %v3057_v2  ;;  %v3367_v60 = vmax.f32 %v3335_v3, 0.0  ;;  %s4544_s12 = sshra.s32 %s3805_s11, 4  ;;  %s4545_s12 = int_to_ptr.hbm [resolvable:$true] %s4544_s12 }
 0x2b5   : > { %1968 = vst.msk [vmem:[#allocation3 + $0x130] sm:$0xf] %vm1172_vm4, %v1898_v45  ;;  %v4106_v25 = vor.u32 %v4340_v40, %v4105_v28  ;;  %v3235_v30 = vpop.f32.mrf.mxu0  ;;  %v3562_v6 = vmul.f32 %v6042_v34, %v3481_v14  ;;  %s4546_s20 = scalar_lea.hbm %s4545_s12, 256  ;;  %p4551_p0 = scmp.lt.s32.totalorder %s4545_s12, %s6398_s10 }
 0x2b6   : > { %v6115_v15 = vpop.permute.xlu2 %2350  ;;  %2193 = vst.msk [vmem:[#allocation3 + $0x130] sm:$0xf] %vm1397_vm5, %v2123_v62  ;;  %v3236_v8 = vadd.f32 %v3235_v30, %v3147_v46  ;;  %p4547_p11 = scmp.ne.s32.totalorder %s4545_s12, %s4546_s20  ;;  %p4552_p1 = scmp.lt.s32.totalorder %s4550_s25, %s4546_s20 }
 0x2b7   : > { %2417 = vst.msk [vmem:[#allocation3 + $0x130] sm:$0xf] %vm1622_vm6, %v6057_v24  ;;  %3079 = vmatmul.bf16.gmra.mxu1 %v4106_v25  ;;  %v3598_v1 = vadd.f32 %v6053_v29, %v3562_v6  ;;  %v6129_v24 = vld [vmem:[%s6393_s5] ss:$0 sm:$0xff] }
 0x2b8   : > { %v1352_v52 = vpop.permute.xlu0 %1351  ;;  %v3300_v31 = vmul.f32 %v6129_v24, %v3236_v8  ;;  %v3060_v54 = vpop.f32.mrf.mxu1  ;;  %v6150_v25 = vld [vmem:[%s6394_s6] ss:$0 sm:$0xff]  ;;  %p4548_p12 = pnand %p4547_p11, %p4693_p5  ;;  %p4553_p2 = por %p4552_p1, %p4551_p0 }
 0x2b9   : > { %1586 = vrot.lane.b32.xlu1 %v5977_v19, %s4597_s26  ;;  %v3694_v42 = vadd.f32 %v4382_v5, %v3598_v1  ;;  %v4441_v1 = vld [vmem:[%s4731_s21 + $0x10] sm:$0xff]  }
 0x2ba   : > { %v3336_v22 = vadd.f32 %v5735_v55, %v3300_v31  ;;  %p4549_p13 = pneg %p4548_p12 }
 0x2bb   : > { %v3726_v41 = vmax.f32 %v3694_v42, 0.0 }
 0x2bc   : > { %v2345_v0 = vpop.permute.xlu1 %2344  ;;  %v3483_v18 = vpop.f32.mrf.mxu3  ;;  %v3368_v19 = vmax.f32 %v3336_v22, 0.0  ;;  %p4554_p3 = pnand %p4553_p2, %p4549_p13 }
 0x2bd   : > { %2416 = vst.msk [vmem:[#allocation3 + $0x124] sm:$0xf] %vm1622_vm6, %v2345_v0  ;;  %v3563_v12 = vmul.f32 %v6042_v34, %v3483_v18  ;;  %v3238_v53 = vpop.f32.mrf.mxu0  ;;  %v4386_v0 = vunpack.c.l.bf16 %v4441_v1 }
 0x2be   : > { %3758 = vst [vmem:[%s6075_s29 + $0x10] sm:$0xff] %v3726_v41  ;;  %v1354_v43 = vpop.permute.xlu2 %1353  ;;  %v3393_v32 = vpack.c.bf16 %v3368_v19, %v3367_v60  ;;  %v4119_v62 = vld [vmem:[#allocation3 + $0x12c] sm:$0xf0] }
 0x2bf   : > { %v3599_v59 = vadd.f32 %v6053_v29, %v3563_v12 }
 0x2c0   : > { %v1900_v51 = vpop.permute.xlu0 %1899  ;;  %4265 = vmatmul.msk.bf16.gmra.mxu3 %vm365_vm1, %v3393_v32  ;;  %v3062_v37 = vpop.f32.mrf.mxu1 }
 0x2c1   : > { %1969 = vst.msk [vmem:[#allocation3 + $0x13c] sm:$0xf] %vm1172_vm4, %v1900_v51  ;;  %v3695_v10 = vadd.f32 %v4383_v21, %v3599_v59 }
 0x2c2   : > { %2194 = vst.msk [vmem:[#allocation3 + $0x13c] sm:$0xf] %vm1397_vm5, %v2125_v11  ;;  %v3149_v55 = vpop.f32.mrf.mxu2 }
 0x2c3   : > { %v3150_v17 = vadd.f32 %v3149_v55, %v3060_v54  ;;  %v3727_v38 = vmax.f32 %v3695_v10, 0.0  ;;  %v4387_v54 = vunpack.c.h.bf16 %v4441_v1 }
 0x2c4   : > { %v1127_v35 = vpop.permute.xlu1 %1126  ;;  %v4342_v36 = vld [vmem:[#allocation3 + $0x124] sm:$0xf] }
 0x2c5   : > { %1198 = vst.msk [vmem:[#allocation3 + $0x12c] sm:$0xf] %vm1172_vm4, %v1127_v35  ;;  %v4122_v9 = vor.u32 %v4342_v36, %v4119_v62  ;;  %v3239_v13 = vadd.f32 %v3238_v53, %v3150_v17  ;;  %v3240_v28 = vpop.f32.mrf.mxu0  ;;  %v4442_v62 = vld [vmem:[%s4731_s21 + $0x18] sm:$0xff]  }
 0x2c6   : > { %1423 = vst.msk [vmem:[#allocation3 + $0x12c] sm:$0xf] %vm1397_vm5, %v1352_v52  ;;  %v1581_v58 = vpop.permute.xlu2 %1580 }
 0x2c7   : > { %1648 = vst.msk [vmem:[#allocation3 + $0x12c] sm:$0xf] %vm1622_vm6, %v6091_v47  ;;  %3173 = vmatmul.bf16.gmra.mxu2 %v4122_v9  ;;  %v3301_v50 = vmul.f32 %v6129_v24, %v3239_v13 }
 0x2c8   : > { %3759 = vst [vmem:[%s6075_s29 + $0x18] sm:$0xff] %v3727_v38  ;;  %v2127_v11 = vpop.permute.xlu0 %2126 }
 0x2c9   : > { %v3337_v47 = vadd.f32 %v6150_v25, %v3301_v50  ;;  %v4390_v50 = vunpack.c.l.bf16 %v4442_v62 }
 0x2ca   : > { %v3151_v49 = vpop.f32.mrf.mxu2 }
 0x2cb   : > { %v3152_v45 = vadd.f32 %v3151_v49, %v3062_v37  ;;  %v3369_v30 = vmax.f32 %v3337_v47, 0.0 }
 0x2cc   : > { %v1575_v40 = vpop.permute.xlu1 %1574 }
 0x2cd   : > { %v3241_v44 = vadd.f32 %v3240_v28, %v3152_v45  ;;  %1647 = vst.msk [vmem:[#allocation3 + $0x120] sm:$0xf] %vm1622_vm6, %v1575_v40  ;;  %v3065_v51 = vpop.f32.mrf.mxu1  ;;  %v3243_v53 = vpop.f32.mrf.mxu0 }
 0x2ce   : > { %v4343_v52 = vld [vmem:[#allocation3 + $0x128] sm:$0xf0]  ;;  %v2129_v46 = vpop.permute.xlu2 %2128 }
 0x2cf   : > { %v3302_v2 = vmul.f32 %v6129_v24, %v3241_v44 }
 0x2d0   : > { %v1129_v14 = vpop.permute.xlu0 %1128 }
 0x2d1   : > { %1199 = vst.msk [vmem:[#allocation3 + $0x138] sm:$0xf] %vm1172_vm4, %v1129_v14  ;;  %v3338_v20 = vadd.f32 %v6150_v25, %v3302_v2 }
 0x2d2   : > { %1424 = vst.msk [vmem:[#allocation3 + $0x138] sm:$0xf] %vm1397_vm5, %v1354_v43 }
 0x2d3   : > { %v3370_v61 = vmax.f32 %v3338_v20, 0.0 }
 0x2d4   : > { %v1902_v6 = vpop.permute.xlu1 %1901  ;;  %v4117_v5 = vld [vmem:[#allocation3 + $0x120] sm:$0xf] }
 0x2d5   : > { %1970 = vst.msk [vmem:[#allocation3 + $0x148] sm:$0xf] %vm1172_vm4, %v1902_v6  ;;  %v4118_v8 = vor.u32 %v4343_v52, %v4117_v5  ;;  %v3394_v3 = vpack.c.bf16 %v3370_v61, %v3369_v30  ;;  %v3486_v42 = vpop.f32.mrf.mxu3  ;;  %v3067_v28 = vpop.f32.mrf.mxu1 }
 0x2d6   : > { %2195 = vst.msk [vmem:[#allocation3 + $0x148] sm:$0xf] %vm1397_vm5, %v2127_v11  ;;  %v3564_v31 = vmul.f32 %v6042_v34, %v3486_v42  ;;  %v6166_v12 = vpop.permute.xlu2 %2354  ;;  %v3245_v14 = vpop.f32.mrf.mxu0 }
 0x2d7   : > { %2419 = vst.msk [vmem:[#allocation3 + $0x148] sm:$0xf] %vm1622_vm6, %v6115_v15  ;;  %3084 = vmatmul.bf16.gmra.mxu1 %v4118_v8  ;;  %4266 = vmatmul.msk.bf16.gmra.mxu3 %vm365_vm1, %v3394_v3  ;;  %v4391_v8 = vunpack.c.h.bf16 %v4442_v62 }
 0x2d8   : > { %v1356_v41 = vpop.permute.xlu0 %1355  ;;  %v3600_v22 = vadd.f32 %v6053_v29, %v3564_v31 }
 0x2da   : > { %v3696_v18 = vadd.f32 %v4386_v0, %v3600_v22 }
 0x2dc   : > { %v2349_v60 = vpop.permute.xlu1 %2348  ;;  %v3728_v19 = vmax.f32 %v3696_v18, 0.0 }
 0x2dd   : > { %2418 = vst.msk [vmem:[#allocation3 + $0x13c] sm:$0xf] %vm1622_vm6, %v2349_v60  ;;  %v3488_v21 = vpop.f32.mrf.mxu3 }
 0x2de   : > { %3760 = vst [vmem:[%s6075_s29 + $0x20] sm:$0xff] %v3728_v19  ;;  %v3565_v15 = vmul.f32 %v6042_v34, %v3488_v21  ;;  %v4131_v36 = vld [vmem:[#allocation3 + $0x144] sm:$0xf0]  ;;  %v1358_v45 = vpop.permute.xlu2 %1357 }
 0x2e0   : > { %v1904_v43 = vpop.permute.xlu0 %1903  ;;  %v3601_v59 = vadd.f32 %v6053_v29, %v3565_v15 }
 0x2e1   : > { %1971 = vst.msk [vmem:[#allocation3 + $0x154] sm:$0xf] %vm1172_vm4, %v1904_v43 }
 0x2e2   : > { %2196 = vst.msk [vmem:[#allocation3 + $0x154] sm:$0xf] %vm1397_vm5, %v2129_v46  ;;  %v3154_v32 = vpop.f32.mrf.mxu2  ;;  %v3697_v17 = vadd.f32 %v4387_v54, %v3601_v59 }
 0x2e3   : > { %v3155_v55 = vadd.f32 %v3154_v32, %v3065_v51 }
 0x2e4   : > { %v1131_v10 = vpop.permute.xlu1 %1130  ;;  %v4345_v35 = vld [vmem:[#allocation3 + $0x13c] sm:$0xf]  ;;  %v3729_v38 = vmax.f32 %v3697_v17, 0.0 }
 0x2e5   : > { %1200 = vst.msk [vmem:[#allocation3 + $0x144] sm:$0xf] %vm1172_vm4, %v1131_v10  ;;  %v4134_v9 = vor.u32 %v4345_v35, %v4131_v36  ;;  %v3491_v13 = vpop.f32.mrf.mxu3  ;;  %v3244_v11 = vadd.f32 %v3243_v53, %v3155_v55  ;;  %v4443_v10 = vld [vmem:[%s4731_s21 + $0x20] sm:$0xff]  }
 0x2e6   : > { %1425 = vst.msk [vmem:[#allocation3 + $0x144] sm:$0xf] %vm1397_vm5, %v1356_v41  ;;  %v3566_v49 = vmul.f32 %v6042_v34, %v3491_v13  ;;  %v1585_v31 = vpop.permute.xlu2 %1584  ;;  %v4394_v13 = vunpack.c.l.bf16 %v4443_v10 }
 0x2e7   : > { %1650 = vst.msk [vmem:[#allocation3 + $0x144] sm:$0xf] %vm1622_vm6, %v1581_v58  ;;  %3178 = vmatmul.bf16.gmra.mxu2 %v4134_v9  ;;  %v3303_v47 = vmul.f32 %v6129_v24, %v3244_v11  ;;  %v3248_v11 = vpop.f32.mrf.mxu0 }
 0x2e8   : > { %3761 = vst [vmem:[%s6075_s29 + $0x28] sm:$0xff] %v3729_v38  ;;  %v2131_v37 = vpop.permute.xlu0 %2130  ;;  %v3602_v40 = vadd.f32 %v6053_v29, %v3566_v49 }
 0x2e9   : > { %v3339_v6 = vadd.f32 %v6150_v25, %v3303_v47 }
 0x2ea   : > { %v3156_v44 = vpop.f32.mrf.mxu2  ;;  %v3698_v20 = vadd.f32 %v4390_v50, %v3602_v40 }
 0x2eb   : > { %v3157_v2 = vadd.f32 %v3156_v44, %v3067_v28  ;;  %v3371_v0 = vmax.f32 %v3339_v6, 0.0 }
 0x2ec   : > { %v1579_v30 = vpop.permute.xlu1 %1578  ;;  %v3730_v58 = vmax.f32 %v3698_v20, 0.0 }
 0x2ed   : > { %v3246_v61 = vadd.f32 %v3245_v14, %v3157_v2  ;;  %1649 = vst.msk [vmem:[#allocation3 + $0x138] sm:$0xf] %vm1622_vm6, %v1579_v30  ;;  %v3493_v5 = vpop.f32.mrf.mxu3  ;;  %v4395_v30 = vunpack.c.h.bf16 %v4443_v10 }
 0x2ee   : > { %3762 = vst [vmem:[%s6075_s29 + $0x30] sm:$0xff] %v3730_v58  ;;  %v3567_v1 = vmul.f32 %v6042_v34, %v3493_v5  ;;  %v4346_v19 = vld [vmem:[#allocation3 + $0x140] sm:$0xf0]  ;;  %v2133_v53 = vpop.permute.xlu2 %2132 }
 0x2ef   : > { %v3304_v52 = vmul.f32 %v6129_v24, %v3246_v61 }
 0x2f0   : > { %v1133_v46 = vpop.permute.xlu0 %1132  ;;  %v3603_v42 = vadd.f32 %v6053_v29, %v3567_v1 }
 0x2f1   : > { %1201 = vst.msk [vmem:[#allocation3 + $0x150] sm:$0xf] %vm1172_vm4, %v1133_v46  ;;  %v3340_v3 = vadd.f32 %v6150_v25, %v3304_v52  ;;  %v3250_v46 = vpop.f32.mrf.mxu0 }
 0x2f2   : > { %1426 = vst.msk [vmem:[#allocation3 + $0x150] sm:$0xf] %vm1397_vm5, %v1358_v45  ;;  %v3699_v22 = vadd.f32 %v4391_v8, %v3603_v42 }
 0x2f3   : > { %v3372_v41 = vmax.f32 %v3340_v3, 0.0 }
 0x2f4   : > { %v1906_v18 = vpop.permute.xlu1 %1905  ;;  %v4129_v60 = vld [vmem:[#allocation3 + $0x138] sm:$0xf]  ;;  %v3731_v54 = vmax.f32 %v3699_v22, 0.0  ;;  %v3070_v35 = vpop.f32.mrf.mxu1 }
 0x2f5   : > { %1972 = vst.msk [vmem:[#allocation3 + $0x160] sm:$0xf] %vm1172_vm4, %v1906_v18  ;;  %v4130_v21 = vor.u32 %v4346_v19, %v4129_v60  ;;  %v3395_v15 = vpack.c.bf16 %v3372_v41, %v3371_v0 }
 0x2f6   : > { %2197 = vst.msk [vmem:[#allocation3 + $0x160] sm:$0xf] %vm1397_vm5, %v2131_v37  ;;  %v2359_v36 = vpop.permute.xlu2 %2358 }
 0x2f7   : > { %2421 = vst.msk [vmem:[#allocation3 + $0x160] sm:$0xf] %vm1622_vm6, %v6166_v12  ;;  %3089 = vmatmul.bf16.gmra.mxu1 %v4130_v21  ;;  %4267 = vmatmul.msk.bf16.gmra.mxu3 %vm365_vm1, %v3395_v15 }
 0x2f8   : > { %3763 = vst [vmem:[%s6075_s29 + $0x38] sm:$0xff] %v3731_v54  ;;  %v1360_v51 = vpop.permute.xlu0 %1359 }
 0x2fc   : > { %v2353_v43 = vpop.permute.xlu1 %2352  ;;  %v3072_v2 = vpop.f32.mrf.mxu1 }
 0x2fd   : > { %2420 = vst.msk [vmem:[#allocation3 + $0x154] sm:$0xf] %vm1622_vm6, %v2353_v43 }
 0x2fe   : > { %v4143_v17 = vld [vmem:[#allocation3 + $0x15c] sm:$0xf0]  ;;  %v1362_v61 = vpop.permute.xlu2 %1361 }
 0x300   : > { %v1908_v59 = vpop.permute.xlu0 %1907 }
 0x301   : > { %1973 = vst.msk [vmem:[#allocation3 + $0x16c] sm:$0xf] %vm1172_vm4, %v1908_v59 }
 0x302   : > { %2198 = vst.msk [vmem:[#allocation3 + $0x16c] sm:$0xf] %vm1397_vm5, %v2133_v53 }
 0x304   : > { %v1135_v32 = vpop.permute.xlu1 %1134  ;;  %v4348_v55 = vld [vmem:[#allocation3 + $0x154] sm:$0xf]  ;;  %v3496_v62 = vpop.f32.mrf.mxu3 }
 0x305   : > { %1202 = vst.msk [vmem:[#allocation3 + $0x15c] sm:$0xf] %vm1172_vm4, %v1135_v32  ;;  %v4146_v12 = vor.u32 %v4348_v55, %v4143_v17  ;;  %v3568_v38 = vmul.f32 %v6042_v34, %v3496_v62 }
 0x306   : > { %1427 = vst.msk [vmem:[#allocation3 + $0x15c] sm:$0xf] %vm1397_vm5, %v1360_v51 }
 0x307   : > { %1652 = vst.msk [vmem:[#allocation3 + $0x15c] sm:$0xf] %vm1622_vm6, %v1585_v31  ;;  %3183 = vmatmul.bf16.gmra.mxu2 %v4146_v12  ;;  %v3604_v37 = vadd.f32 %v6053_v29, %v3568_v38 }
 0x308   : > { %v2135_v9 = vpop.permute.xlu0 %2134 }
 0x309   : > { %v3700_v45 = vadd.f32 %v4394_v13, %v3604_v37 }
 0x30a   : > { %v3159_v49 = vpop.f32.mrf.mxu2 }
 0x30b   : > { %v3160_v50 = vadd.f32 %v3159_v49, %v3070_v35  ;;  %v3732_v40 = vmax.f32 %v3700_v45, 0.0 }
 0x30c   : > { %v1583_v28 = vpop.permute.xlu1 %1582  ;;  %v3498_v44 = vpop.f32.mrf.mxu3 }
 0x30d   : > { %1651 = vst.msk [vmem:[#allocation3 + $0x150] sm:$0xf] %vm1622_vm6, %v1583_v28  ;;  %v3249_v47 = vadd.f32 %v3248_v11, %v3160_v50  ;;  %v3569_v20 = vmul.f32 %v6042_v34, %v3498_v44  ;;  %v1589_v11 = vpop.permute.xlu2 %1588 }
 0x30e   : > { %3764 = vst [vmem:[%s6075_s29 + $0x40] sm:$0xff] %v3732_v40  ;;  %v4349_v42 = vld [vmem:[#allocation3 + $0x158] sm:$0xf0] }
 0x30f   : > { %v3605_v58 = vadd.f32 %v6053_v29, %v3569_v20  ;;  %v3305_v5 = vmul.f32 %v6129_v24, %v3249_v47 }
 0x310   : > { %v1137_v14 = vpop.permute.xlu0 %1136 }
 0x311   : > { %1203 = vst.msk [vmem:[#allocation3 + $0x168] sm:$0xf] %vm1172_vm4, %v1137_v14  ;;  %v3701_v1 = vadd.f32 %v4395_v30, %v3605_v58  ;;  %v3341_v22 = vadd.f32 %v6150_v25, %v3305_v5 }
 0x312   : > { %1428 = vst.msk [vmem:[#allocation3 + $0x168] sm:$0xf] %vm1397_vm5, %v1362_v61  ;;  %v3161_v6 = vpop.f32.mrf.mxu2 }
 0x313   : > { %v3162_v52 = vadd.f32 %v3161_v6, %v3072_v2  ;;  %v3733_v41 = vmax.f32 %v3701_v1, 0.0  ;;  %v3373_v15 = vmax.f32 %v3341_v22, 0.0 }
 0x314   : > { %v1910_v8 = vpop.permute.xlu1 %1909  ;;  %v4141_v3 = vld [vmem:[#allocation3 + $0x150] sm:$0xf]  ;;  %v3075_v60 = vpop.f32.mrf.mxu1 }
 0x315   : > { %v3251_v31 = vadd.f32 %v3250_v46, %v3162_v52  ;;  %1974 = vst.msk [vmem:[#allocation3 + $0x178] sm:$0xf] %vm1172_vm4, %v1910_v8  ;;  %v4142_v0 = vor.u32 %v4349_v42, %v4141_v3 }
 0x316   : > { %2199 = vst.msk [vmem:[#allocation3 + $0x178] sm:$0xf] %vm1397_vm5, %v2135_v9  ;;  %v4444_v9 = vld [vmem:[%s4731_s21 + $0x28] sm:$0xff]  }
 0x317   : > { %v3306_v18 = vmul.f32 %v6129_v24, %v3251_v31  ;;  %2423 = vst.msk [vmem:[#allocation3 + $0x178] sm:$0xf] %vm1622_vm6, %v2359_v36  ;;  %3094 = vmatmul.bf16.gmra.mxu1 %v4142_v0  ;;  %v4398_v45 = vunpack.c.l.bf16 %v4444_v9  ;;  %v4399_v58 = vunpack.c.h.bf16 %v4444_v9 }
 0x318   : > { %3765 = vst [vmem:[%s6075_s29 + $0x48] sm:$0xff] %v3733_v41  ;;  %v1364_v62 = vpop.permute.xlu0 %1363 }
 0x319   : > { %v3342_v19 = vadd.f32 %v6150_v25, %v3306_v18 }
 0x31a   : > { %v3164_v21 = vpop.f32.mrf.mxu2 }
 0x31b   : > { %v3374_v54 = vmax.f32 %v3342_v19, 0.0  ;;  %v3165_v51 = vadd.f32 %v3164_v21, %v3075_v60 }
 0x31c   : > { %v2357_v43 = vpop.permute.xlu1 %2356  ;;  %v3077_v32 = vpop.f32.mrf.mxu1 }
 0x31d   : > { %2422 = vst.msk [vmem:[#allocation3 + $0x16c] sm:$0xf] %vm1622_vm6, %v2357_v43  ;;  %v3396_v53 = vpack.c.bf16 %v3374_v54, %v3373_v15  ;;  %v3254_v59 = vadd.f32 %v5771_v26, %v3165_v51  ;;  %v4445_v43 = vld [vmem:[%s4731_s21 + $0x30] sm:$0xff]  }
 0x31e   : > { %v4155_v17 = vld [vmem:[#allocation3 + $0x174] sm:$0xf0] }
 0x31f   : > { %4268 = vmatmul.msk.bf16.gmra.mxu3 %vm365_vm1, %v3396_v53  ;;  %v3307_v10 = vmul.f32 %v6129_v24, %v3254_v59 }
 0x321   : > { %v3343_v26 = vadd.f32 %v6150_v25, %v3307_v10 }
 0x322   : > { %v3166_v55 = vpop.f32.mrf.mxu2 }
 0x323   : > { %v3167_v12 = vadd.f32 %v3166_v55, %v3077_v32  ;;  %v3501_v37 = vpop.f32.mrf.mxu3  ;;  %v3375_v40 = vmax.f32 %v3343_v26, 0.0  ;;  %v4402_v55 = vunpack.c.l.bf16 %v4445_v43 }
 0x324   : > { %v1139_v35 = vpop.permute.xlu1 %1138  ;;  %v4351_v36 = vld [vmem:[#allocation3 + $0x16c] sm:$0xf]  ;;  %v3570_v50 = vmul.f32 %v6042_v34, %v3501_v37  ;;  %v4446_v37 = vld [vmem:[%s4731_s21 + $0x38] sm:$0xff]  }
 0x325   : > { %v3256_v38 = vadd.f32 %v5785_v23, %v3167_v12  ;;  %1204 = vst.msk [vmem:[#allocation3 + $0x174] sm:$0xf] %vm1172_vm4, %v1139_v35  ;;  %v4158_v13 = vor.u32 %v4351_v36, %v4155_v17  ;;  %v4403_v36 = vunpack.c.h.bf16 %v4445_v43 }
 0x326   : > { %1429 = vst.msk [vmem:[#allocation3 + $0x174] sm:$0xf] %vm1397_vm5, %v1364_v62  ;;  %v3606_v28 = vadd.f32 %v6053_v29, %v3570_v50 }
 0x327   : > { %v3308_v49 = vmul.f32 %v6129_v24, %v3256_v38  ;;  %1654 = vst.msk [vmem:[#allocation3 + $0x174] sm:$0xf] %vm1622_vm6, %v1589_v11  ;;  %3188 = vmatmul.bf16.gmra.mxu2 %v4158_v13 }
 0x328   : > { %v3702_v47 = vadd.f32 %v4398_v45, %v3606_v28 }
 0x329   : > { %v3344_v23 = vadd.f32 %v6150_v25, %v3308_v49 }
 0x32a   : > { %v3734_v20 = vmax.f32 %v3702_v47, 0.0  ;;  %v3169_v5 = vpop.f32.mrf.mxu2 }
 0x32b   : > { %v3376_v44 = vmax.f32 %v3344_v23, 0.0  ;;  %v3503_v30 = vpop.f32.mrf.mxu3  ;;  %v4406_v23 = vunpack.c.l.bf16 %v4446_v37 }
 0x32c   : > { %v1587_v2 = vpop.permute.xlu1 %1586  ;;  %3766 = vst [vmem:[%s6075_s29 + $0x50] sm:$0xff] %v3734_v20  ;;  %v3571_v61 = vmul.f32 %v6042_v34, %v3503_v30 }
 0x32d   : > { %1653 = vst.msk [vmem:[#allocation3 + $0x168] sm:$0xf] %vm1622_vm6, %v1587_v2  ;;  %v3397_v14 = vpack.c.bf16 %v3376_v44, %v3375_v40 }
 0x32e   : > { %v3607_v6 = vadd.f32 %v6053_v29, %v3571_v61  ;;  %v4352_v8 = vld [vmem:[#allocation3 + $0x170] sm:$0xf0] }
 0x32f   : > { %4269 = vmatmul.msk.bf16.gmra.mxu3 %vm365_vm1, %v3397_v14 }
 0x330   : > { %v3703_v52 = vadd.f32 %v4399_v58, %v3607_v6 }
 0x332   : > { %v3735_v31 = vmax.f32 %v3703_v52, 0.0  ;;  %v3171_v41 = vpop.f32.mrf.mxu2  ;;  %v4407_v52 = vunpack.c.h.bf16 %v4446_v37 }
 0x334   : > { %v3080_v46 = vpop.f32.mrf.mxu1  ;;  %v4153_v1 = vld [vmem:[#allocation3 + $0x168] sm:$0xf]  ;;  %3767 = vst [vmem:[%s6075_s29 + $0x58] sm:$0xff] %v3735_v31 }
 0x335   : > { %v3170_v3 = vadd.f32 %v3169_v5, %v3080_v46  ;;  %v4154_v42 = vor.u32 %v4352_v8, %v4153_v1 }
 0x337   : > { %3099 = vmatmul.bf16.gmra.mxu1 %v4154_v42  ;;  %v3259_v0 = vadd.f32 %v5803_v39, %v3170_v3 }
 0x339   : > { %v3309_v18 = vmul.f32 %v6129_v24, %v3259_v0 }
 0x33b   : > { %v3345_v21 = vadd.f32 %v6150_v25, %v3309_v18 }
 0x33c   : > { %v3082_v22 = vpop.f32.mrf.mxu1 }
 0x33d   : > { %v3172_v60 = vadd.f32 %v3171_v41, %v3082_v22  ;;  %v3377_v51 = vmax.f32 %v3345_v21, 0.0  ;;  %v4447_v22 = vld [vmem:[%s4731_s21 + $0x40] sm:$0xff]  }
 0x33e   : > { %v4410_v21 = vunpack.c.l.bf16 %v4447_v22 }
 0x33f   : > { %v3261_v19 = vadd.f32 %v5843_v63, %v3172_v60 }
 0x341   : > { %v3310_v15 = vmul.f32 %v6129_v24, %v3261_v19 }
 0x343   : > { %v3346_v54 = vadd.f32 %v6150_v25, %v3310_v15  ;;  %v3506_v59 = vpop.f32.mrf.mxu3 }
 0x344   : > { %v3572_v39 = vmul.f32 %v6042_v34, %v3506_v59 }
 0x345   : > { %v3378_v53 = vmax.f32 %v3346_v54, 0.0 }
 0x346   : > { %v3608_v63 = vadd.f32 %v6053_v29, %v3572_v39 }
 0x347   : > { %v3398_v32 = vpack.c.bf16 %v3378_v53, %v3377_v51 }
 0x348   : > { %v3704_v17 = vadd.f32 %v4402_v55, %v3608_v63 }
 0x349   : > { %4270 = vmatmul.msk.bf16.gmra.mxu3 %vm365_vm1, %v3398_v32 }
 0x34a   : > { %v3736_v10 = vmax.f32 %v3704_v17, 0.0  ;;  %v3174_v9 = vpop.f32.mrf.mxu2 }
 0x34b   : > { %v3508_v12 = vpop.f32.mrf.mxu3 }
 0x34c   : > { %3768 = vst [vmem:[%s6075_s29 + $0x60] sm:$0xff] %v3736_v10  ;;  %v3573_v35 = vmul.f32 %v6042_v34, %v3508_v12  ;;  %v4411_v12 = vunpack.c.h.bf16 %v4447_v22 }
 0x34e   : > { %v3609_v62 = vadd.f32 %v6053_v29, %v3573_v35 }
 0x350   : > { %v3705_v38 = vadd.f32 %v4403_v36, %v3609_v62 }
 0x352   : > { %v3737_v26 = vmax.f32 %v3705_v38, 0.0  ;;  %v3176_v28 = vpop.f32.mrf.mxu2 }
 0x354   : > { %v3085_v13 = vpop.f32.mrf.mxu1  ;;  %3769 = vst [vmem:[%s6075_s29 + $0x68] sm:$0xff] %v3737_v26 }
 0x355   : > { %v3175_v11 = vadd.f32 %v3174_v9, %v3085_v13 }
 0x357   : > { %v3264_v49 = vadd.f32 %v5868_v27, %v3175_v11 }
 0x359   : > { %v3311_v44 = vmul.f32 %v6129_v24, %v3264_v49 }
 0x35a   : > { %v3511_v50 = vpop.f32.mrf.mxu3 }
 0x35b   : > { %v3574_v45 = vmul.f32 %v6042_v34, %v3511_v50  ;;  %v3347_v30 = vadd.f32 %v6150_v25, %v3311_v44 }
 0x35c   : > { %v3087_v40 = vpop.f32.mrf.mxu1 }
 0x35d   : > { %v3610_v47 = vadd.f32 %v6053_v29, %v3574_v45  ;;  %v3177_v2 = vadd.f32 %v3176_v28, %v3087_v40  ;;  %v3379_v46 = vmax.f32 %v3347_v30, 0.0  ;;  %v4448_v40 = vld [vmem:[%s4731_s21 + $0x48] sm:$0xff]  }
 0x35f   : > { %v3706_v14 = vadd.f32 %v4406_v23, %v3610_v47  ;;  %v3266_v20 = vadd.f32 %v5890_v48, %v3177_v2 }
 0x361   : > { %v3738_v61 = vmax.f32 %v3706_v14, 0.0  ;;  %v3312_v27 = vmul.f32 %v6129_v24, %v3266_v20 }
 0x362   : > { %v3513_v58 = vpop.f32.mrf.mxu3 }
 0x363   : > { %3770 = vst [vmem:[%s6075_s29 + $0x70] sm:$0xff] %v3738_v61  ;;  %v3348_v6 = vadd.f32 %v6150_v25, %v3312_v27  ;;  %v3575_v5 = vmul.f32 %v6042_v34, %v3513_v58 }
 0x365   : > { %v3380_v1 = vmax.f32 %v3348_v6, 0.0  ;;  %v3611_v8 = vadd.f32 %v6053_v29, %v3575_v5 }
 0x367   : > { %v3707_v3 = vadd.f32 %v4407_v52, %v3611_v8  ;;  %v3399_v48 = vpack.c.bf16 %v3380_v1, %v3379_v46  ;;  %v4415_v46 = vunpack.c.h.bf16 %v4448_v40 }
 0x369   : > { %v3739_v42 = vmax.f32 %v3707_v3, 0.0  ;;  %4271 = vmatmul.msk.bf16.gmra.mxu3 %vm365_vm1, %v3399_v48  ;;  %v4449_v3 = vld [vmem:[%s4731_s21 + $0x50] sm:$0xff]  }
 0x36a   : > { %v3179_v31 = vpop.f32.mrf.mxu2 }
 0x36b   : > { %3771 = vst [vmem:[%s6075_s29 + $0x78] sm:$0xff] %v3739_v42 }
 0x372   : > { %v3181_v15 = vpop.f32.mrf.mxu2 }
 0x374   : > { %v3090_v0 = vpop.f32.mrf.mxu1 }
 0x375   : > { %v3180_v41 = vadd.f32 %v3179_v31, %v3090_v0 }
 0x377   : > { %v3269_v18 = vadd.f32 %v5914_v4, %v3180_v41  ;;  %v4418_v41 = vunpack.c.l.bf16 %v4449_v3 }
 0x379   : > { %v3313_v51 = vmul.f32 %v6129_v24, %v3269_v18 }
 0x37a   : > { %v3516_v60 = vpop.f32.mrf.mxu3 }
 0x37b   : > { %v3576_v19 = vmul.f32 %v6042_v34, %v3516_v60  ;;  %v3349_v39 = vadd.f32 %v6150_v25, %v3313_v51  ;;  %v6303_v51 = vld [vmem:[%s6396_s8] ss:$0 sm:$0xff] }
 0x37c   : > { %v3092_v54 = vpop.f32.mrf.mxu1 }
 0x37d   : > { %v3612_v43 = vadd.f32 %v6053_v29, %v3576_v19  ;;  %v3182_v53 = vadd.f32 %v3181_v15, %v3092_v54  ;;  %v3381_v35 = vmax.f32 %v3349_v39, 0.0 }
 0x37f   : > { %v3708_v59 = vadd.f32 %v4410_v21, %v3612_v43  ;;  %v3271_v32 = vadd.f32 %v5939_v56, %v3182_v53 }
 0x381   : > { %v3740_v55 = vmax.f32 %v3708_v59, 0.0  ;;  %v3314_v4 = vmul.f32 %v6129_v24, %v3271_v32 }
 0x382   : > { %v3518_v63 = vpop.f32.mrf.mxu3 }
 0x383   : > { %3772 = vst [vmem:[%s6075_s29 + $0x80] sm:$0xff] %v3740_v55  ;;  %v3350_v17 = vadd.f32 %v6150_v25, %v3314_v4  ;;  %v3577_v10 = vmul.f32 %v6042_v34, %v3518_v63 }
 0x385   : > { %v3382_v36 = vmax.f32 %v3350_v17, 0.0  ;;  %v3613_v62 = vadd.f32 %v6053_v29, %v3577_v10 }
 0x387   : > { %v3709_v9 = vadd.f32 %v4411_v12, %v3613_v62  ;;  %v3400_v56 = vpack.c.bf16 %v3382_v36, %v3381_v35 }
 0x389   : > { %v3741_v38 = vmax.f32 %v3709_v9, 0.0  ;;  %4272 = vmatmul.msk.bf16.gmra.mxu3 %vm365_vm1, %v3400_v56  ;;  %v4450_v9 = vld [vmem:[%s4731_s21 + $0x58] sm:$0xff]  }
 0x38a   : > { %v3184_v13 = vpop.f32.mrf.mxu2 }
 0x38b   : > { %3773 = vst [vmem:[%s6075_s29 + $0x88] sm:$0xff] %v3741_v38  ;;  %v4422_v38 = vunpack.c.l.bf16 %v4450_v9 }
 0x392   : > { %v3186_v49 = vpop.f32.mrf.mxu2 }
 0x394   : > { %v3095_v11 = vpop.f32.mrf.mxu1 }
 0x395   : > { %v3185_v26 = vadd.f32 %v3184_v13, %v3095_v11 }
 0x397   : > { %v3274_v37 = vadd.f32 %v5959_v57, %v3185_v26  ;;  %v4414_v57 = vunpack.c.l.bf16 %v4448_v40 }
 0x399   : > { %v3315_v45 = vmul.f32 %v6129_v24, %v3274_v37  ;;  %v4423_v37 = vunpack.c.h.bf16 %v4450_v9 }
 0x39b   : > { %v3351_v44 = vadd.f32 %v6150_v25, %v3315_v45 }
 0x39c   : > { %v3097_v50 = vpop.f32.mrf.mxu1 }
 0x39d   : > { %v3187_v23 = vadd.f32 %v3186_v49, %v3097_v50  ;;  %v3383_v30 = vmax.f32 %v3351_v44, 0.0 }
 0x39f   : > { %v3276_v28 = vadd.f32 %v5979_v16, %v3187_v23  ;;  %v4451_v23 = vld [vmem:[%s4731_s21 + $0x60] sm:$0xff]  }
 0x3a0   : > { %v4426_v44 = vunpack.c.l.bf16 %v4451_v23 }
 0x3a1   : > { %v3316_v47 = vmul.f32 %v6129_v24, %v3276_v28 }
 0x3a2   : > { %v3521_v2 = vpop.f32.mrf.mxu3 }
 0x3a3   : > { %v3352_v14 = vadd.f32 %v6150_v25, %v3316_v47  ;;  %v3578_v20 = vmul.f32 %v6042_v34, %v3521_v2 }
 0x3a5   : > { %v3384_v61 = vmax.f32 %v3352_v14, 0.0  ;;  %v3614_v27 = vadd.f32 %v6053_v29, %v3578_v20 }
 0x3a7   : > { %v3710_v58 = vadd.f32 %v4414_v57, %v3614_v27  ;;  %v3401_v16 = vpack.c.bf16 %v3384_v61, %v3383_v30  ;;  %v4427_v30 = vunpack.c.h.bf16 %v4451_v23 }
 0x3a9   : > { %v3742_v6 = vmax.f32 %v3710_v58, 0.0  ;;  %4273 = vmatmul.msk.bf16.gmra.mxu3 %vm365_vm1, %v3401_v16  ;;  %v4452_v16 = vld [vmem:[%s4731_s21 + $0x68] sm:$0xff]  }
 0x3aa   : > { %v3523_v5 = vpop.f32.mrf.mxu3  ;;  %v3189_v42 = vpop.f32.mrf.mxu2 }
 0x3ab   : > { %3774 = vst [vmem:[%s6075_s29 + $0x90] sm:$0xff] %v3742_v6  ;;  %v3579_v52 = vmul.f32 %v6042_v34, %v3523_v5 }
 0x3ad   : > { %v3615_v1 = vadd.f32 %v6053_v29, %v3579_v52  ;;  %v4430_v52 = vunpack.c.l.bf16 %v4452_v16 }
 0x3af   : > { %v3711_v8 = vadd.f32 %v4415_v46, %v3615_v1 }
 0x3b1   : > { %v3743_v48 = vmax.f32 %v3711_v8, 0.0 }
 0x3b2   : > { %v3526_v31 = vpop.f32.mrf.mxu3  ;;  %v3191_v53 = vpop.f32.mrf.mxu2 }
 0x3b3   : > { %3775 = vst [vmem:[%s6075_s29 + $0x98] sm:$0xff] %v3743_v48  ;;  %v3580_v0 = vmul.f32 %v6042_v34, %v3526_v31  ;;  %v4419_v34 = vunpack.c.h.bf16 %v4449_v3 }
 0x3b4   : > { %v3100_v22 = vpop.f32.mrf.mxu1 }
 0x3b5   : > { %v3616_v18 = vadd.f32 %v6053_v29, %v3580_v0  ;;  %v3190_v60 = vadd.f32 %v3189_v42, %v3100_v22  ;;  %v4431_v42 = vunpack.c.h.bf16 %v4452_v16  ;;  %v4453_v22 = vld [vmem:[%s4731_s21 + $0x70] sm:$0xff]  }
 0x3b7   : > { %v3712_v19 = vadd.f32 %v4418_v41, %v3616_v18  ;;  %v3279_v15 = vadd.f32 %v5998_v7, %v3190_v60  ;;  %v6310_v7 = vld [vmem:[%s6397_s9] ss:$0 sm:$0xff] }
 0x3b9   : > { %v3744_v21 = vmax.f32 %v3712_v19, 0.0  ;;  %v3317_v29 = vmul.f32 %v6129_v24, %v3279_v15  ;;  %v4434_v19 = vunpack.c.l.bf16 %v4453_v22 }
 0x3ba   : > { %v3528_v54 = vpop.f32.mrf.mxu3 }
 0x3bb   : > { %3776 = vst [vmem:[%s6075_s29 + $0xa0] sm:$0xff] %v3744_v21  ;;  %v3581_v43 = vmul.f32 %v6303_v51, %v3528_v54  ;;  %v3353_v63 = vadd.f32 %v6150_v25, %v3317_v29 }
 0x3bc   : > { %v3102_v59 = vpop.f32.mrf.mxu1 }
 0x3bd   : > { %v3617_v32 = vadd.f32 %v6310_v7, %v3581_v43  ;;  %v3192_v39 = vadd.f32 %v3191_v53, %v3102_v59  ;;  %v3385_v35 = vmax.f32 %v3353_v63, 0.0  ;;  %v4435_v53 = vunpack.c.h.bf16 %v4453_v22 }
 0x3bf   : > { %v3713_v55 = vadd.f32 %v4419_v34, %v3617_v32  ;;  %v3281_v4 = vadd.f32 %v6026_v33, %v3192_v39  ;;  %v4454_v39 = vld [vmem:[%s4731_s21 + $0x78] sm:$0xff]   ;;  %s3802_s21 = sshll.u32 %s6075_s29, 4  ;;  %s3803_s21 = int_to_ptr.vmem [resolvable:$true] %s3802_s21 }
 0x3c0   : > { %v4438_v63 = vunpack.c.l.bf16 %v4454_v39 }
 0x3c1   : > { %v3745_v17 = vmax.f32 %v3713_v55, 0.0  ;;  %v3318_v10 = vmul.f32 %v6129_v24, %v3281_v4 }
 0x3c3   : > { %3777 = vst [vmem:[%s6075_s29 + $0xa8] sm:$0xff] %v3745_v17  ;;  %v3354_v12 = vadd.f32 %v6150_v25, %v3318_v10 }
 0x3c5   : > { %v3386_v36 = vmax.f32 %v3354_v12, 0.0 }
 0x3c7   : > { %v3402_v62 = vpack.c.bf16 %v3386_v36, %v3385_v35 }
 0x3c9   : > { %4274 = vmatmul.msk.bf16.gmra.mxu3 %vm365_vm1, %v3402_v62  ;;  %v4439_v62 = vunpack.c.h.bf16 %v4454_v39 }
 0x3cc   : > { %v3531_v56 = vpop.f32.mrf.mxu3 }
 0x3cd   : > { %v3582_v33 = vmul.f32 %v6303_v51, %v3531_v56 }
 0x3cf   : > { %v3618_v13 = vadd.f32 %v6310_v7, %v3582_v33 }
 0x3d1   : > { %v3714_v11 = vadd.f32 %v4422_v38, %v3618_v13 }
 0x3d3   : > { %v3746_v26 = vmax.f32 %v3714_v11, 0.0 }
 0x3d4   : > { %v3533_v24 = vpop.f32.mrf.mxu3 }
 0x3d5   : > { %3778 = vst [vmem:[%s6075_s29 + $0xb0] sm:$0xff] %v3746_v26  ;;  %v3583_v25 = vmul.f32 %v6303_v51, %v3533_v24 }
 0x3d7   : > { %v3619_v49 = vadd.f32 %v6310_v7, %v3583_v25 }
 0x3d9   : > { %v3715_v50 = vadd.f32 %v4423_v37, %v3619_v49 }
 0x3db   : > { %v3747_v45 = vmax.f32 %v3715_v50, 0.0 }
 0x3dd   : > { %3779 = vst [vmem:[%s6075_s29 + $0xb8] sm:$0xff] %v3747_v45 }
 0x3ec   : > { %v3536_v28 = vpop.f32.mrf.mxu3 }
 0x3ed   : > { %v3584_v40 = vmul.f32 %v6303_v51, %v3536_v28 }
 0x3ef   : > { %v3620_v47 = vadd.f32 %v6310_v7, %v3584_v40 }
 0x3f1   : > { %v3716_v2 = vadd.f32 %v4426_v44, %v3620_v47 }
 0x3f3   : > { %v3748_v14 = vmax.f32 %v3716_v2, 0.0 }
 0x3f4   : > { %v3538_v20 = vpop.f32.mrf.mxu3 }
 0x3f5   : > { %3780 = vst [vmem:[%s6075_s29 + $0xc0] sm:$0xff] %v3748_v14  ;;  %v3585_v57 = vmul.f32 %v6303_v51, %v3538_v20 }
 0x3f7   : > { %v3621_v61 = vadd.f32 %v6310_v7, %v3585_v57 }
 0x3f9   : > { %v3717_v27 = vadd.f32 %v4427_v30, %v3621_v61 }
 0x3fb   : > { %v3749_v58 = vmax.f32 %v3717_v27, 0.0 }
 0x3fd   : > { %3781 = vst [vmem:[%s6075_s29 + $0xc8] sm:$0xff] %v3749_v58 }
 0x40c   : > { %v3541_v6 = vpop.f32.mrf.mxu3 }
 0x40d   : > { %v3586_v5 = vmul.f32 %v6303_v51, %v3541_v6 }
 0x40f   : > { %v3622_v46 = vadd.f32 %v6310_v7, %v3586_v5 }
 0x411   : > { %v3718_v1 = vadd.f32 %v4430_v52, %v3622_v46 }
 0x413   : > { %v3750_v8 = vmax.f32 %v3718_v1, 0.0 }
 0x414   : > { %v3543_v3 = vpop.f32.mrf.mxu3 }
 0x415   : > { %3782 = vst [vmem:[%s6075_s29 + $0xd0] sm:$0xff] %v3750_v8  ;;  %v3587_v48 = vmul.f32 %v6303_v51, %v3543_v3 }
 0x417   : > { %v3623_v31 = vadd.f32 %v6310_v7, %v3587_v48 }
 0x419   : > { %v3719_v0 = vadd.f32 %v4431_v42, %v3623_v31 }
 0x41b   : > { %v3751_v41 = vmax.f32 %v3719_v0, 0.0 }
 0x41d   : > { %3783 = vst [vmem:[%s6075_s29 + $0xd8] sm:$0xff] %v3751_v41 }
 0x42c   : > { %v3546_v18 = vpop.f32.mrf.mxu3 }
 0x42d   : > { %v3588_v60 = vmul.f32 %v6303_v51, %v3546_v18 }
 0x42f   : > { %v3624_v21 = vadd.f32 %v6310_v7, %v3588_v60 }
 0x431   : > { %v3720_v15 = vadd.f32 %v4434_v19, %v3624_v21 }
 0x433   : > { %v3752_v54 = vmax.f32 %v3720_v15, 0.0 }
 0x434   : > { %v3548_v43 = vpop.f32.mrf.mxu3 }
 0x435   : > { %3784 = vst [vmem:[%s6075_s29 + $0xe0] sm:$0xff] %v3752_v54  ;;  %v3589_v34 = vmul.f32 %v6303_v51, %v3548_v43 }
 0x437   : > { %v3625_v59 = vadd.f32 %v6310_v7, %v3589_v34 }
 0x439   : > { %v3721_v29 = vadd.f32 %v4435_v53, %v3625_v59 }
 0x43b   : > { %v3753_v32 = vmax.f32 %v3721_v29, 0.0 }
 0x43d   : > { %3785 = vst [vmem:[%s6075_s29 + $0xe8] sm:$0xff] %v3753_v32 }
 0x44c   : > { %v3551_v55 = vpop.f32.mrf.mxu3 }
 0x44d   : > { %v3590_v4 = vmul.f32 %v6303_v51, %v3551_v55 }
 0x44f   : > { %v3626_v17 = vadd.f32 %v6310_v7, %v3590_v4 }
 0x451   : > { %v3722_v10 = vadd.f32 %v4438_v63, %v3626_v17 }
 0x453   : > { %v3754_v12 = vmax.f32 %v3722_v10, 0.0 }
 0x454   : > { %v3553_v35 = vpop.f32.mrf.mxu3 }
 0x455   : > { %3786 = vst [vmem:[%s6075_s29 + $0xf0] sm:$0xff] %v3754_v12  ;;  %v3591_v36 = vmul.f32 %v6303_v51, %v3553_v35 }
 0x457   : > { %v3627_v9 = vadd.f32 %v6310_v7, %v3591_v36 }
 0x459   : > { %v3723_v56 = vadd.f32 %v4439_v62, %v3627_v9 }
 0x45b   : > { %v3755_v33 = vmax.f32 %v3723_v56, 0.0 }
 0x45d   : > { %3787 = vst [vmem:[%s6075_s29 + $0xf8] sm:$0xff] %v3755_v33 }
 0x45e   : > { %4557 = shalt.err (!%p4554_p3)
}
 0x45f   : > { %s4598_s27 = smov 128   ;;  %s4599_s29 = smov 8  }
 0x460   : > { %4473 = dma.vmem_to_hbm [thread:$0]  (%p4693_p5), %s3803_s21, 4096, %s3805_s11, %s3789_s17, %s4598_s27, %s4598_s27, %s4599_s29  }
 0x461 PF: > { %p4479_p4 = scmp.ge.s32.totalorder %s4592_s16, 2  ;;  %s3819_s28 = sand.u32 1, %s4580_s13  }
 0x462   : > { %s3820_s18 = scalar_lea.sflag [#allocation5], %s3819_s28 }
 0x463   : > { %p4476_p7 = pnand %p4479_p4, %p4697_p6 }
 0x465   : > { %p4477_p8 = pneg %p4476_p7 }
 0x467   : > { %4575 = dma.done.wait (%p4477_p8), %s3820_s18, 4096  }
 0x468   : > { %4577 = vsyncadd (%p4477_p8), %s3820_s18, 4294963200  ;;  %p20_p9 = scmp.ge.s32.totalorder %s4680_s19, 6   ;;  %s6401_s13 = smov %s4584_s14 }
 0x469   : > { %s6402_s14 = smov %s4588_s15  ;;  %s6403_s15 = smov %s4691_s22 }
 0x46a   : > { %s6404_s16 = smov %s4680_s19  ;;  %22 = sbr.rel (!%p20_p9) target bundleno = 3 (0x3), region = 98 }
 0x46f   :  { %3826 = vsyncpa [#allocation5], 1 }
 0x470   :  { %3828 = vsyncpa [#allocation5 + $0x1], 1 }

</bundles_post_ra>
